<compile_context>
chip_gen: v7x
topology: tpu7x:2x2x1
jax: 0.10.0
libtpu: 0.0.40
codegen_flags: <defaults>
</compile_context>

<pallas_src>
import jax
import jax.numpy as jnp
from jax import lax
from jax.experimental import pallas as pl
from jax.experimental.pallas import tpu as pltpu


def make_dwsep_conv3d_kernel(Do_t, Ho, Wo, C_in, C_out, kD, kH, kW):
    WoCi = Wo * C_in
    WoCo = Wo * C_out
    n_acc = 2  # partial accumulators for VALU ILP (keeps vreg pressure sane)

    def kernel(x_ref, wdw_ref, wbig_ref, bbig_ref, o_ref):
        # x_ref   : (1, 1, Dp_t, Hp, Wp*C_in)  padded, (W,C)-fused channels-last tile
        # wdw_ref : (kD*kH*kW, Wo*C_in)        depthwise weights, tap-major, lane-tiled
        # wbig_ref: (Wo*C_in, Wo*C_out)        block-diagonal pointwise weight
        # bbig_ref: (1, Wo*C_out)              combined bias (Wpw @ b_dw + b_pw), lane-tiled
        # o_ref   : (1, 1, Do_t*Ho, Wo*C_out)  lane-dense output slab

        wdw = wdw_ref[...]                                   # all taps, loaded once

        # ---- depthwise conv: unrolled shifted-slab MACs (VPU, f32 acc) ----
        accs = [None] * n_acc
        t = 0
        for kd in range(kD):
            for kh in range(kH):
                # one full-lane ref load per (kd, kh) plane; kw taps slice it
                plane = x_ref[0, 0, kd:kd + Do_t, kh:kh + Ho, :].astype(jnp.float32)
                for kw in range(kW):
                    c0 = kw * C_in
                    slab = plane[:, :, c0:c0 + WoCi]          # (Do_t, Ho, Wo*C_in)
                    contrib = slab * wdw[t]
                    g = t % n_acc
                    accs[g] = contrib if accs[g] is None else accs[g] + contrib
                    t += 1
        acc = accs[0]
        for g in range(1, n_acc):
            if accs[g] is not None:
                acc = acc + accs[g]

        # ---- pointwise 1x1x1 conv: one block-diagonal MXU matmul ----
        # merge the two sublane-side dims (free when Ho % 8 == 0); the output
        # lands directly in the fused (Wo*C_out) lane layout.
        acc2 = acc.reshape(Do_t * Ho, WoCi)
        out = jnp.dot(acc2, wbig_ref[...], preferred_element_type=jnp.float32)
        out = out + bbig_ref[...]
        o_ref[0, 0] = out.astype(o_ref.dtype)

    return kernel


def depthwise_separable_conv3d(x, w_dw, b_dw, w_pw, b_pw, *,
                               stride=1, padding=0, d_tile=None):
    """x: (B, C_in, D, H, W).  Weights in PyTorch Conv3d layout:
       w_dw: (C_in, 1, kD, kH, kW), b_dw: (C_in,),
       w_pw: (C_out, C_in, 1, 1, 1), b_pw: (C_out,).
       Returns (B, C_out, Do, Ho, Wo), matching the nn.Module forward."""
    B, C_in, D, H, W = x.shape
    kD, kH, kW = w_dw.shape[2:]
    C_out = w_pw.shape[0]

    if isinstance(stride, int):
        stride = (stride, stride, stride)
    if isinstance(padding, int):
        padding = (padding, padding, padding)
    sd, sh, sw = stride
    pd, ph, pw_ = padding

    if (sd, sh, sw) != (1, 1, 1):
        # TODO(synk): dedicated strided kernel; subsampling the stride-1 output
        # is mathematically identical to the strided conv.
        full = depthwise_separable_conv3d(x, w_dw, b_dw, w_pw, b_pw,
                                          stride=1, padding=padding, d_tile=d_tile)
        return full[:, :, ::sd, ::sh, ::sw]

    Do = D + 2 * pd - kD + 1
    Ho = H + 2 * ph - kH + 1
    Wo = W + 2 * pw_ - kW + 1
    Hp = H + 2 * ph
    WpC = (Wo + kW - 1) * C_in            # fused (W, C_in) lane width of the input
    WoCi, WoCo = Wo * C_in, Wo * C_out
    n_taps = kD * kH * kW

    # ---- output-depth tile selection (bounds VMEM per grid step) ----
    if d_tile is None:
        lane = 128
        item = x.dtype.itemsize
        row_in = Hp * (-(-WpC // lane) * lane) * item      # bytes / padded input depth-row
        row_out = Ho * (-(-WoCo // lane) * lane) * item    # bytes / output depth-row
        budget = 8 * 1024 * 1024                           # leave headroom for double-buffering
        Do_tile = max(1, min(Do, budget // (2 * (row_in + row_out)) - (kD - 1)))
        if B == 1 and Do >= 2:
            Do_tile = min(Do_tile, pl.cdiv(Do, 2))         # give v7x's 2nd TC work when B == 1
    else:
        Do_tile = max(1, min(int(d_tile), Do))
    n_dt = pl.cdiv(Do, Do_tile)
    Do_pad = n_dt * Do_tile
    Dp_tile = Do_tile + kD - 1

    # ---- host-side layout plumbing (done once; no transposes in-kernel) ----
    # channels-last, spatially zero-padded, (W, C_in) fused into the lane axis.
    x_cl = jnp.transpose(x, (0, 2, 3, 4, 1))                       # (B, D, H, W, C)
    x_pad = jnp.pad(x_cl, ((0, 0), (pd, pd + (Do_pad - Do)),
                           (ph, ph), (pw_, pw_), (0, 0)))
    Dp_total = Do_pad + kD - 1
    x_fused = x_pad.reshape(B, Dp_total, Hp, WpC)
    # overlapping depth windows (halo = kD-1 rows), materialised once in HBM.
    x_tiles = jnp.stack(
        [lax.slice_in_dim(x_fused, t * Do_tile, t * Do_tile + Dp_tile, axis=1)
         for t in range(n_dt)], axis=1)                            # (B, n_dt, Dp_tile, Hp, WpC)

    # Depthwise weights: tap-major, tiled to the fused (Wo*C_in) lane width.
    wdw_taps = jnp.transpose(w_dw[:, 0].reshape(C_in, n_taps))     # (n_taps, C_in)
    wdw_fused = jnp.tile(wdw_taps, (1, Wo)).astype(jnp.float32)    # (n_taps, Wo*C_in)

    # Pointwise as a block-diagonal matmul in the fused lane layout:
    #   W_big[wo*C_in + ci, wo*C_out + co] = w_pw[co, ci]
    wpw_mat = w_pw.reshape(C_out, C_in).astype(jnp.float32)
    eye = jnp.eye(Wo, dtype=jnp.float32)
    w_big = jnp.einsum('uv,io->uivo', eye, wpw_mat.T).reshape(WoCi, WoCo)
    # Depthwise bias folded into the pointwise bias.
    b_comb = wpw_mat @ b_dw.astype(jnp.float32) + b_pw.astype(jnp.float32)
    b_big = jnp.tile(b_comb, (Wo,)).reshape(1, WoCo)

    kernel = make_dwsep_conv3d_kernel(Do_tile, Ho, Wo, C_in, C_out, kD, kH, kW)

    out4 = pl.pallas_call(
        kernel,
        out_shape=jax.ShapeDtypeStruct((B, n_dt, Do_tile * Ho, WoCo), x.dtype),
        grid_spec=pltpu.PrefetchScalarGridSpec(
            num_scalar_prefetch=0,
            grid=(B, n_dt),
            in_specs=[
                pl.BlockSpec((1, 1, Dp_tile, Hp, WpC), lambda b, t: (b, t, 0, 0, 0)),
                pl.BlockSpec((n_taps, WoCi), lambda b, t: (0, 0)),
                pl.BlockSpec((WoCi, WoCo), lambda b, t: (0, 0)),
                pl.BlockSpec((1, WoCo), lambda b, t: (0, 0)),
            ],
            out_specs=pl.BlockSpec((1, 1, Do_tile * Ho, WoCo),
                                   lambda b, t: (b, t, 0, 0)),
        ),
        compiler_params=pltpu.CompilerParams(
            dimension_semantics=("parallel", "parallel")),
    )(x_tiles, wdw_fused, w_big, b_big)

    out = out4.reshape(B, Do_pad, Ho, Wo, C_out)[:, :Do]
    return jnp.transpose(out, (0, 4, 1, 2, 3))                     # back to NCDHW


def depthwise_separable_conv3d_reference(x, w_dw, b_dw, w_pw, b_pw,
                                         *, stride=1, padding=0):
    """Pure-JAX reference mirroring the PyTorch forward."""
    C_in = x.shape[1]
    if isinstance(stride, int):
        stride = (stride, stride, stride)
    if isinstance(padding, int):
        padding = (padding, padding, padding)
    dn = lax.conv_dimension_numbers(x.shape, w_dw.shape,
                                    ("NCDHW", "OIDHW", "NCDHW"))
    y = lax.conv_general_dilated(
        x, w_dw, window_strides=stride,
        padding=[(p, p) for p in padding],
        dimension_numbers=dn, feature_group_count=C_in,
        precision=lax.Precision.HIGHEST)
    y = y + b_dw.reshape(1, -1, 1, 1, 1)
    dn2 = lax.conv_dimension_numbers(y.shape, w_pw.shape,
                                     ("NCDHW", "OIDHW", "NCDHW"))
    z = lax.conv_general_dilated(
        y, w_pw, window_strides=(1, 1, 1), padding=[(0, 0)] * 3,
        dimension_numbers=dn2, precision=lax.Precision.HIGHEST)
    return z + b_pw.reshape(1, -1, 1, 1, 1)


if __name__ == "__main__":
    # Small shapes consistent with the module: x is (B, C_in, D, H, W).
    B, C_in, C_out = 2, 4, 8
    D = H = W = 16
    kD = kH = kW = 3
    padding = 1

    key = jax.random.PRNGKey(0)
    kx, kw1, kb1, kw2, kb2 = jax.random.split(key, 5)

    x = jax.random.normal(kx, (B, C_in, D, H, W), dtype=jnp.float32)
    w_dw = jax.random.normal(kw1, (C_in, 1, kD, kH, kW), dtype=jnp.float32) * 0.1
    b_dw = jax.random.normal(kb1, (C_in,), dtype=jnp.float32) * 0.1
    w_pw = jax.random.normal(kw2, (C_out, C_in, 1, 1, 1), dtype=jnp.float32) * 0.1
    b_pw = jax.random.normal(kb2, (C_out,), dtype=jnp.float32) * 0.1

    # d_tile=8 exercises the depth-tiled / halo path (grid = (B, 2)).
    out = depthwise_separable_conv3d(x, w_dw, b_dw, w_pw, b_pw,
                                     stride=1, padding=padding, d_tile=8)
    out = jax.block_until_ready(out)

    ref = depthwise_separable_conv3d_reference(x, w_dw, b_dw, w_pw, b_pw,
                                               stride=1, padding=padding)
    assert out.shape == ref.shape == (B, C_out, D, H, W), (out.shape, ref.shape)
    assert jnp.allclose(out, ref, atol=2e-3, rtol=2e-3), \
        f"mismatch vs reference: max abs err {jnp.max(jnp.abs(out - ref))}"

    print("KERNEL_OK")
</pallas_src>

<mosaic_0001>
module attributes {stable_mosaic.version = 11 : i64} {
  func.func @kernel(%arg0: i32, %arg1: i32, %arg2: memref<1x1x10x18x72xf32, #tpu.memory_space<vmem>>, %arg3: memref<27x64xf32, #tpu.memory_space<vmem>>, %arg4: memref<64x128xf32, #tpu.memory_space<vmem>>, %arg5: memref<1x128xf32, #tpu.memory_space<vmem>>, %arg6: memref<1x1x128x128xf32, #tpu.memory_space<vmem>>) attributes {dimension_semantics = [#tpu.dimension_semantics<parallel>, #tpu.dimension_semantics<parallel>], iteration_bounds = array<i64: 2, 2>, scalar_prefetch = 0 : i64, scratch_operands = 0 : i64, tpu.core_type = #tpu.core_type<tc>, window_params = [{transform_indices = @transform_0, window_bounds = array<i64: 1, 1, 10, 18, 72>}, {pipeline_mode = #tpu.pipeline_mode<synchronous>, transform_indices = @transform_1, window_bounds = array<i64: 27, 64>}, {pipeline_mode = #tpu.pipeline_mode<synchronous>, transform_indices = @transform_2, window_bounds = array<i64: 64, 128>}, {pipeline_mode = #tpu.pipeline_mode<synchronous>, transform_indices = @transform_3, window_bounds = array<i64: 1, 128>}, {transform_indices = @transform_4, window_bounds = array<i64: 1, 1, 128, 128>}]} {
    %c0 = arith.constant 0 : index
    %c0_0 = arith.constant 0 : index
    %0 = vector.load %arg3[%c0, %c0_0] : memref<27x64xf32, #tpu.memory_space<vmem>>, vector<27x64xf32>
    %c0_1 = arith.constant 0 : index
    %c0_2 = arith.constant 0 : index
    %c0_3 = arith.constant 0 : index
    %c0_4 = arith.constant 0 : index
    %c0_5 = arith.constant 0 : index
    %1 = vector.load %arg2[%c0_1, %c0_2, %c0_3, %c0_4, %c0_5] : memref<1x1x10x18x72xf32, #tpu.memory_space<vmem>>, vector<1x1x8x16x72xf32>
    %2 = vector.shape_cast %1 : vector<1x1x8x16x72xf32> to vector<8x16x72xf32>
    %3 = vector.extract_strided_slice %2 {offsets = [0, 0, 0], sizes = [8, 16, 64], strides = [1, 1, 1]} : vector<8x16x72xf32> to vector<8x16x64xf32>
    %4 = vector.extract_strided_slice %0 {offsets = [0, 0], sizes = [1, 64], strides = [1, 1]} : vector<27x64xf32> to vector<1x64xf32>
    %5 = vector.shape_cast %4 : vector<1x64xf32> to vector<64xf32>
    %6 = vector.shape_cast %5 : vector<64xf32> to vector<1x1x64xf32>
    %7 = vector.broadcast %6 : vector<1x1x64xf32> to vector<8x16x64xf32>
    %8 = arith.mulf %3, %7 : vector<8x16x64xf32>
    %9 = vector.extract_strided_slice %2 {offsets = [0, 0, 4], sizes = [8, 16, 64], strides = [1, 1, 1]} : vector<8x16x72xf32> to vector<8x16x64xf32>
    %10 = vector.extract_strided_slice %0 {offsets = [1, 0], sizes = [1, 64], strides = [1, 1]} : vector<27x64xf32> to vector<1x64xf32>
    %11 = vector.shape_cast %10 : vector<1x64xf32> to vector<64xf32>
    %12 = vector.shape_cast %11 : vector<64xf32> to vector<1x1x64xf32>
    %13 = vector.broadcast %12 : vector<1x1x64xf32> to vector<8x16x64xf32>
    %14 = arith.mulf %9, %13 : vector<8x16x64xf32>
    %15 = vector.extract_strided_slice %2 {offsets = [0, 0, 8], sizes = [8, 16, 64], strides = [1, 1, 1]} : vector<8x16x72xf32> to vector<8x16x64xf32>
    %16 = vector.extract_strided_slice %0 {offsets = [2, 0], sizes = [1, 64], strides = [1, 1]} : vector<27x64xf32> to vector<1x64xf32>
    %17 = vector.shape_cast %16 : vector<1x64xf32> to vector<64xf32>
    %18 = vector.shape_cast %17 : vector<64xf32> to vector<1x1x64xf32>
    %19 = vector.broadcast %18 : vector<1x1x64xf32> to vector<8x16x64xf32>
    %20 = arith.mulf %15, %19 : vector<8x16x64xf32>
    %21 = arith.addf %8, %20 : vector<8x16x64xf32>
    %c0_6 = arith.constant 0 : index
    %c0_7 = arith.constant 0 : index
    %c0_8 = arith.constant 0 : index
    %c1 = arith.constant 1 : index
    %c0_9 = arith.constant 0 : index
    %22 = vector.load %arg2[%c0_6, %c0_7, %c0_8, %c1, %c0_9] : memref<1x1x10x18x72xf32, #tpu.memory_space<vmem>>, vector<1x1x8x16x72xf32>
    %23 = vector.shape_cast %22 : vector<1x1x8x16x72xf32> to vector<8x16x72xf32>
    %24 = vector.extract_strided_slice %23 {offsets = [0, 0, 0], sizes = [8, 16, 64], strides = [1, 1, 1]} : vector<8x16x72xf32> to vector<8x16x64xf32>
    %25 = vector.extract_strided_slice %0 {offsets = [3, 0], sizes = [1, 64], strides = [1, 1]} : vector<27x64xf32> to vector<1x64xf32>
    %26 = vector.shape_cast %25 : vector<1x64xf32> to vector<64xf32>
    %27 = vector.shape_cast %26 : vector<64xf32> to vector<1x1x64xf32>
    %28 = vector.broadcast %27 : vector<1x1x64xf32> to vector<8x16x64xf32>
    %29 = arith.mulf %24, %28 : vector<8x16x64xf32>
    %30 = arith.addf %14, %29 : vector<8x16x64xf32>
    %31 = vector.extract_strided_slice %23 {offsets = [0, 0, 4], sizes = [8, 16, 64], strides = [1, 1, 1]} : vector<8x16x72xf32> to vector<8x16x64xf32>
    %32 = vector.extract_strided_slice %0 {offsets = [4, 0], sizes = [1, 64], strides = [1, 1]} : vector<27x64xf32> to vector<1x64xf32>
    %33 = vector.shape_cast %32 : vector<1x64xf32> to vector<64xf32>
    %34 = vector.shape_cast %33 : vector<64xf32> to vector<1x1x64xf32>
    %35 = vector.broadcast %34 : vector<1x1x64xf32> to vector<8x16x64xf32>
    %36 = arith.mulf %31, %35 : vector<8x16x64xf32>
    %37 = arith.addf %21, %36 : vector<8x16x64xf32>
    %38 = vector.extract_strided_slice %23 {offsets = [0, 0, 8], sizes = [8, 16, 64], strides = [1, 1, 1]} : vector<8x16x72xf32> to vector<8x16x64xf32>
    %39 = vector.extract_strided_slice %0 {offsets = [5, 0], sizes = [1, 64], strides = [1, 1]} : vector<27x64xf32> to vector<1x64xf32>
    %40 = vector.shape_cast %39 : vector<1x64xf32> to vector<64xf32>
    %41 = vector.shape_cast %40 : vector<64xf32> to vector<1x1x64xf32>
    %42 = vector.broadcast %41 : vector<1x1x64xf32> to vector<8x16x64xf32>
    %43 = arith.mulf %38, %42 : vector<8x16x64xf32>
    %44 = arith.addf %30, %43 : vector<8x16x64xf32>
    %c0_10 = arith.constant 0 : index
    %c0_11 = arith.constant 0 : index
    %c0_12 = arith.constant 0 : index
    %c2 = arith.constant 2 : index
    %c0_13 = arith.constant 0 : index
    %45 = vector.load %arg2[%c0_10, %c0_11, %c0_12, %c2, %c0_13] : memref<1x1x10x18x72xf32, #tpu.memory_space<vmem>>, vector<1x1x8x16x72xf32>
    %46 = vector.shape_cast %45 : vector<1x1x8x16x72xf32> to vector<8x16x72xf32>
    %47 = vector.extract_strided_slice %46 {offsets = [0, 0, 0], sizes = [8, 16, 64], strides = [1, 1, 1]} : vector<8x16x72xf32> to vector<8x16x64xf32>
    %48 = vector.extract_strided_slice %0 {offsets = [6, 0], sizes = [1, 64], strides = [1, 1]} : vector<27x64xf32> to vector<1x64xf32>
    %49 = vector.shape_cast %48 : vector<1x64xf32> to vector<64xf32>
    %50 = vector.shape_cast %49 : vector<64xf32> to vector<1x1x64xf32>
    %51 = vector.broadcast %50 : vector<1x1x64xf32> to vector<8x16x64xf32>
    %52 = arith.mulf %47, %51 : vector<8x16x64xf32>
    %53 = arith.addf %37, %52 : vector<8x16x64xf32>
    %54 = vector.extract_strided_slice %46 {offsets = [0, 0, 4], sizes = [8, 16, 64], strides = [1, 1, 1]} : vector<8x16x72xf32> to vector<8x16x64xf32>
    %55 = vector.extract_strided_slice %0 {offsets = [7, 0], sizes = [1, 64], strides = [1, 1]} : vector<27x64xf32> to vector<1x64xf32>
    %56 = vector.shape_cast %55 : vector<1x64xf32> to vector<64xf32>
    %57 = vector.shape_cast %56 : vector<64xf32> to vector<1x1x64xf32>
    %58 = vector.broadcast %57 : vector<1x1x64xf32> to vector<8x16x64xf32>
    %59 = arith.mulf %54, %58 : vector<8x16x64xf32>
    %60 = arith.addf %44, %59 : vector<8x16x64xf32>
    %61 = vector.extract_strided_slice %46 {offsets = [0, 0, 8], sizes = [8, 16, 64], strides = [1, 1, 1]} : vector<8x16x72xf32> to vector<8x16x64xf32>
    %62 = vector.extract_strided_slice %0 {offsets = [8, 0], sizes = [1, 64], strides = [1, 1]} : vector<27x64xf32> to vector<1x64xf32>
    %63 = vector.shape_cast %62 : vector<1x64xf32> to vector<64xf32>
    %64 = vector.shape_cast %63 : vector<64xf32> to vector<1x1x64xf32>
    %65 = vector.broadcast %64 : vector<1x1x64xf32> to vector<8x16x64xf32>
    %66 = arith.mulf %61, %65 : vector<8x16x64xf32>
    %67 = arith.addf %53, %66 : vector<8x16x64xf32>
    %c0_14 = arith.constant 0 : index
    %c0_15 = arith.constant 0 : index
    %c1_16 = arith.constant 1 : index
    %c0_17 = arith.constant 0 : index
    %c0_18 = arith.constant 0 : index
    %68 = vector.load %arg2[%c0_14, %c0_15, %c1_16, %c0_17, %c0_18] : memref<1x1x10x18x72xf32, #tpu.memory_space<vmem>>, vector<1x1x8x16x72xf32>
    %69 = vector.shape_cast %68 : vector<1x1x8x16x72xf32> to vector<8x16x72xf32>
    %70 = vector.extract_strided_slice %69 {offsets = [0, 0, 0], sizes = [8, 16, 64], strides = [1, 1, 1]} : vector<8x16x72xf32> to vector<8x16x64xf32>
    %71 = vector.extract_strided_slice %0 {offsets = [9, 0], sizes = [1, 64], strides = [1, 1]} : vector<27x64xf32> to vector<1x64xf32>
    %72 = vector.shape_cast %71 : vector<1x64xf32> to vector<64xf32>
    %73 = vector.shape_cast %72 : vector<64xf32> to vector<1x1x64xf32>
    %74 = vector.broadcast %73 : vector<1x1x64xf32> to vector<8x16x64xf32>
    %75 = arith.mulf %70, %74 : vector<8x16x64xf32>
    %76 = arith.addf %60, %75 : vector<8x16x64xf32>
    %77 = vector.extract_strided_slice %69 {offsets = [0, 0, 4], sizes = [8, 16, 64], strides = [1, 1, 1]} : vector<8x16x72xf32> to vector<8x16x64xf32>
    %78 = vector.extract_strided_slice %0 {offsets = [10, 0], sizes = [1, 64], strides = [1, 1]} : vector<27x64xf32> to vector<1x64xf32>
    %79 = vector.shape_cast %78 : vector<1x64xf32> to vector<64xf32>
    %80 = vector.shape_cast %79 : vector<64xf32> to vector<1x1x64xf32>
    %81 = vector.broadcast %80 : vector<1x1x64xf32> to vector<8x16x64xf32>
    %82 = arith.mulf %77, %81 : vector<8x16x64xf32>
    %83 = arith.addf %67, %82 : vector<8x16x64xf32>
    %84 = vector.extract_strided_slice %69 {offsets = [0, 0, 8], sizes = [8, 16, 64], strides = [1, 1, 1]} : vector<8x16x72xf32> to vector<8x16x64xf32>
    %85 = vector.extract_strided_slice %0 {offsets = [11, 0], sizes = [1, 64], strides = [1, 1]} : vector<27x64xf32> to vector<1x64xf32>
    %86 = vector.shape_cast %85 : vector<1x64xf32> to vector<64xf32>
    %87 = vector.shape_cast %86 : vector<64xf32> to vector<1x1x64xf32>
    %88 = vector.broadcast %87 : vector<1x1x64xf32> to vector<8x16x64xf32>
    %89 = arith.mulf %84, %88 : vector<8x16x64xf32>
    %90 = arith.addf %76, %89 : vector<8x16x64xf32>
    %c0_19 = arith.constant 0 : index
    %c0_20 = arith.constant 0 : index
    %c1_21 = arith.constant 1 : index
    %c1_22 = arith.constant 1 : index
    %c0_23 = arith.constant 0 : index
    %91 = vector.load %arg2[%c0_19, %c0_20, %c1_21, %c1_22, %c0_23] : memref<1x1x10x18x72xf32, #tpu.memory_space<vmem>>, vector<1x1x8x16x72xf32>
    %92 = vector.shape_cast %91 : vector<1x1x8x16x72xf32> to vector<8x16x72xf32>
    %93 = vector.extract_strided_slice %92 {offsets = [0, 0, 0], sizes = [8, 16, 64], strides = [1, 1, 1]} : vector<8x16x72xf32> to vector<8x16x64xf32>
    %94 = vector.extract_strided_slice %0 {offsets = [12, 0], sizes = [1, 64], strides = [1, 1]} : vector<27x64xf32> to vector<1x64xf32>
    %95 = vector.shape_cast %94 : vector<1x64xf32> to vector<64xf32>
    %96 = vector.shape_cast %95 : vector<64xf32> to vector<1x1x64xf32>
    %97 = vector.broadcast %96 : vector<1x1x64xf32> to vector<8x16x64xf32>
    %98 = arith.mulf %93, %97 : vector<8x16x64xf32>
    %99 = arith.addf %83, %98 : vector<8x16x64xf32>
    %100 = vector.extract_strided_slice %92 {offsets = [0, 0, 4], sizes = [8, 16, 64], strides = [1, 1, 1]} : vector<8x16x72xf32> to vector<8x16x64xf32>
    %101 = vector.extract_strided_slice %0 {offsets = [13, 0], sizes = [1, 64], strides = [1, 1]} : vector<27x64xf32> to vector<1x64xf32>
    %102 = vector.shape_cast %101 : vector<1x64xf32> to vector<64xf32>
    %103 = vector.shape_cast %102 : vector<64xf32> to vector<1x1x64xf32>
    %104 = vector.broadcast %103 : vector<1x1x64xf32> to vector<8x16x64xf32>
    %105 = arith.mulf %100, %104 : vector<8x16x64xf32>
    %106 = arith.addf %90, %105 : vector<8x16x64xf32>
    %107 = vector.extract_strided_slice %92 {offsets = [0, 0, 8], sizes = [8, 16, 64], strides = [1, 1, 1]} : vector<8x16x72xf32> to vector<8x16x64xf32>
    %108 = vector.extract_strided_slice %0 {offsets = [14, 0], sizes = [1, 64], strides = [1, 1]} : vector<27x64xf32> to vector<1x64xf32>
    %109 = vector.shape_cast %108 : vector<1x64xf32> to vector<64xf32>
    %110 = vector.shape_cast %109 : vector<64xf32> to vector<1x1x64xf32>
    %111 = vector.broadcast %110 : vector<1x1x64xf32> to vector<8x16x64xf32>
    %112 = arith.mulf %107, %111 : vector<8x16x64xf32>
    %113 = arith.addf %99, %112 : vector<8x16x64xf32>
    %c0_24 = arith.constant 0 : index
    %c0_25 = arith.constant 0 : index
    %c1_26 = arith.constant 1 : index
    %c2_27 = arith.constant 2 : index
    %c0_28 = arith.constant 0 : index
    %114 = vector.load %arg2[%c0_24, %c0_25, %c1_26, %c2_27, %c0_28] : memref<1x1x10x18x72xf32, #tpu.memory_space<vmem>>, vector<1x1x8x16x72xf32>
    %115 = vector.shape_cast %114 : vector<1x1x8x16x72xf32> to vector<8x16x72xf32>
    %116 = vector.extract_strided_slice %115 {offsets = [0, 0, 0], sizes = [8, 16, 64], strides = [1, 1, 1]} : vector<8x16x72xf32> to vector<8x16x64xf32>
    %117 = vector.extract_strided_slice %0 {offsets = [15, 0], sizes = [1, 64], strides = [1, 1]} : vector<27x64xf32> to vector<1x64xf32>
    %118 = vector.shape_cast %117 : vector<1x64xf32> to vector<64xf32>
    %119 = vector.shape_cast %118 : vector<64xf32> to vector<1x1x64xf32>
    %120 = vector.broadcast %119 : vector<1x1x64xf32> to vector<8x16x64xf32>
    %121 = arith.mulf %116, %120 : vector<8x16x64xf32>
    %122 = arith.addf %106, %121 : vector<8x16x64xf32>
    %123 = vector.extract_strided_slice %115 {offsets = [0, 0, 4], sizes = [8, 16, 64], strides = [1, 1, 1]} : vector<8x16x72xf32> to vector<8x16x64xf32>
    %124 = vector.extract_strided_slice %0 {offsets = [16, 0], sizes = [1, 64], strides = [1, 1]} : vector<27x64xf32> to vector<1x64xf32>
    %125 = vector.shape_cast %124 : vector<1x64xf32> to vector<64xf32>
    %126 = vector.shape_cast %125 : vector<64xf32> to vector<1x1x64xf32>
    %127 = vector.broadcast %126 : vector<1x1x64xf32> to vector<8x16x64xf32>
    %128 = arith.mulf %123, %127 : vector<8x16x64xf32>
    %129 = arith.addf %113, %128 : vector<8x16x64xf32>
    %130 = vector.extract_strided_slice %115 {offsets = [0, 0, 8], sizes = [8, 16, 64], strides = [1, 1, 1]} : vector<8x16x72xf32> to vector<8x16x64xf32>
    %131 = vector.extract_strided_slice %0 {offsets = [17, 0], sizes = [1, 64], strides = [1, 1]} : vector<27x64xf32> to vector<1x64xf32>
    %132 = vector.shape_cast %131 : vector<1x64xf32> to vector<64xf32>
    %133 = vector.shape_cast %132 : vector<64xf32> to vector<1x1x64xf32>
    %134 = vector.broadcast %133 : vector<1x1x64xf32> to vector<8x16x64xf32>
    %135 = arith.mulf %130, %134 : vector<8x16x64xf32>
    %136 = arith.addf %122, %135 : vector<8x16x64xf32>
    %c0_29 = arith.constant 0 : index
    %c0_30 = arith.constant 0 : index
    %c2_31 = arith.constant 2 : index
    %c0_32 = arith.constant 0 : index
    %c0_33 = arith.constant 0 : index
    %137 = vector.load %arg2[%c0_29, %c0_30, %c2_31, %c0_32, %c0_33] : memref<1x1x10x18x72xf32, #tpu.memory_space<vmem>>, vector<1x1x8x16x72xf32>
    %138 = vector.shape_cast %137 : vector<1x1x8x16x72xf32> to vector<8x16x72xf32>
    %139 = vector.extract_strided_slice %138 {offsets = [0, 0, 0], sizes = [8, 16, 64], strides = [1, 1, 1]} : vector<8x16x72xf32> to vector<8x16x64xf32>
    %140 = vector.extract_strided_slice %0 {offsets = [18, 0], sizes = [1, 64], strides = [1, 1]} : vector<27x64xf32> to vector<1x64xf32>
    %141 = vector.shape_cast %140 : vector<1x64xf32> to vector<64xf32>
    %142 = vector.shape_cast %141 : vector<64xf32> to vector<1x1x64xf32>
    %143 = vector.broadcast %142 : vector<1x1x64xf32> to vector<8x16x64xf32>
    %144 = arith.mulf %139, %143 : vector<8x16x64xf32>
    %145 = arith.addf %129, %144 : vector<8x16x64xf32>
    %146 = vector.extract_strided_slice %138 {offsets = [0, 0, 4], sizes = [8, 16, 64], strides = [1, 1, 1]} : vector<8x16x72xf32> to vector<8x16x64xf32>
    %147 = vector.extract_strided_slice %0 {offsets = [19, 0], sizes = [1, 64], strides = [1, 1]} : vector<27x64xf32> to vector<1x64xf32>
    %148 = vector.shape_cast %147 : vector<1x64xf32> to vector<64xf32>
    %149 = vector.shape_cast %148 : vector<64xf32> to vector<1x1x64xf32>
    %150 = vector.broadcast %149 : vector<1x1x64xf32> to vector<8x16x64xf32>
    %151 = arith.mulf %146, %150 : vector<8x16x64xf32>
    %152 = arith.addf %136, %151 : vector<8x16x64xf32>
    %153 = vector.extract_strided_slice %138 {offsets = [0, 0, 8], sizes = [8, 16, 64], strides = [1, 1, 1]} : vector<8x16x72xf32> to vector<8x16x64xf32>
    %154 = vector.extract_strided_slice %0 {offsets = [20, 0], sizes = [1, 64], strides = [1, 1]} : vector<27x64xf32> to vector<1x64xf32>
    %155 = vector.shape_cast %154 : vector<1x64xf32> to vector<64xf32>
    %156 = vector.shape_cast %155 : vector<64xf32> to vector<1x1x64xf32>
    %157 = vector.broadcast %156 : vector<1x1x64xf32> to vector<8x16x64xf32>
    %158 = arith.mulf %153, %157 : vector<8x16x64xf32>
    %159 = arith.addf %145, %158 : vector<8x16x64xf32>
    %c0_34 = arith.constant 0 : index
    %c0_35 = arith.constant 0 : index
    %c2_36 = arith.constant 2 : index
    %c1_37 = arith.constant 1 : index
    %c0_38 = arith.constant 0 : index
    %160 = vector.load %arg2[%c0_34, %c0_35, %c2_36, %c1_37, %c0_38] : memref<1x1x10x18x72xf32, #tpu.memory_space<vmem>>, vector<1x1x8x16x72xf32>
    %161 = vector.shape_cast %160 : vector<1x1x8x16x72xf32> to vector<8x16x72xf32>
    %162 = vector.extract_strided_slice %161 {offsets = [0, 0, 0], sizes = [8, 16, 64], strides = [1, 1, 1]} : vector<8x16x72xf32> to vector<8x16x64xf32>
    %163 = vector.extract_strided_slice %0 {offsets = [21, 0], sizes = [1, 64], strides = [1, 1]} : vector<27x64xf32> to vector<1x64xf32>
    %164 = vector.shape_cast %163 : vector<1x64xf32> to vector<64xf32>
    %165 = vector.shape_cast %164 : vector<64xf32> to vector<1x1x64xf32>
    %166 = vector.broadcast %165 : vector<1x1x64xf32> to vector<8x16x64xf32>
    %167 = arith.mulf %162, %166 : vector<8x16x64xf32>
    %168 = arith.addf %152, %167 : vector<8x16x64xf32>
    %169 = vector.extract_strided_slice %161 {offsets = [0, 0, 4], sizes = [8, 16, 64], strides = [1, 1, 1]} : vector<8x16x72xf32> to vector<8x16x64xf32>
    %170 = vector.extract_strided_slice %0 {offsets = [22, 0], sizes = [1, 64], strides = [1, 1]} : vector<27x64xf32> to vector<1x64xf32>
    %171 = vector.shape_cast %170 : vector<1x64xf32> to vector<64xf32>
    %172 = vector.shape_cast %171 : vector<64xf32> to vector<1x1x64xf32>
    %173 = vector.broadcast %172 : vector<1x1x64xf32> to vector<8x16x64xf32>
    %174 = arith.mulf %169, %173 : vector<8x16x64xf32>
    %175 = arith.addf %159, %174 : vector<8x16x64xf32>
    %176 = vector.extract_strided_slice %161 {offsets = [0, 0, 8], sizes = [8, 16, 64], strides = [1, 1, 1]} : vector<8x16x72xf32> to vector<8x16x64xf32>
    %177 = vector.extract_strided_slice %0 {offsets = [23, 0], sizes = [1, 64], strides = [1, 1]} : vector<27x64xf32> to vector<1x64xf32>
    %178 = vector.shape_cast %177 : vector<1x64xf32> to vector<64xf32>
    %179 = vector.shape_cast %178 : vector<64xf32> to vector<1x1x64xf32>
    %180 = vector.broadcast %179 : vector<1x1x64xf32> to vector<8x16x64xf32>
    %181 = arith.mulf %176, %180 : vector<8x16x64xf32>
    %182 = arith.addf %168, %181 : vector<8x16x64xf32>
    %c0_39 = arith.constant 0 : index
    %c0_40 = arith.constant 0 : index
    %c2_41 = arith.constant 2 : index
    %c2_42 = arith.constant 2 : index
    %c0_43 = arith.constant 0 : index
    %183 = vector.load %arg2[%c0_39, %c0_40, %c2_41, %c2_42, %c0_43] : memref<1x1x10x18x72xf32, #tpu.memory_space<vmem>>, vector<1x1x8x16x72xf32>
    %184 = vector.shape_cast %183 : vector<1x1x8x16x72xf32> to vector<8x16x72xf32>
    %185 = vector.extract_strided_slice %184 {offsets = [0, 0, 0], sizes = [8, 16, 64], strides = [1, 1, 1]} : vector<8x16x72xf32> to vector<8x16x64xf32>
    %186 = vector.extract_strided_slice %0 {offsets = [24, 0], sizes = [1, 64], strides = [1, 1]} : vector<27x64xf32> to vector<1x64xf32>
    %187 = vector.shape_cast %186 : vector<1x64xf32> to vector<64xf32>
    %188 = vector.shape_cast %187 : vector<64xf32> to vector<1x1x64xf32>
    %189 = vector.broadcast %188 : vector<1x1x64xf32> to vector<8x16x64xf32>
    %190 = arith.mulf %185, %189 : vector<8x16x64xf32>
    %191 = arith.addf %175, %190 : vector<8x16x64xf32>
    %192 = vector.extract_strided_slice %184 {offsets = [0, 0, 4], sizes = [8, 16, 64], strides = [1, 1, 1]} : vector<8x16x72xf32> to vector<8x16x64xf32>
    %193 = vector.extract_strided_slice %0 {offsets = [25, 0], sizes = [1, 64], strides = [1, 1]} : vector<27x64xf32> to vector<1x64xf32>
    %194 = vector.shape_cast %193 : vector<1x64xf32> to vector<64xf32>
    %195 = vector.shape_cast %194 : vector<64xf32> to vector<1x1x64xf32>
    %196 = vector.broadcast %195 : vector<1x1x64xf32> to vector<8x16x64xf32>
    %197 = arith.mulf %192, %196 : vector<8x16x64xf32>
    %198 = arith.addf %182, %197 : vector<8x16x64xf32>
    %199 = vector.extract_strided_slice %184 {offsets = [0, 0, 8], sizes = [8, 16, 64], strides = [1, 1, 1]} : vector<8x16x72xf32> to vector<8x16x64xf32>
    %200 = vector.extract_strided_slice %0 {offsets = [26, 0], sizes = [1, 64], strides = [1, 1]} : vector<27x64xf32> to vector<1x64xf32>
    %201 = vector.shape_cast %200 : vector<1x64xf32> to vector<64xf32>
    %202 = vector.shape_cast %201 : vector<64xf32> to vector<1x1x64xf32>
    %203 = vector.broadcast %202 : vector<1x1x64xf32> to vector<8x16x64xf32>
    %204 = arith.mulf %199, %203 : vector<8x16x64xf32>
    %205 = arith.addf %191, %204 : vector<8x16x64xf32>
    %206 = arith.addf %205, %198 : vector<8x16x64xf32>
    %207 = vector.shape_cast %206 : vector<8x16x64xf32> to vector<128x64xf32>
    %c0_44 = arith.constant 0 : index
    %c0_45 = arith.constant 0 : index
    %208 = vector.load %arg4[%c0_44, %c0_45] : memref<64x128xf32, #tpu.memory_space<vmem>>, vector<64x128xf32>
    %cst = arith.constant dense<0.000000e+00> : vector<128x128xf32>
    %209 = tpu.matmul %207, %208, %cst {dimension_numbers = #tpu.dot_dimension_numbers<[1], [0], [0], [1], [0, 0, 1, 1], [], []>} : vector<128x64xf32>, vector<64x128xf32>, vector<128x128xf32> -> vector<128x128xf32>
    %c0_46 = arith.constant 0 : index
    %c0_47 = arith.constant 0 : index
    %210 = vector.load %arg5[%c0_46, %c0_47] : memref<1x128xf32, #tpu.memory_space<vmem>>, vector<1x128xf32>
    %211 = vector.broadcast %210 : vector<1x128xf32> to vector<128x128xf32>
    %212 = arith.addf %209, %211 : vector<128x128xf32>
    %c0_48 = arith.constant 0 : index
    %c0_49 = arith.constant 0 : index
    %c0_50 = arith.constant 0 : index
    %c0_51 = arith.constant 0 : index
    %213 = vector.load %arg6[%c0_48, %c0_49, %c0_50, %c0_51] : memref<1x1x128x128xf32, #tpu.memory_space<vmem>>, vector<1x1x128x128xf32>
    %214 = vector.shape_cast %213 : vector<1x1x128x128xf32> to vector<128x128xf32>
    %215 = vector.shape_cast %212 : vector<128x128xf32> to vector<1x1x128x128xf32>
    tpu.vector_store %arg6[%c0_48, %c0_49, %c0_50, %c0_51], %215 {strides = array<i32>} : memref<1x1x128x128xf32, #tpu.memory_space<vmem>>, vector<1x1x128x128xf32>,
    return
  }
  func.func @transform_0(%arg0: i32, %arg1: i32) -> (i32, i32, i32, i32, i32) {
    %c0_i32 = arith.constant 0 : i32
    %c0_i32_0 = arith.constant 0 : i32
    %c0_i32_1 = arith.constant 0 : i32
    %c0_i32_2 = arith.constant 0 : i32
    return %arg0, %arg1, %c0_i32, %c0_i32_0, %c0_i32_1 : i32, i32, i32, i32, i32
  }
  func.func @transform_1(%arg0: i32, %arg1: i32) -> (i32, i32) {
    %c0_i32 = arith.constant 0 : i32
    %c0_i32_0 = arith.constant 0 : i32
    %c0_i32_1 = arith.constant 0 : i32
    return %c0_i32, %c0_i32_0 : i32, i32
  }
  func.func @transform_2(%arg0: i32, %arg1: i32) -> (i32, i32) {
    %c0_i32 = arith.constant 0 : i32
    %c0_i32_0 = arith.constant 0 : i32
    %c0_i32_1 = arith.constant 0 : i32
    return %c0_i32, %c0_i32_0 : i32, i32
  }
  func.func @transform_3(%arg0: i32, %arg1: i32) -> (i32, i32) {
    %c0_i32 = arith.constant 0 : i32
    %c0_i32_0 = arith.constant 0 : i32
    %c0_i32_1 = arith.constant 0 : i32
    return %c0_i32, %c0_i32_0 : i32, i32
  }
  func.func @transform_4(%arg0: i32, %arg1: i32) -> (i32, i32, i32, i32) {
    %c0_i32 = arith.constant 0 : i32
    %c0_i32_0 = arith.constant 0 : i32
    %c0_i32_1 = arith.constant 0 : i32
    return %arg0, %arg1, %c0_i32, %c0_i32_0 : i32, i32, i32, i32
  }
}

</mosaic_0001>

<bundles_post_ra>
// kernel: tpu_custom_call.1
= control target key start
LH: loop header
LB: loop body
LE: loop exit
PB: predicated region body
PF: predicated region fallthrough
CT: control target
= control target key end

     0   :  { %9 = vsyncpa [#allocation3], 0  ;;  %s5914_s0 = inlined_call_operand.vmem [shape: f32[2,2,10,18,72], index: 0, kind: input, shape index: {}]   ;;  %s5915_s1 = inlined_call_operand.vmem [shape: f32[27,64], index: 1, kind: input, shape index: {}]   ;;  %s5916_s2 = inlined_call_operand.vmem [shape: f32[64,128], index: 2, kind: input, shape index: {}]   ;;  %s5917_s3 = inlined_call_operand.vmem [shape: f32[1,128], index: 3, kind: input, shape index: {}]   ;;  %s5918_s4 = inlined_call_operand.hbm [shape: f32[2,2,128,128], index: 4, kind: output, shape index: {}]  }
   0x1   :  { %11 = vsyncpa [#allocation3 + $0x1], 0  ;;  %s3353_s15 = smov 0   ;;  %s3355_s16 = smov 0  }
   0x2   :  { %s3357_s17 = smov 0   ;;  %s3359_s18 = smov 0  }
   0x3   :  { %s3361_s19 = smov 0   ;;  %s3363_s20 = smov 0  }
   0x4   :  { %s3365_s21 = smov 0   ;;  %s3367_s22 = smov 0  }
   0x5 LB: > { %s2880_s23 = sadd.s32 4294967295, %s3320_s22   ;;  %s2881_s24 = sadd.s32 4294967294, %s3320_s22   ;;  %s3320_s22 = sphi %s3367_s22, %s17_s22   ;;  %s3316_s21 = sphi %s3365_s21, %s6414_s21   ;;  %s3312_s20 = sphi %s3363_s20, %s6413_s20   ;;  %s3308_s19 = sphi %s3361_s19, %s6412_s19   ;;  %s3304_s18 = sphi %s3359_s18, %s6411_s18   ;;  %s3300_s17 = sphi %s3357_s17, %s6410_s17   ;;  %s3296_s16 = sphi %s3355_s16, %s6409_s16   ;;  %s3292_s15 = sphi %s3353_s15, %s6408_s15  }
   0x6   : > { %s26_s25 = sadd.s32 1, %s3312_s20  ;;  %s29_s26 = sadd.s32 1, %s3316_s21 }
   0x7   : > { %p27_p0 = scmp.ge.s32.totalorder %s26_s25, 2  ;;  %p139_p1 = scmp.ne.s32.totalorder %s3300_s17, %s3296_s16 }
   0x8   : > { %p140_p2 = scmp.eq.s32.totalorder %s2880_s23, 3  ;;  %p145_p5 = scmp.ne.s32.totalorder %s3296_s16, %s3292_s15 }
   0x9   : > { %s6416_s25 = smov (%p27_p0, %s26_s25), 0  ;;  %s6418_s26 = smov (!%p27_p0, %s29_s26), %s3316_s21 }
   0xa   : > { %s125_s27 = ssub.s32 %s3312_s20, %s6416_s25  ;;  %p3404_p3 = por %p140_p2, %p139_p1 }
   0xb   : > { %p31_p4 = scmp.ge.s32.totalorder %s6418_s26, 2  ;;  %p146_p6 = scmp.eq.s32.totalorder %s2881_s24, 3 }
   0xc   : > { %p2884_p7 = scmp.ge.s32.totalorder %s3320_s22, 1  ;;  %p185_p9 = scmp.lt.s32.totalorder %s3320_s22, 5 }
   0xd   : > { %s6420_s26 = smov (%p31_p4, %s6418_s26), 0  ;;  %p3413_p8 = por %p146_p6, %p145_p5 }
   0xe   : > { %s124_s30 = ssub.s32 %s3316_s21, %s6420_s26  ;;  %s129_s5 = sadd.s32 1, %s3300_s17 }
   0xf   : > { %s126_s6 = sor.u32 %s125_s27, %s124_s30  ;;  %p186_p10 = pnand %p2884_p7, %p185_p9 }
  0x10   : > { %p127_p11 = scmp.eq.s32.totalorder %s126_s6, 0 }
  0x11   : > { %189 = sbr.rel (%p186_p10) target bundleno = 1302 (0x516), region = 36 }
  0x12   : > { %s3422_s7 = scalar_select %p127_p11, %s3300_s17, %s129_s5  }
  0x18   : > { %v244_v0 = vlaneseq  ;;  %p215_p12 = scmp.lt.s32.totalorder %s3308_s19, 1  ;;  %p217_p13 = scmp.lt.s32.totalorder %s3304_s18, 1  ;;  %v3431_v2 = vld [vmem:[%s5915_s1] sm:$0xff]  ;;  %vm2569_vm0 = vcmask 523264  }
  0x19   : > { %s3322_s14 = smov 4   ;;  %s3323_s6 = smov 8  }
  0x1a   : > { %v3426_v1 = vshrl.u32 %v244_v0, 7  ;;  %s216_s10 = scalar_select %p215_p12, %s3308_s19, 1 }
  0x1b   : > { %s218_s11 = scalar_select %p217_p13, %s3304_s18, 1 }
  0x1c   : > { %v3435_v3 = vsub.s32 1, %v3426_v1  ;;  %v3438_v4 = vsub.s32 3, %v3426_v1  ;;  %v3441_v5 = vsub.s32 2, %v3426_v1  ;;  %s3095_s12 = smul.u32 60, %s216_s10  ;;  %v3534_v40 = vsub.s32 5, %v3426_v1  ;;  %s3324_s8 = smov 120  }
  0x1d   : > { %s3094_s13 = smul.u32 30, %s218_s11  ;;  %v3539_v42 = vsub.s32 4, %v3426_v1  ;;  %s3325_s9 = smov 124  }
  0x1e   : > { %v267_v6 = vrot.slane %v3431_v2, %v3435_v3  ;;  %v411_v7 = vrot.slane %v3431_v2, %v3438_v4  ;;  %v291_v8 = vrot.slane %v3431_v2, %v3441_v5  ;;  %v615_v43 = vrot.slane %v3431_v2, %v3534_v40  ;;  %s3001_s30 = sshll.u32 %s3304_s18, 4  ;;  %s3002_s10 = sshll.u32 %s3308_s19, 5 }
  0x1f   : > { %s221_s23 = sadd.s32 %s3095_s12, %s3094_s13  ;;  %v511_v44 = vrot.slane %v3431_v2, %v3539_v42  ;;  %s2792_s11 = sadd.s32 %s3002_s10, %s3001_s30 }
  0x20   : > { %269 = vrot.lane.b32.xlu0 %v267_v6, %s3322_s14  ;;  %s2886_s24 = sshll.u32 %s221_s23, 3  ;;  %s3003_s13 = sshll.u32 %s2792_s11, 7 }
  0x21   : > { %s3454_s5 = scalar_lea.vmem %s5914_s0, %s2886_s24  ;;  %s5853_s23 = scalar_lea.hbm %s5918_s4, %s3003_s13 }
  0x22   : > { %v3457_v9 = vld [vmem:[%s3454_s5 + $0x9] sm:$0xff]  ;;  %v3460_v10 = vld [vmem:[%s3454_s5 + $0x21] sm:$0xff]  ;;  %v3469_v14 = vld [vmem:[%s3454_s5 + $0x19] sm:$0xff] }
  0x23   : > { %v3463_v11 = vld [vmem:[%s3454_s5 + $0x1] sm:$0xff]  ;;  %v413_v12 = vmul.f32 %v411_v7, %v3457_v9  ;;  %v415_v15 = vmul.f32 %v411_v7, %v3460_v10  ;;  %v3474_v16 = vld [vmem:[%s3454_s5 + $0x39] sm:$0xff]  ;;  %v414_v17 = vmul.f32 %v411_v7, %v3469_v14  ;;  %v3479_v18 = vld [vmem:[%s3454_s5 + $0x31] sm:$0xff] }
  0x24   : > { %293 = vrot.lane.b32.xlu0 %v291_v8, %s3323_s6  ;;  %v412_v13 = vmul.f32 %v411_v7, %v3463_v11  ;;  %v417_v19 = vmul.f32 %v411_v7, %v3474_v16  ;;  %v3484_v20 = vld [vmem:[%s3454_s5 + $0x51] sm:$0xff]  ;;  %v416_v21 = vmul.f32 %v411_v7, %v3479_v18  ;;  %v3489_v22 = vld [vmem:[%s3454_s5 + $0x49] sm:$0xff]  ;;  %v3499_v26 = vld [vmem:[%s3454_s5 + $0x61] sm:$0xff] }
  0x25   : > { %446 = vrot.lane.b32.xlu1 %v413_v12, %s3322_s14  ;;  %v419_v23 = vmul.f32 %v411_v7, %v3484_v20  ;;  %v3494_v24 = vld [vmem:[%s3454_s5 + $0x69] sm:$0xff]  ;;  %v418_v25 = vmul.f32 %v411_v7, %v3489_v22  ;;  %v3504_v28 = vld [vmem:[%s3454_s5 + $0x81] sm:$0xff]  ;;  %v420_v29 = vmul.f32 %v411_v7, %v3499_v26  ;;  %v3509_v30 = vld [vmem:[%s3454_s5 + $0x79] sm:$0xff] }
  0x26   : > { %v421_v27 = vmul.f32 %v411_v7, %v3494_v24  ;;  %v423_v31 = vmul.f32 %v411_v7, %v3504_v28  ;;  %v3514_v32 = vld [vmem:[%s3454_s5 + $0x99] sm:$0xff]  ;;  %v422_v33 = vmul.f32 %v411_v7, %v3509_v30  ;;  %v3519_v34 = vld [vmem:[%s3454_s5 + $0x91] sm:$0xff]  ;;  %v3529_v38 = vld [vmem:[%s3454_s5 + $0xa9] sm:$0xff] }
  0x27   : > { %v425_v35 = vmul.f32 %v411_v7, %v3514_v32  ;;  %v3524_v36 = vld [vmem:[%s3454_s5 + $0xb1] sm:$0xff]  ;;  %v424_v37 = vmul.f32 %v411_v7, %v3519_v34  ;;  %v426_v41 = vmul.f32 %v411_v7, %v3529_v38  ;;  %v228_v48 = vld [vmem:[%s3454_s5] sm:$0xff]  ;;  %v229_v51 = vld [vmem:[%s3454_s5 + $0x8] sm:$0xff] }
  0x28   : > { %444 = vrot.lane.b32.xlu0 %v412_v13, %s3322_s14  ;;  %v427_v39 = vmul.f32 %v411_v7, %v3524_v36  ;;  %v3552_v47 = vld [vmem:[%s3454_s5 + $0x18] sm:$0xff]  ;;  %v3562_v53 = vld [vmem:[%s3454_s5 + $0x30] sm:$0xff]  ;;  %v3568_v56 = vld [vmem:[%s3454_s5 + $0x20] sm:$0xff] }
  0x29   : > { %450 = vrot.lane.b32.xlu1 %v415_v15, %s3322_s14  ;;  %v3573_v58 = vld [vmem:[%s3454_s5 + $0x48] sm:$0xff]  ;;  %v3580_v61 = vld [vmem:[%s3454_s5 + $0x38] sm:$0xff]  ;;  %v3585_v63 = vld [vmem:[%s3454_s5 + $0x60] sm:$0xff] }
  0x2a   : > { %v3592_v7 = vld [vmem:[%s3454_s5 + $0x50] sm:$0xff]  ;;  %v3597_v12 = vld [vmem:[%s3454_s5 + $0x78] sm:$0xff] }
  0x2c   : > { %448 = vrot.lane.b32.xlu0 %v414_v17, %s3322_s14 }
  0x2d   : > { %454 = vrot.lane.b32.xlu1 %v417_v19, %s3322_s14  ;;  %v3606_v19 = vld [vmem:[%s3454_s5 + $0x68] sm:$0xff] }
  0x30   : > { %452 = vrot.lane.b32.xlu0 %v416_v21, %s3322_s14 }
  0x31   : > { %458 = vrot.lane.b32.xlu1 %v419_v23, %s3322_s14  ;;  %v3611_v23 = vld [vmem:[%s3454_s5 + $0x90] sm:$0xff] }
  0x34   : > { %456 = vrot.lane.b32.xlu0 %v418_v25, %s3322_s14 }
  0x35   : > { %462 = vrot.lane.b32.xlu1 %v421_v27, %s3322_s14 }
  0x38   : > { %460 = vrot.lane.b32.xlu0 %v420_v29, %s3322_s14 }
  0x39   : > { %466 = vrot.lane.b32.xlu1 %v423_v31, %s3322_s14  ;;  %v3620_v31 = vld [vmem:[%s3454_s5 + $0x80] sm:$0xff] }
  0x3c   : > { %464 = vrot.lane.b32.xlu0 %v422_v33, %s3322_s14 }
  0x3d   : > { %470 = vrot.lane.b32.xlu1 %v425_v35, %s3322_s14  ;;  %v3625_v35 = vld [vmem:[%s3454_s5 + $0xa8] sm:$0xff] }
  0x40   : > { %468 = vrot.lane.b32.xlu0 %v424_v37, %s3322_s14 }
  0x41   : > { %474 = vrot.lane.b32.xlu1 %v427_v39, %s3322_s14 }
  0x44   : > { %472 = vrot.lane.b32.xlu0 %v426_v41, %s3322_s14  ;;  %v3632_v41 = vld [vmem:[%s3454_s5 + $0x98] sm:$0xff] }
  0x45   : > { %617 = vrot.lane.b32.xlu1 %v615_v43, %s3323_s6 }
  0x48   : > { %513 = vrot.lane.b32.xlu0 %v511_v44, %s3322_s14 }
  0x92   : > { %v3549_v45 = vpop.permute.xlu0 %269 }
  0x93   : > { %5984 = vst [vmem:[#allocation5_spill] sm:$0xff] %v3549_v45 }
  0x96   : > { %v294_v46 = vpop.permute.xlu0 %293 }
  0x97   : > { %v298_v49 = vmul.f32 %v294_v46, %v3552_v47  ;;  %v296_v50 = vmul.f32 %v294_v46, %v228_v48  ;;  %v300_v54 = vmul.f32 %v294_v46, %v3562_v53  ;;  %v297_v55 = vmul.f32 %v294_v46, %v229_v51  ;;  %v3601_v17 = vpop.permute.xlu1 %446 }
  0x98   : > { %v302_v59 = vmul.f32 %v294_v46, %v3573_v58  ;;  %v299_v60 = vmul.f32 %v294_v46, %v3568_v56  ;;  %v304_v0 = vmul.f32 %v294_v46, %v3585_v63  ;;  %v301_v6 = vmul.f32 %v294_v46, %v3580_v61  ;;  %5989 = vst [vmem:[#allocation10_spill] sm:$0xff] %v3601_v17 }
  0x99   : > { %332 = vrot.lane.b32.xlu0 %v298_v49, %s3324_s8  ;;  %328 = vrot.lane.b32.xlu1 %v296_v50, %s3324_s8  ;;  %v306_v13 = vmul.f32 %v294_v46, %v3597_v12  ;;  %v303_v15 = vmul.f32 %v294_v46, %v3592_v7  ;;  %v308_v25 = vmul.f32 %v294_v46, %v3611_v23  ;;  %v3641_v49 = vld [vmem:[%s3454_s5 + $0xb0] sm:$0xff] }
  0x9a   : > { %v3559_v52 = vpop.permute.xlu0 %444  ;;  %v305_v27 = vmul.f32 %v294_v46, %v3606_v19  ;;  %v310_v37 = vmul.f32 %v294_v46, %v3625_v35  ;;  %v307_v39 = vmul.f32 %v294_v46, %v3620_v31  ;;  %v309_v44 = vmul.f32 %v294_v46, %v3632_v41 }
  0x9b   : > { %5985 = vst [vmem:[#allocation6_spill] sm:$0xff] %v3559_v52  ;;  %v3617_v29 = vpop.permute.xlu1 %450  ;;  %v311_v51 = vmul.f32 %v294_v46, %v3641_v49 }
  0x9c   : > { %5991 = vst [vmem:[#allocation12_spill] sm:$0xff] %v3617_v29 }
  0x9d   : > { %336 = vrot.lane.b32.xlu0 %v300_v54, %s3324_s8  ;;  %330 = vrot.lane.b32.xlu1 %v297_v55, %s3324_s8 }
  0x9e   : > { %v3570_v57 = vpop.permute.xlu0 %448 }
  0x9f   : > { %5986 = vst [vmem:[#allocation7_spill] sm:$0xff] %v3570_v57  ;;  %v3637_v48 = vpop.permute.xlu1 %454 }
  0xa0   : > { %5994 = vst [vmem:[#allocation15_spill] sm:$0xff] %v3637_v48 }
  0xa1   : > { %340 = vrot.lane.b32.xlu0 %v302_v59, %s3324_s8  ;;  %334 = vrot.lane.b32.xlu1 %v299_v60, %s3324_s8 }
  0xa2   : > { %v3582_v62 = vpop.permute.xlu0 %452 }
  0xa3   : > { %5987 = vst [vmem:[#allocation8_spill] sm:$0xff] %v3582_v62  ;;  %v3647_v54 = vpop.permute.xlu1 %458 }
  0xa4   : > { %5996 = vst [vmem:[#allocation17_spill] sm:$0xff] %v3647_v54 }
  0xa5   : > { %344 = vrot.lane.b32.xlu0 %v304_v0, %s3324_s8  ;;  %338 = vrot.lane.b32.xlu1 %v301_v6, %s3324_s8 }
  0xa6   : > { %v3594_v8 = vpop.permute.xlu0 %456 }
  0xa7   : > { %5988 = vst [vmem:[#allocation9_spill] sm:$0xff] %v3594_v8 }
  0xa9   : > { %348 = vrot.lane.b32.xlu0 %v306_v13, %s3324_s8  ;;  %342 = vrot.lane.b32.xlu1 %v303_v15, %s3324_s8  ;;  %v3655_v13 = vpop.permute.xlu1 %462 }
  0xaa   : > { %v3608_v21 = vpop.permute.xlu0 %460  ;;  %5997 = vst [vmem:[#allocation18_spill] sm:$0xff] %v3655_v13 }
  0xab   : > { %5990 = vst [vmem:[#allocation11_spill] sm:$0xff] %v3608_v21 }
  0xad   : > { %352 = vrot.lane.b32.xlu0 %v308_v25, %s3324_s8  ;;  %346 = vrot.lane.b32.xlu1 %v305_v27, %s3324_s8  ;;  %v3663_v25 = vpop.permute.xlu1 %466 }
  0xae   : > { %v3622_v33 = vpop.permute.xlu0 %464  ;;  %5998 = vst [vmem:[#allocation19_spill] sm:$0xff] %v3663_v25 }
  0xaf   : > { %5992 = vst [vmem:[#allocation13_spill] sm:$0xff] %v3622_v33 }
  0xb1   : > { %356 = vrot.lane.b32.xlu0 %v310_v37, %s3324_s8  ;;  %350 = vrot.lane.b32.xlu1 %v307_v39, %s3324_s8 }
  0xb2   : > { %v3634_v43 = vpop.permute.xlu0 %468 }
  0xb3   : > { %5993 = vst [vmem:[#allocation14_spill] sm:$0xff] %v3634_v43 }
  0xb5   : > { %354 = vrot.lane.b32.xlu1 %v309_v44, %s3324_s8 }
  0xb6   : > { %v3643_v50 = vpop.permute.xlu0 %472 }
  0xb7   : > { %5995 = vst [vmem:[#allocation16_spill] sm:$0xff] %v3643_v50 }
  0xb9   : > { %358 = vrot.lane.b32.xlu1 %v311_v51, %s3324_s8  ;;  %v3671_v51 = vpop.permute.xlu1 %470 }
  0xba   : > { %v514_v55 = vpop.permute.xlu0 %513  ;;  %5999 = vst [vmem:[#allocation20_spill] sm:$0xff] %v3671_v51 }
  0xbb   : > { %v517_v59 = vmul.f32 %v514_v55, %v3457_v9  ;;  %v516_v60 = vmul.f32 %v514_v55, %v3463_v11  ;;  %v519_v0 = vmul.f32 %v514_v55, %v3460_v10  ;;  %v518_v6 = vmul.f32 %v514_v55, %v3469_v14 }
  0xbc   : > { %v521_v46 = vmul.f32 %v514_v55, %v3474_v16  ;;  %v520_v15 = vmul.f32 %v514_v55, %v3479_v18  ;;  %v523_v27 = vmul.f32 %v514_v55, %v3484_v20  ;;  %v522_v37 = vmul.f32 %v514_v55, %v3489_v22 }
  0xbd   : > { %550 = vrot.lane.b32.xlu0 %v517_v59, %s3325_s9  ;;  %548 = vrot.lane.b32.xlu1 %v516_v60, %s3325_s9  ;;  %v525_v39 = vmul.f32 %v514_v55, %v3494_v24  ;;  %v524_v44 = vmul.f32 %v514_v55, %v3499_v26  ;;  %v527_v59 = vmul.f32 %v514_v55, %v3504_v28 }
  0xbe   : > { %v526_v60 = vmul.f32 %v514_v55, %v3509_v30 }
  0xc1   : > { %554 = vrot.lane.b32.xlu0 %v519_v0, %s3325_s9  ;;  %552 = vrot.lane.b32.xlu1 %v518_v6, %s3325_s9  ;;  %v3679_v0 = vpop.permute.xlu1 %474  ;;  %v529_v6 = vmul.f32 %v514_v55, %v3514_v32 }
  0xc2   : > { %6000 = vst [vmem:[#allocation21_spill] sm:$0xff] %v3679_v0 }
  0xc5   : > { %558 = vrot.lane.b32.xlu0 %v521_v46, %s3325_s9  ;;  %556 = vrot.lane.b32.xlu1 %v520_v15, %s3325_s9  ;;  %v528_v46 = vmul.f32 %v514_v55, %v3519_v34  ;;  %v618_v15 = vpop.permute.xlu1 %617 }
  0xc9   : > { %562 = vrot.lane.b32.xlu0 %v523_v27, %s3325_s9  ;;  %560 = vrot.lane.b32.xlu1 %v522_v37, %s3325_s9  ;;  %v531_v27 = vmul.f32 %v514_v55, %v3524_v36  ;;  %v530_v37 = vmul.f32 %v514_v55, %v3529_v38  ;;  %v624_v55 = vmul.f32 %v618_v15, %v3479_v18 }
  0xca   : > { %v631_v18 = vmul.f32 %v618_v15, %v3504_v28  ;;  %v3726_v28 = vld [vmem:[%s5915_s1 + $0x8] sm:$0xff] }
  0xcd   : > { %566 = vrot.lane.b32.xlu0 %v525_v39, %s3325_s9  ;;  %564 = vrot.lane.b32.xlu1 %v524_v44, %s3325_s9  ;;  %v620_v39 = vmul.f32 %v618_v15, %v3463_v11  ;;  %v621_v44 = vmul.f32 %v618_v15, %v3457_v9  ;;  %v626_v9 = vmul.f32 %v618_v15, %v3489_v22 }
  0xce   : > { %v627_v11 = vmul.f32 %v618_v15, %v3484_v20  ;;  %v632_v20 = vmul.f32 %v618_v15, %v3519_v34  ;;  %v633_v22 = vmul.f32 %v618_v15, %v3514_v32  ;;  %v635_v34 = vmul.f32 %v618_v15, %v3524_v36 }
  0xd1   : > { %570 = vrot.lane.b32.xlu0 %v527_v59, %s3325_s9  ;;  %568 = vrot.lane.b32.xlu1 %v526_v60, %s3325_s9  ;;  %v622_v59 = vmul.f32 %v618_v15, %v3469_v14  ;;  %v623_v60 = vmul.f32 %v618_v15, %v3460_v10  ;;  %v628_v10 = vmul.f32 %v618_v15, %v3499_v26  ;;  %v3721_v26 = vsub.s32 0, %v3426_v1 }
  0xd2   : > { %v629_v14 = vmul.f32 %v618_v15, %v3494_v24  ;;  %v3718_v24 = vsub.s32 7, %v3426_v1 }
  0xd3   : > { %6001 = vst [vmem:[#allocation22_spill] sm:$0xff] %v3721_v26 }
  0xd4   : > { %v771_v32 = vrot.slane %v3431_v2, %v3718_v24 }
  0xd5   : > { %574 = vrot.lane.b32.xlu0 %v529_v6, %s3325_s9  ;;  %572 = vrot.lane.b32.xlu1 %v528_v46, %s3325_s9  ;;  %v625_v6 = vmul.f32 %v618_v15, %v3474_v16  ;;  %v630_v16 = vmul.f32 %v618_v15, %v3509_v30  ;;  %v634_v30 = vmul.f32 %v618_v15, %v3529_v38 }
  0xd6   : > { %v811_v46 = vrot.slane %v3726_v28, %v3721_v26 }
  0xd9   : > { %578 = vrot.lane.b32.xlu0 %v531_v27, %s3325_s9  ;;  %576 = vrot.lane.b32.xlu1 %v530_v37, %s3325_s9 }
  0xdd   : > { %652 = vrot.lane.b32.xlu0 %v620_v39, %s3325_s9  ;;  %654 = vrot.lane.b32.xlu1 %v621_v44, %s3325_s9 }
  0xe1   : > { %656 = vrot.lane.b32.xlu0 %v622_v59, %s3325_s9  ;;  %658 = vrot.lane.b32.xlu1 %v623_v60, %s3325_s9 }
  0xe5   : > { %660 = vrot.lane.b32.xlu0 %v624_v55, %s3325_s9  ;;  %662 = vrot.lane.b32.xlu1 %v625_v6, %s3325_s9 }
  0xe9   : > { %664 = vrot.lane.b32.xlu0 %v626_v9, %s3325_s9  ;;  %666 = vrot.lane.b32.xlu1 %v627_v11, %s3325_s9 }
  0xed   : > { %668 = vrot.lane.b32.xlu0 %v628_v10, %s3325_s9  ;;  %670 = vrot.lane.b32.xlu1 %v629_v14, %s3325_s9 }
  0xf1   : > { %672 = vrot.lane.b32.xlu0 %v630_v16, %s3325_s9  ;;  %674 = vrot.lane.b32.xlu1 %v631_v18, %s3325_s9 }
  0xf5   : > { %676 = vrot.lane.b32.xlu0 %v632_v20, %s3325_s9  ;;  %678 = vrot.lane.b32.xlu1 %v633_v22, %s3325_s9  ;;  %v3760_v22 = vrot.slane %v3431_v2, %v3721_v26 }
  0xf7   : > { %6012 = vst [vmem:[#allocation33_spill] sm:$0xff] %v3760_v22 }
  0xf9   : > { %680 = vrot.lane.b32.xlu0 %v634_v30, %s3325_s9  ;;  %682 = vrot.lane.b32.xlu1 %v635_v34, %s3325_s9  ;;  %v3763_v30 = vsub.s32 6, %v3426_v1  ;;  %v252_v34 = vmul.f32 %v3760_v22, %v3562_v53  ;;  %v254_v1 = vmul.f32 %v3760_v22, %v3573_v58 }
  0xfd   : > { %773 = vrot.lane.b32.xlu0 %v771_v32, %s3322_s14  ;;  %813 = vrot.lane.b32.xlu1 %v811_v46, %s3323_s6  ;;  %v253_v32 = vmul.f32 %v3760_v22, %v3580_v61 }
 0x10b   : > { %v3738_v27 = vpop.permute.xlu0 %332  ;;  %v3740_v37 = vpop.permute.xlu1 %328 }
 0x10c   : > { %6002 = vst [vmem:[#allocation23_spill] sm:$0xff] %v3738_v27  ;;  %6003 = vst [vmem:[#allocation24_spill] sm:$0xff] %v3740_v37 }
 0x10f   : > { %v337_v38 = vpop.permute.xlu0 %336  ;;  %v3742_v36 = vpop.permute.xlu1 %330 }
 0x110   : > { %6004 = vst [vmem:[#allocation25_spill] sm:$0xff] %v3742_v36  ;;  %v3788_v36 = vld [vmem:[%s3454_s5 + $0x52] sm:$0xff] }
 0x113   : > { %v341_v15 = vpop.permute.xlu0 %340  ;;  %v3744_v39 = vpop.permute.xlu1 %334 }
 0x114   : > { %6005 = vst [vmem:[#allocation26_spill] sm:$0xff] %v3744_v39 }
 0x117   : > { %v339_v44 = vpop.permute.xlu1 %338  ;;  %v3746_v59 = vpop.permute.xlu0 %344 }
 0x118   : > { %6006 = vst [vmem:[#allocation27_spill] sm:$0xff] %v3746_v59  ;;  %v380_v59 = vadd.f32 %v337_v38, %v252_v34  ;;  %v381_v39 = vadd.f32 %v339_v44, %v253_v32  ;;  %v382_v44 = vadd.f32 %v341_v15, %v254_v1  ;;  %v3832_v1 = vld [vmem:[%s3454_s5 + $0xb2] sm:$0xff] }
 0x11b   : > { %v343_v60 = vpop.permute.xlu1 %342  ;;  %v3748_v55 = vpop.permute.xlu0 %348 }
 0x11c   : > { %6007 = vst [vmem:[#allocation28_spill] sm:$0xff] %v3748_v55 }
 0x11f   : > { %v3750_v6 = vpop.permute.xlu1 %346  ;;  %v353_v11 = vpop.permute.xlu0 %352 }
 0x120   : > { %6008 = vst [vmem:[#allocation29_spill] sm:$0xff] %v3750_v6  ;;  %v255_v6 = vmul.f32 %v3760_v22, %v3592_v7 }
 0x122   : > { %v383_v34 = vadd.f32 %v343_v60, %v255_v6  ;;  %v263_v60 = vmul.f32 %v3760_v22, %v3641_v49 }
 0x123   : > { %v3752_v9 = vpop.permute.xlu1 %350  ;;  %v357_v14 = vpop.permute.xlu0 %356 }
 0x124   : > { %6009 = vst [vmem:[#allocation30_spill] sm:$0xff] %v3752_v9  ;;  %v3781_v9 = vrot.slane %v3431_v2, %v3763_v30 }
 0x126   : > { %6015 = vst [vmem:[#allocation36_spill] sm:$0xff] %v3781_v9  ;;  %v743_v43 = vmul.f32 %v3781_v9, %v3788_v36 }
 0x127   : > { %v355_v10 = vpop.permute.xlu1 %354 }
 0x12b   : > { %v359_v16 = vpop.permute.xlu1 %358 }
 0x12f   : > { %v3754_v18 = vpop.permute.xlu0 %550  ;;  %v3756_v20 = vpop.permute.xlu1 %548 }
 0x130   : > { %6010 = vst [vmem:[#allocation31_spill] sm:$0xff] %v3754_v18  ;;  %6011 = vst [vmem:[#allocation32_spill] sm:$0xff] %v3756_v20  ;;  %v3774_v18 = vld [vmem:[%s3454_s5 + $0x3a] sm:$0xff]  ;;  %v3777_v20 = vld [vmem:[%s3454_s5 + $0x32] sm:$0xff] }
 0x131   : > { %v740_v37 = vmul.f32 %v3781_v9, %v3777_v20 }
 0x133   : > { %v3769_v46 = vpop.permute.xlu0 %554  ;;  %v3771_v55 = vpop.permute.xlu1 %552 }
 0x134   : > { %6013 = vst [vmem:[#allocation34_spill] sm:$0xff] %v3769_v46  ;;  %6014 = vst [vmem:[#allocation35_spill] sm:$0xff] %v3771_v55  ;;  %v3791_v46 = vld [vmem:[%s3454_s5 + $0x4a] sm:$0xff]  ;;  %v741_v55 = vmul.f32 %v3781_v9, %v3774_v18 }
 0x135   : > { %v742_v38 = vmul.f32 %v3781_v9, %v3791_v46 }
 0x137   : > { %v559_v2 = vpop.permute.xlu0 %558  ;;  %v557_v27 = vpop.permute.xlu1 %556 }
 0x138   : > { %v601_v50 = vadd.f32 %v559_v2, %v381_v39  ;;  %v600_v0 = vadd.f32 %v557_v27, %v380_v59 }
 0x13a   : > { %v3801_v32 = vadd.f32 %v741_v55, %v601_v50  ;;  %v3803_v33 = vadd.f32 %v740_v37, %v600_v0  ;;  %v260_v50 = vmul.f32 %v3760_v22, %v3611_v23  ;;  %v261_v0 = vmul.f32 %v3760_v22, %v3632_v41 }
 0x13b   : > { %v563_v51 = vpop.permute.xlu0 %562  ;;  %v561_v21 = vpop.permute.xlu1 %560 }
 0x13c   : > { %v603_v25 = vadd.f32 %v563_v51, %v383_v34  ;;  %v602_v39 = vadd.f32 %v561_v21, %v382_v44  ;;  %v3822_v21 = vld [vmem:[%s3454_s5 + $0x9a] sm:$0xff]  ;;  %v388_v55 = vadd.f32 %v353_v11, %v260_v50  ;;  %v389_v6 = vadd.f32 %v355_v10, %v261_v0 }
 0x13d   : > { %v749_v44 = vmul.f32 %v3781_v9, %v3822_v21  ;;  %v391_v50 = vadd.f32 %v359_v16, %v263_v60 }
 0x13e   : > { %v3805_v27 = vadd.f32 %v743_v43, %v603_v25  ;;  %v3807_v59 = vadd.f32 %v742_v38, %v602_v39  ;;  %v3825_v43 = vld [vmem:[%s3454_s5 + $0x92] sm:$0xff]  ;;  %v262_v25 = vmul.f32 %v3760_v22, %v3625_v35  ;;  %v3835_v38 = vld [vmem:[%s3454_s5 + $0xaa] sm:$0xff] }
 0x13f   : > { %v3809_v2 = vpop.permute.xlu0 %566  ;;  %v3811_v15 = vpop.permute.xlu1 %564  ;;  %v748_v34 = vmul.f32 %v3781_v9, %v3825_v43  ;;  %v750_v11 = vmul.f32 %v3781_v9, %v3835_v38 }
 0x140   : > { %6016 = vst [vmem:[#allocation37_spill] sm:$0xff] %v3809_v2  ;;  %6017 = vst [vmem:[#allocation38_spill] sm:$0xff] %v3811_v15  ;;  %v751_v2 = vmul.f32 %v3781_v9, %v3832_v1  ;;  %v390_v10 = vadd.f32 %v357_v14, %v262_v25  ;;  %v3973_v9 = vld [vmem:[%s3454_s5 + $0xc8] sm:$0xff] }
 0x143   : > { %v3817_v37 = vpop.permute.xlu0 %570  ;;  %v3819_v51 = vpop.permute.xlu1 %568 }
 0x144   : > { %6018 = vst [vmem:[#allocation39_spill] sm:$0xff] %v3817_v37  ;;  %6019 = vst [vmem:[#allocation40_spill] sm:$0xff] %v3819_v51 }
 0x147   : > { %v575_v39 = vpop.permute.xlu0 %574  ;;  %v573_v51 = vpop.permute.xlu1 %572 }
 0x148   : > { %v609_v37 = vadd.f32 %v575_v39, %v389_v6  ;;  %v608_v15 = vadd.f32 %v573_v51, %v388_v55  ;;  %v3883_v39 = vld [vmem:[%s3454_s5 + $0x1a] sm:$0xff] }
 0x14a   : > { %v3845_v0 = vadd.f32 %v749_v44, %v609_v37  ;;  %v3847_v8 = vadd.f32 %v748_v34, %v608_v15  ;;  %v3880_v34 = vld [vmem:[%s3454_s5 + $0x22] sm:$0xff] }
 0x14b   : > { %v579_v13 = vpop.permute.xlu0 %578  ;;  %v577_v62 = vpop.permute.xlu1 %576 }
 0x14c   : > { %v611_v54 = vadd.f32 %v579_v13, %v391_v50  ;;  %v610_v48 = vadd.f32 %v577_v62, %v390_v10 }
 0x14e   : > { %v3849_v6 = vadd.f32 %v751_v2, %v611_v54  ;;  %v3851_v51 = vadd.f32 %v750_v11, %v610_v48  ;;  %v3870_v54 = vld [vmem:[%s3454_s5 + $0xa] sm:$0xff]  ;;  %v3873_v2 = vld [vmem:[%s3454_s5 + $0x2] sm:$0xff] }
 0x14f   : > { %v3853_v55 = vpop.permute.xlu1 %654  ;;  %6028 = vst [vmem:[#allocation49_spill] sm:$0xff] %v3870_v54  ;;  %6029 = vst [vmem:[#allocation50_spill] sm:$0xff] %v3873_v2 }
 0x150   : > { %6020 = vst [vmem:[#allocation41_spill] sm:$0xff] %v3853_v55 }
 0x153   : > { %v3855_v14 = vpop.permute.xlu1 %658 }
 0x154   : > { %6021 = vst [vmem:[#allocation42_spill] sm:$0xff] %v3855_v14 }
 0x157   : > { %v3857_v16 = vpop.permute.xlu1 %662 }
 0x158   : > { %6022 = vst [vmem:[#allocation43_spill] sm:$0xff] %v3857_v16 }
 0x15b   : > { %v3859_v15 = vpop.permute.xlu1 %666 }
 0x15c   : > { %6023 = vst [vmem:[#allocation44_spill] sm:$0xff] %v3859_v15 }
 0x15f   : > { %v3861_v37 = vpop.permute.xlu1 %670 }
 0x160   : > { %6024 = vst [vmem:[#allocation45_spill] sm:$0xff] %v3861_v37  ;;  %v3966_v37 = vld [vmem:[%s3454_s5 + $0xc0] sm:$0xff] }
 0x163   : > { %v3863_v25 = vpop.permute.xlu1 %674 }
 0x164   : > { %6025 = vst [vmem:[#allocation46_spill] sm:$0xff] %v3863_v25 }
 0x167   : > { %v3865_v13 = vpop.permute.xlu1 %678 }
 0x168   : > { %6026 = vst [vmem:[#allocation47_spill] sm:$0xff] %v3865_v13 }
 0x16b   : > { %v3867_v62 = vpop.permute.xlu1 %682 }
 0x16c   : > { %6027 = vst [vmem:[#allocation48_spill] sm:$0xff] %v3867_v62 }
 0x16f   : > { %v814_v48 = vpop.permute.xlu1 %813 }
 0x170   : > { %v817_v60 = vmul.f32 %v814_v48, %v3870_v54  ;;  %v816_v44 = vmul.f32 %v814_v48, %v3873_v2  ;;  %v819_v11 = vmul.f32 %v814_v48, %v3880_v34  ;;  %v818_v10 = vmul.f32 %v814_v48, %v3883_v39 }
 0x171   : > { %v821_v50 = vmul.f32 %v814_v48, %v3774_v18  ;;  %v822_v62 = vmul.f32 %v814_v48, %v3791_v46  ;;  %v829_v15 = vmul.f32 %v814_v48, %v3822_v21  ;;  %v828_v16 = vmul.f32 %v814_v48, %v3825_v43 }
 0x172   : > { %850 = vrot.lane.b32.xlu1 %v817_v60, %s3324_s8  ;;  %848 = vrot.lane.b32.xlu0 %v816_v44, %s3324_s8  ;;  %v820_v60 = vmul.f32 %v814_v48, %v3777_v20  ;;  %v823_v44 = vmul.f32 %v814_v48, %v3788_v36  ;;  %v830_v14 = vmul.f32 %v814_v48, %v3835_v38 }
 0x176   : > { %854 = vrot.lane.b32.xlu1 %v819_v11, %s3324_s8  ;;  %852 = vrot.lane.b32.xlu0 %v818_v10, %s3324_s8  ;;  %v3898_v11 = vld [vmem:[%s3454_s5 + $0x6a] sm:$0xff]  ;;  %v3901_v10 = vld [vmem:[%s3454_s5 + $0x62] sm:$0xff] }
 0x177   : > { %6030 = vst [vmem:[#allocation51_spill] sm:$0xff] %v3898_v11  ;;  %6031 = vst [vmem:[#allocation52_spill] sm:$0xff] %v3901_v10  ;;  %v825_v13 = vmul.f32 %v814_v48, %v3898_v11  ;;  %v824_v25 = vmul.f32 %v814_v48, %v3901_v10 }
 0x17a   : > { %858 = vrot.lane.b32.xlu1 %v821_v50, %s3324_s8  ;;  %856 = vrot.lane.b32.xlu0 %v820_v60, %s3324_s8  ;;  %v3908_v50 = vld [vmem:[%s3454_s5 + $0x82] sm:$0xff]  ;;  %v3911_v60 = vld [vmem:[%s3454_s5 + $0x7a] sm:$0xff] }
 0x17e   : > { %862 = vrot.lane.b32.xlu1 %v823_v44, %s3324_s8  ;;  %860 = vrot.lane.b32.xlu0 %v822_v62, %s3324_s8  ;;  %v827_v44 = vmul.f32 %v814_v48, %v3908_v50  ;;  %v826_v62 = vmul.f32 %v814_v48, %v3911_v60 }
 0x182   : > { %866 = vrot.lane.b32.xlu1 %v825_v13, %s3324_s8  ;;  %864 = vrot.lane.b32.xlu0 %v824_v25, %s3324_s8  ;;  %v932_v13 = vrot.slane %v3726_v28, %v3435_v3  ;;  %v831_v25 = vmul.f32 %v814_v48, %v3832_v1 }
 0x184   : > { %v938_v48 = vmul.f32 %v932_v13, %v3592_v7 }
 0x186   : > { %870 = vrot.lane.b32.xlu1 %v827_v44, %s3324_s8  ;;  %868 = vrot.lane.b32.xlu0 %v826_v62, %s3324_s8  ;;  %v934_v44 = vmul.f32 %v932_v13, %v3568_v56  ;;  %v933_v62 = vmul.f32 %v932_v13, %v3552_v47 }
 0x18a   : > { %874 = vrot.lane.b32.xlu1 %v829_v15, %s3324_s8  ;;  %872 = vrot.lane.b32.xlu0 %v828_v16, %s3324_s8  ;;  %v936_v15 = vmul.f32 %v932_v13, %v3580_v61  ;;  %v935_v16 = vmul.f32 %v932_v13, %v3562_v53 }
 0x18e   : > { %878 = vrot.lane.b32.xlu1 %v831_v25, %s3324_s8  ;;  %876 = vrot.lane.b32.xlu0 %v830_v14, %s3324_s8  ;;  %v937_v14 = vmul.f32 %v932_v13, %v3573_v58  ;;  %v940_v25 = vmul.f32 %v932_v13, %v3606_v19 }
 0x192   : > { %967 = vrot.lane.b32.xlu1 %v934_v44, %s3322_s14  ;;  %965 = vrot.lane.b32.xlu0 %v933_v62, %s3322_s14  ;;  %v939_v44 = vmul.f32 %v932_v13, %v3585_v63  ;;  %v1136_v62 = vrot.slane %v3726_v28, %v3438_v4 }
 0x196   : > { %971 = vrot.lane.b32.xlu1 %v936_v15, %s3322_s14  ;;  %969 = vrot.lane.b32.xlu0 %v935_v16, %s3322_s14  ;;  %v941_v15 = vmul.f32 %v932_v13, %v3597_v12  ;;  %v943_v16 = vmul.f32 %v932_v13, %v3611_v23 }
 0x19a   : > { %975 = vrot.lane.b32.xlu1 %v938_v48, %s3322_s14  ;;  %973 = vrot.lane.b32.xlu0 %v937_v14, %s3322_s14  ;;  %v942_v48 = vmul.f32 %v932_v13, %v3620_v31  ;;  %v3953_v14 = vld [vmem:[%s5915_s1 + $0x10] sm:$0xff] }
 0x19e   : > { %979 = vrot.lane.b32.xlu1 %v940_v25, %s3322_s14  ;;  %977 = vrot.lane.b32.xlu0 %v939_v44, %s3322_s14  ;;  %v944_v25 = vmul.f32 %v932_v13, %v3632_v41  ;;  %v1656_v44 = vrot.slane %v3953_v14, %v3435_v3 }
 0x1a2   : > { %1138 = vrot.lane.b32.xlu1 %v1136_v62, %s3323_s6  ;;  %981 = vrot.lane.b32.xlu0 %v941_v15, %s3322_s14  ;;  %v2177_v62 = vrot.slane %v3953_v14, %v3718_v24  ;;  %v945_v15 = vmul.f32 %v932_v13, %v3625_v35 }
 0x1a6   : > { %985 = vrot.lane.b32.xlu1 %v943_v16, %s3322_s14  ;;  %983 = vrot.lane.b32.xlu0 %v942_v48, %s3322_s14  ;;  %v947_v16 = vmul.f32 %v3966_v37, %v932_v13  ;;  %v946_v48 = vmul.f32 %v932_v13, %v3641_v49 }
 0x1aa   : > { %987 = vrot.lane.b32.xlu1 %v944_v25, %s3322_s14  ;;  %1658 = vrot.lane.b32.xlu0 %v1656_v44, %s3323_s6  ;;  %v1032_v25 = vrot.slane %v3726_v28, %v3441_v5  ;;  %v948_v44 = vmul.f32 %v3973_v9, %v932_v13 }
 0x1ae   : > { %2179 = vrot.lane.b32.xlu1 %v2177_v62, %s3323_s6  ;;  %989 = vrot.lane.b32.xlu0 %v945_v15, %s3322_s14  ;;  %v3982_v62 = vpop.permute.xlu0 %652 }
 0x1af   : > { %6032 = vst [vmem:[#allocation53_spill] sm:$0xff] %v3982_v62 }
 0x1b2   : > { %993 = vrot.lane.b32.xlu1 %v947_v16, %s3322_s14  ;;  %991 = vrot.lane.b32.xlu0 %v946_v48, %s3322_s14  ;;  %v3984_v15 = vpop.permute.xlu0 %656 }
 0x1b3   : > { %6033 = vst [vmem:[#allocation54_spill] sm:$0xff] %v3984_v15 }
 0x1b6   : > { %1034 = vrot.lane.b32.xlu1 %v1032_v25, %s3322_s14  ;;  %995 = vrot.lane.b32.xlu0 %v948_v44, %s3322_s14  ;;  %v3988_v29 = vpop.permute.xlu0 %660 }
 0x1b7   : > { %6035 = vst [vmem:[#allocation56_spill] sm:$0xff] %v3988_v29 }
 0x1ba   : > { %v3992_v48 = vpop.permute.xlu0 %664 }
 0x1bb   : > { %6037 = vst [vmem:[#allocation58_spill] sm:$0xff] %v3992_v48 }
 0x1be   : > { %v3998_v13 = vpop.permute.xlu0 %668 }
 0x1bf   : > { %6038 = vst [vmem:[#allocation59_spill] sm:$0xff] %v3998_v13 }
 0x1c2   : > { %v4002_v44 = vpop.permute.xlu0 %672 }
 0x1c3   : > { %6040 = vst [vmem:[#allocation61_spill] sm:$0xff] %v4002_v44 }
 0x1e4   : > { %v3986_v57 = vpop.permute.xlu1 %850 }
 0x1e5   : > { %6034 = vst [vmem:[#allocation55_spill] sm:$0xff] %v3986_v57  ;;  %v4008_v57 = vpop.permute.xlu0 %676 }
 0x1e6   : > { %6042 = vst [vmem:[#allocation63_spill] sm:$0xff] %v4008_v57 }
 0x1e8   : > { %v3990_v16 = vpop.permute.xlu1 %854 }
 0x1e9   : > { %6036 = vst [vmem:[#allocation57_spill] sm:$0xff] %v3990_v16  ;;  %v4012_v16 = vpop.permute.xlu0 %680 }
 0x1ea   : > { %6043 = vst [vmem:[#allocation64_spill] sm:$0xff] %v4012_v16 }
 0x1ec   : > { %v3994_v22 = vpop.permute.xlu1 %858 }
 0x1ed   : > { %v4018_v62 = vpop.permute.xlu0 %773 }
 0x1ee   : > { %6046 = vst [vmem:[#allocation67_spill] sm:$0xff] %v4018_v62 }
 0x1f0   : > { %v3996_v55 = vpop.permute.xlu1 %862 }
 0x1f4   : > { %v4000_v25 = vpop.permute.xlu1 %866 }
 0x1f5   : > { %6039 = vst [vmem:[#allocation60_spill] sm:$0xff] %v4000_v25  ;;  %v4022_v25 = vpop.permute.xlu0 %848 }
 0x1f6   : > { %6048 = vst [vmem:[#allocation69_spill] sm:$0xff] %v4022_v25 }
 0x1f8   : > { %v4004_v54 = vpop.permute.xlu1 %870 }
 0x1f9   : > { %6041 = vst [vmem:[#allocation62_spill] sm:$0xff] %v4004_v54  ;;  %v4026_v54 = vpop.permute.xlu0 %852 }
 0x1fa   : > { %6050 = vst [vmem:[#allocation71_spill] sm:$0xff] %v4026_v54 }
 0x1fc   : > { %v4006_v15 = vpop.permute.xlu1 %874 }
 0x1fd   : > { %v4032_v52 = vpop.permute.xlu0 %856 }
 0x200   : > { %v4010_v29 = vpop.permute.xlu1 %878 }
 0x204   : > { %v4014_v48 = vpop.permute.xlu1 %967 }
 0x205   : > { %6044 = vst [vmem:[#allocation65_spill] sm:$0xff] %v4014_v48  ;;  %v4036_v48 = vpop.permute.xlu0 %860 }
 0x208   : > { %v4016_v17 = vpop.permute.xlu1 %971 }
 0x209   : > { %6045 = vst [vmem:[#allocation66_spill] sm:$0xff] %v4016_v17 }
 0x20c   : > { %v4020_v13 = vpop.permute.xlu1 %975 }
 0x20d   : > { %6047 = vst [vmem:[#allocation68_spill] sm:$0xff] %v4020_v13  ;;  %v4042_v13 = vpop.permute.xlu0 %864 }
 0x20e   : > { %6054 = vst [vmem:[#allocation75_spill] sm:$0xff] %v4042_v13 }
 0x210   : > { %v4024_v44 = vpop.permute.xlu1 %979 }
 0x211   : > { %6049 = vst [vmem:[#allocation70_spill] sm:$0xff] %v4024_v44 }
 0x214   : > { %v4028_v2 = vpop.permute.xlu1 %1138 }
 0x218   : > { %v4030_v57 = vpop.permute.xlu1 %985 }
 0x219   : > { %6051 = vst [vmem:[#allocation72_spill] sm:$0xff] %v4030_v57  ;;  %v4048_v57 = vpop.permute.xlu0 %868 }
 0x21a   : > { %6055 = vst [vmem:[#allocation76_spill] sm:$0xff] %v4048_v57 }
 0x21c   : > { %v4034_v16 = vpop.permute.xlu1 %987 }
 0x21d   : > { %6052 = vst [vmem:[#allocation73_spill] sm:$0xff] %v4034_v16  ;;  %v4056_v11 = vpop.permute.xlu0 %872 }
 0x220   : > { %v4038_v17 = vpop.permute.xlu1 %2179 }
 0x224   : > { %v4040_v62 = vpop.permute.xlu1 %993 }
 0x225   : > { %6053 = vst [vmem:[#allocation74_spill] sm:$0xff] %v4040_v62 }
 0x228   : > { %v1035_v25 = vpop.permute.xlu1 %1034 }
 0x229   : > { %v1038_v44 = vmul.f32 %v1035_v25, %v3568_v56  ;;  %v1037_v54 = vmul.f32 %v1035_v25, %v3552_v47  ;;  %v1040_v16 = vmul.f32 %v1035_v25, %v3580_v61  ;;  %v1039_v45 = vmul.f32 %v1035_v25, %v3562_v53 }
 0x22a   : > { %v1042_v62 = vmul.f32 %v1035_v25, %v3592_v7  ;;  %v1041_v13 = vmul.f32 %v1035_v25, %v3573_v58  ;;  %v1045_v57 = vmul.f32 %v1035_v25, %v3597_v12 }
 0x22b   : > { %1071 = vrot.lane.b32.xlu1 %v1038_v44, %s3325_s9  ;;  %1069 = vrot.lane.b32.xlu0 %v1037_v54, %s3325_s9  ;;  %v1044_v54 = vmul.f32 %v1035_v25, %v3606_v19  ;;  %v1043_v44 = vmul.f32 %v1035_v25, %v3585_v63 }
 0x22f   : > { %1075 = vrot.lane.b32.xlu1 %v1040_v16, %s3325_s9  ;;  %1073 = vrot.lane.b32.xlu0 %v1039_v45, %s3325_s9  ;;  %v4064_v16 = vpop.permute.xlu0 %876  ;;  %v1046_v45 = vmul.f32 %v1035_v25, %v3620_v31 }
 0x230   : > { %6056 = vst [vmem:[#allocation77_spill] sm:$0xff] %v4064_v16  ;;  %v1051_v16 = vmul.f32 %v3966_v37, %v1035_v25 }
 0x233   : > { %1079 = vrot.lane.b32.xlu1 %v1042_v62, %s3325_s9  ;;  %1077 = vrot.lane.b32.xlu0 %v1041_v13, %s3325_s9  ;;  %v1048_v62 = vmul.f32 %v1035_v25, %v3632_v41  ;;  %v1047_v13 = vmul.f32 %v1035_v25, %v3611_v23  ;;  %v4072_v10 = vpop.permute.xlu0 %965 }
 0x234   : > { %6057 = vst [vmem:[#allocation78_spill] sm:$0xff] %v4072_v10 }
 0x237   : > { %1083 = vrot.lane.b32.xlu1 %v1044_v54, %s3325_s9  ;;  %1081 = vrot.lane.b32.xlu0 %v1043_v44, %s3325_s9  ;;  %v1050_v54 = vmul.f32 %v1035_v25, %v3641_v49  ;;  %v1049_v44 = vmul.f32 %v1035_v25, %v3625_v35 }
 0x23b   : > { %1087 = vrot.lane.b32.xlu1 %v1046_v45, %s3325_s9  ;;  %1085 = vrot.lane.b32.xlu0 %v1045_v57, %s3325_s9  ;;  %v4080_v45 = vpop.permute.xlu0 %969  ;;  %v1052_v57 = vmul.f32 %v3973_v9, %v1035_v25  ;;  %v1143_v25 = vmul.f32 %v4028_v2, %v3562_v53  ;;  %v1552_v53 = vrot.slane %v3953_v14, %v3721_v26 }
 0x23c   : > { %6058 = vst [vmem:[#allocation79_spill] sm:$0xff] %v4080_v45  ;;  %v4683_v45 = vld [vmem:[%s3454_s5 + $0x3a] sm:$0xff] }
 0x23d   : > { %6137 = vst [vmem:[#allocation132_spill] sm:$0xff] %v4683_v45 }
 0x23f   : > { %1091 = vrot.lane.b32.xlu1 %v1048_v62, %s3325_s9  ;;  %1089 = vrot.lane.b32.xlu0 %v1047_v13, %s3325_s9  ;;  %v1142_v62 = vmul.f32 %v4028_v2, %v3568_v56  ;;  %v1141_v13 = vmul.f32 %v4028_v2, %v3552_v47  ;;  %v4090_v10 = vpop.permute.xlu0 %973  ;;  %v1332_v56 = vrot.slane %v3726_v28, %v3763_v30 }
 0x240   : > { %6059 = vst [vmem:[#allocation80_spill] sm:$0xff] %v4090_v10  ;;  %v1292_v47 = vrot.slane %v3726_v28, %v3534_v40  ;;  %v6094_v10 = vld [vmem:[#allocation49_spill] sm:$0xff] }
 0x243   : > { %1095 = vrot.lane.b32.xlu1 %v1050_v54, %s3325_s9  ;;  %1093 = vrot.lane.b32.xlu0 %v1049_v44, %s3325_s9  ;;  %v1149_v54 = vmul.f32 %v4028_v2, %v3597_v12  ;;  %v4108_v44 = vrot.slane %v3726_v28, %v3718_v24  ;;  %v1150_v12 = vmul.f32 %v4028_v2, %v3620_v31 }
 0x245   : > { %v1453_v24 = vmul.f32 %v4108_v44, %v3883_v39 }
 0x247   : > { %1099 = vrot.lane.b32.xlu1 %v1052_v57, %s3325_s9  ;;  %1097 = vrot.lane.b32.xlu0 %v1051_v16, %s3325_s9  ;;  %v4104_v16 = vpop.permute.xlu0 %977 }
 0x248   : > { %6060 = vst [vmem:[#allocation81_spill] sm:$0xff] %v4104_v16 }
 0x24b   : > { %1175 = vrot.lane.b32.xlu1 %v1142_v62, %s3325_s9  ;;  %1173 = vrot.lane.b32.xlu0 %v1141_v13, %s3325_s9  ;;  %v4116_v57 = vpop.permute.xlu0 %981  ;;  %v1151_v62 = vmul.f32 %v4028_v2, %v3611_v23  ;;  %v1461_v13 = vmul.f32 %v4108_v44, %v3911_v60  ;;  %v1152_v23 = vmul.f32 %v4028_v2, %v3632_v41 }
 0x24f   : > { %1189 = vrot.lane.b32.xlu1 %v1149_v54, %s3325_s9  ;;  %1177 = vrot.lane.b32.xlu0 %v1143_v25, %s3325_s9  ;;  %v4128_v31 = vpop.permute.xlu0 %983  ;;  %v1144_v54 = vmul.f32 %v4028_v2, %v3580_v61  ;;  %v1454_v25 = vmul.f32 %v4108_v44, %v3880_v34 }
 0x253   : > { %1334 = vrot.lane.b32.xlu1 %v1332_v56, %s3323_s6  ;;  %1294 = vrot.lane.b32.xlu0 %v1292_v47, %s3322_s14  ;;  %v4138_v56 = vpop.permute.xlu0 %1658  ;;  %v1462_v47 = vmul.f32 %v4108_v44, %v3908_v50 }
 0x254   : > { %v1661_v61 = vmul.f32 %v4138_v56, %v3883_v39  ;;  %v1669_v41 = vmul.f32 %v4138_v56, %v3911_v60 }
 0x257   : > { %1554 = vrot.lane.b32.xlu1 %v1552_v53, %s3322_s14  ;;  %1191 = vrot.lane.b32.xlu0 %v1150_v12, %s3325_s9  ;;  %v1813_v53 = vrot.slane %v3953_v14, %v3438_v4  ;;  %v1853_v12 = vrot.slane %v3953_v14, %v3539_v42  ;;  %v1670_v4 = vmul.f32 %v4138_v56, %v3908_v50 }
 0x25b   : > { %1485 = vrot.lane.b32.xlu1 %v1453_v24, %s3322_s14  ;;  %1193 = vrot.lane.b32.xlu0 %v1151_v62, %s3325_s9  ;;  %v1662_v24 = vmul.f32 %v4138_v56, %v3880_v34  ;;  %v1145_v62 = vmul.f32 %v4028_v2, %v3573_v58  ;;  %v2073_v58 = vrot.slane %v3953_v14, %v3763_v30 }
 0x25c   : > { %v1464_v30 = vmul.f32 %v4108_v44, %v3822_v21 }
 0x25f   : > { %1179 = vrot.lane.b32.xlu1 %v1144_v54, %s3325_s9  ;;  %1501 = vrot.lane.b32.xlu0 %v1461_v13, %s3322_s14  ;;  %v1455_v13 = vmul.f32 %v4108_v44, %v3777_v20  ;;  %v1153_v54 = vmul.f32 %v4028_v2, %v3625_v35  ;;  %v1154_v35 = vmul.f32 %v4028_v2, %v3641_v49 }
 0x260   : > { %v1671_v49 = vmul.f32 %v4138_v56, %v3825_v43 }
 0x263   : > { %1487 = vrot.lane.b32.xlu1 %v1454_v25, %s3322_s14  ;;  %1195 = vrot.lane.b32.xlu0 %v1152_v23, %s3325_s9  ;;  %v1463_v25 = vmul.f32 %v4108_v44, %v3825_v43  ;;  %v1146_v23 = vmul.f32 %v4028_v2, %v3592_v7  ;;  %v1663_v7 = vmul.f32 %v4138_v56, %v3777_v20  ;;  %v4212_v20 = vpop.permute.xlu0 %989 }
 0x264   : > { %6061 = vst [vmem:[#allocation82_spill] sm:$0xff] %v4212_v20  ;;  %v1664_v43 = vmul.f32 %v4138_v56, %v3774_v18  ;;  %v4458_v20 = vld [vmem:[%s3454_s5 + $0x8] sm:$0xff] }
 0x267   : > { %1503 = vrot.lane.b32.xlu0 %v1462_v47, %s3322_s14  ;;  %1693 = vrot.lane.b32.xlu1 %v1661_v61, %s3325_s9  ;;  %v1456_v47 = vmul.f32 %v4108_v44, %v3774_v18  ;;  %v4190_v61 = vrot.slane %v3953_v14, %v3534_v40  ;;  %v1147_v18 = vmul.f32 %v4028_v2, %v3585_v63  ;;  %v227_v63 = vld [vmem:[%s5915_s1 + $0x18] sm:$0x7] }
 0x26b   : > { %1709 = vrot.lane.b32.xlu0 %v1669_v41, %s3325_s9  ;;  %1815 = vrot.lane.b32.xlu1 %v1813_v53, %s3322_s14  ;;  %v4199_v53 = vld [vmem:[%s3454_s5 + $0x31] sm:$0xff] }
 0x26c   : > { %v4202_v41 = vld [vmem:[%s3454_s5 + $0x91] sm:$0xff]  ;;  %v1974_v40 = vmul.f32 %v4199_v53, %v4190_v61 }
 0x26f   : > { %1855 = vrot.lane.b32.xlu0 %v1853_v12, %s3323_s6  ;;  %1695 = vrot.lane.b32.xlu1 %v1662_v24, %s3325_s9  ;;  %v1982_v12 = vmul.f32 %v4202_v41, %v4190_v61  ;;  %v1672_v24 = vmul.f32 %v4138_v56, %v3822_v21  ;;  %v1155_v21 = vmul.f32 %v3966_v37, %v4028_v2 }
 0x273   : > { %1711 = vrot.lane.b32.xlu0 %v1670_v4, %s3325_s9  ;;  %1181 = vrot.lane.b32.xlu1 %v1145_v62, %s3325_s9  ;;  %v4219_v4 = vld [vmem:[%s3454_s5 + $0x39] sm:$0xff] }
 0x274   : > { %v4222_v62 = vld [vmem:[%s3454_s5 + $0x99] sm:$0xff] }
 0x277   : > { %1197 = vrot.lane.b32.xlu0 %v1153_v54, %s3325_s9  ;;  %1489 = vrot.lane.b32.xlu1 %v1455_v13, %s3322_s14  ;;  %v1975_v13 = vmul.f32 %v4219_v4, %v4190_v61  ;;  %v1983_v54 = vmul.f32 %v4222_v62, %v4190_v61 }
 0x27b   : > { %1505 = vrot.lane.b32.xlu0 %v1463_v25, %s3322_s14  ;;  %2075 = vrot.lane.b32.xlu1 %v2073_v58, %s3322_s14  ;;  %v4230_v25 = vpop.permute.xlu0 %991  ;;  %v1457_v58 = vmul.f32 %v4108_v44, %v3791_v46 }
 0x27c   : > { %6062 = vst [vmem:[#allocation83_spill] sm:$0xff] %v4230_v25 }
 0x27f   : > { %1183 = vrot.lane.b32.xlu0 %v1146_v23, %s3325_s9  ;;  %1199 = vrot.lane.b32.xlu1 %v1154_v35, %s3325_s9  ;;  %v1465_v23 = vmul.f32 %v4108_v44, %v3835_v38  ;;  %v4244_v35 = vpop.permute.xlu0 %995 }
 0x280   : > { %6063 = vst [vmem:[#allocation84_spill] sm:$0xff] %v4244_v35 }
 0x283   : > { %1491 = vrot.lane.b32.xlu0 %v1456_v47, %s3322_s14  ;;  %1507 = vrot.lane.b32.xlu1 %v1464_v30, %s3322_s14  ;;  %v2182_v30 = vmul.f32 %v4199_v53, %v4038_v17 }
 0x287   : > { %1697 = vrot.lane.b32.xlu0 %v1663_v7, %s3325_s9  ;;  %1713 = vrot.lane.b32.xlu1 %v1671_v49, %s3325_s9  ;;  %v2190_v7 = vmul.f32 %v4202_v41, %v4038_v17  ;;  %v2333_v49 = vrot.slane %v227_v63, %v3435_v3  ;;  %v901_v3 = vadd.f32 %v3994_v22, %v3801_v32 }
 0x288   : > { %v903_v22 = vadd.f32 %v3996_v55, %v3805_v27 }
 0x28b   : > { %2006 = vrot.lane.b32.xlu0 %v1974_v40, %s3322_s14  ;;  %2022 = vrot.lane.b32.xlu1 %v1982_v12, %s3322_s14  ;;  %v2373_v40 = vrot.slane %v227_v63, %v3441_v5  ;;  %v1156_v63 = vmul.f32 %v3973_v9, %v4028_v2  ;;  %v4305_v9 = vld [vmem:[%s3454_s5 + $0x69] sm:$0xff] }
 0x28f   : > { %1699 = vrot.lane.b32.xlu0 %v1664_v43, %s3325_s9  ;;  %1715 = vrot.lane.b32.xlu1 %v1672_v24, %s3325_s9  ;;  %v4269_v24 = vrot.slane %v3726_v28, %v3539_v42 }
 0x291   : > { %6068 = vst [vmem:[#allocation89_spill] sm:$0xff] %v4269_v24 }
 0x293   : > { %2008 = vrot.lane.b32.xlu0 %v1975_v13, %s3322_s14  ;;  %2024 = vrot.lane.b32.xlu1 %v1983_v54, %s3322_s14  ;;  %v4274_v13 = vld [vmem:[%s3454_s5 + $0x49] sm:$0xff]  ;;  %v4277_v54 = vld [vmem:[%s3454_s5 + $0x51] sm:$0xff] }
 0x294   : > { %v1261_v42 = vmul.f32 %v4274_v13, %v4269_v24  ;;  %v1262_v28 = vmul.f32 %v4277_v54, %v4269_v24 }
 0x297   : > { %1185 = vrot.lane.b32.xlu0 %v1147_v18, %s3325_s9  ;;  %1201 = vrot.lane.b32.xlu1 %v1155_v21, %s3325_s9  ;;  %v900_v18 = vadd.f32 %v4032_v52, %v3803_v33  ;;  %v902_v33 = vadd.f32 %v4036_v48, %v3807_v59 }
 0x29b   : > { %1493 = vrot.lane.b32.xlu0 %v1457_v58, %s3322_s14  ;;  %1509 = vrot.lane.b32.xlu1 %v1465_v23, %s3322_s14  ;;  %v1148_v23 = vmul.f32 %v4028_v2, %v3606_v19  ;;  %v1466_v19 = vmul.f32 %v4108_v44, %v3832_v1  ;;  %v1264_v2 = vmul.f32 %v4305_v9, %v4269_v24 }
 0x29d   : > { %v4251_v37 = vpop.permute.xlu1 %1071  ;;  %v4253_v47 = vpop.permute.xlu0 %1069 }
 0x29e   : > { %6064 = vst [vmem:[#allocation85_spill] sm:$0xff] %v4251_v37  ;;  %6065 = vst [vmem:[#allocation86_spill] sm:$0xff] %v4253_v47 }
 0x29f   : > { %2214 = vrot.lane.b32.xlu0 %v2182_v30, %s3325_s9  ;;  %2230 = vrot.lane.b32.xlu1 %v2190_v7, %s3325_s9  ;;  %v1458_v30 = vmul.f32 %v4108_v44, %v3788_v36  ;;  %v4302_v7 = vld [vmem:[%s3454_s5 + $0x61] sm:$0xff] }
 0x2a0   : > { %v1263_v59 = vmul.f32 %v4302_v7, %v4269_v24 }
 0x2a1   : > { %v4263_v12 = vpop.permute.xlu1 %1075  ;;  %v4265_v43 = vpop.permute.xlu0 %1073 }
 0x2a2   : > { %6066 = vst [vmem:[#allocation87_spill] sm:$0xff] %v4263_v12  ;;  %6067 = vst [vmem:[#allocation88_spill] sm:$0xff] %v4265_v43  ;;  %v6098_v43 = vld [vmem:[#allocation78_spill] sm:$0xff] }
 0x2a3   : > { %2335 = vrot.lane.b32.xlu0 %v2333_v49, %s3322_s14  ;;  %2375 = vrot.lane.b32.xlu1 %v2373_v40, %s3323_s6 }
 0x2a5   : > { %v1080_v21 = vpop.permute.xlu1 %1079  ;;  %v1078_v58 = vpop.permute.xlu0 %1077 }
 0x2a6   : > { %v1122_v32 = vadd.f32 %v1080_v21, %v901_v3  ;;  %v1121_v52 = vadd.f32 %v1078_v58, %v900_v18  ;;  %v2183_v58 = vmul.f32 %v4219_v4, %v4038_v17 }
 0x2a7   : > { %1187 = vrot.lane.b32.xlu0 %v1148_v23, %s3325_s9  ;;  %1203 = vrot.lane.b32.xlu1 %v1156_v63, %s3325_s9  ;;  %v2191_v23 = vmul.f32 %v4222_v62, %v4038_v17 }
 0x2a8   : > { %v4307_v27 = vadd.f32 %v1261_v42, %v1121_v52  ;;  %v4309_v55 = vadd.f32 %v1262_v28, %v1122_v32  ;;  %v1665_v32 = vmul.f32 %v4138_v56, %v3791_v46  ;;  %v1673_v52 = vmul.f32 %v4138_v56, %v3835_v38 }
 0x2a9   : > { %v1084_v48 = vpop.permute.xlu1 %1083  ;;  %v1082_v49 = vpop.permute.xlu0 %1081  ;;  %v909_v46 = vadd.f32 %v4006_v15, %v3845_v0  ;;  %v908_v38 = vadd.f32 %v4056_v11, %v3847_v8  ;;  %v4366_v8 = vld [vmem:[%s3454_s5 + $0xc1] sm:$0xff]  ;;  %v4369_v0 = vld [vmem:[%s3454_s5 + $0xc9] sm:$0xff] }
 0x2aa   : > { %6069 = vst [vmem:[#allocation90_spill] sm:$0xff] %v4307_v27  ;;  %6070 = vst [vmem:[#allocation91_spill] sm:$0xff] %v4309_v55  ;;  %v1124_v40 = vadd.f32 %v1084_v48, %v903_v22  ;;  %v1123_v3 = vadd.f32 %v1082_v49, %v902_v33  ;;  %v4340_v33 = vld [vmem:[%s3454_s5 + $0xa9] sm:$0xff] }
 0x2ab   : > { %1495 = vrot.lane.b32.xlu0 %v1458_v30, %s3322_s14  ;;  %1511 = vrot.lane.b32.xlu1 %v1466_v19, %s3322_s14  ;;  %v1976_v30 = vmul.f32 %v4274_v13, %v4190_v61  ;;  %v1984_v19 = vmul.f32 %v4340_v33, %v4190_v61  ;;  %v6089_v55 = vld [vmem:[#allocation50_spill] sm:$0xff] }
 0x2ac   : > { %v4317_v18 = vadd.f32 %v1263_v59, %v1123_v3  ;;  %v4319_v42 = vadd.f32 %v1264_v2, %v1124_v40  ;;  %v4349_v59 = vld [vmem:[%s3454_s5 + $0xb1] sm:$0xff]  ;;  %v1269_v2 = vmul.f32 %v4340_v33, %v4269_v24 }
 0x2ad   : > { %v4321_v28 = vpop.permute.xlu1 %1087  ;;  %v4323_v21 = vpop.permute.xlu0 %1085  ;;  %v1270_v48 = vmul.f32 %v4349_v59, %v4269_v24 }
 0x2ae   : > { %6071 = vst [vmem:[#allocation92_spill] sm:$0xff] %v4317_v18  ;;  %6072 = vst [vmem:[#allocation93_spill] sm:$0xff] %v4319_v42  ;;  %v4440_v18 = vld [vmem:[%s3454_s5] sm:$0xff] }
 0x2af   : > { %6073 = vst [vmem:[#allocation94_spill] sm:$0xff] %v4321_v28  ;;  %6074 = vst [vmem:[#allocation95_spill] sm:$0xff] %v4323_v21  ;;  %2216 = vrot.lane.b32.xlu0 %v2183_v58, %s3325_s9  ;;  %2232 = vrot.lane.b32.xlu1 %v2191_v23, %s3325_s9  ;;  %v911_v23 = vadd.f32 %v4010_v29, %v3849_v6  ;;  %v1272_v29 = vmul.f32 %v4369_v0, %v4269_v24 }
 0x2b1   : > { %v4331_v63 = vpop.permute.xlu1 %1091  ;;  %v4333_v22 = vpop.permute.xlu0 %1089 }
 0x2b2   : > { %6075 = vst [vmem:[#allocation96_spill] sm:$0xff] %v4331_v63  ;;  %6076 = vst [vmem:[#allocation97_spill] sm:$0xff] %v4333_v22  ;;  %v4473_v22 = vld [vmem:[%s3454_s5 + $0x19] sm:$0xff] }
 0x2b3   : > { %1701 = vrot.lane.b32.xlu0 %v1665_v32, %s3325_s9  ;;  %1717 = vrot.lane.b32.xlu1 %v1673_v52, %s3325_s9  ;;  %v6077_v32 = vld [vmem:[#allocation77_spill] sm:$0xff] }
 0x2b4   : > { %v910_v52 = vadd.f32 %v6077_v32, %v3851_v51 }
 0x2b5   : > { %v1096_v49 = vpop.permute.xlu1 %1095  ;;  %v1094_v40 = vpop.permute.xlu0 %1093 }
 0x2b6   : > { %v1130_v3 = vadd.f32 %v1096_v49, %v909_v46  ;;  %v1129_v58 = vadd.f32 %v1094_v40, %v908_v38  ;;  %v1271_v46 = vmul.f32 %v4366_v8, %v4269_v24  ;;  %v1985_v49 = vmul.f32 %v4349_v59, %v4190_v61  ;;  %v3184_v24 = vld [vmem:[%s3454_s5 + $0x38] sm:$0xff] }
 0x2b7   : > { %2010 = vrot.lane.b32.xlu0 %v1976_v30, %s3322_s14  ;;  %2026 = vrot.lane.b32.xlu1 %v1984_v19, %s3322_s14  ;;  %v1666_v30 = vmul.f32 %v4138_v56, %v3788_v36  ;;  %v1674_v19 = vmul.f32 %v4138_v56, %v3832_v1 }
 0x2b8   : > { %v4371_v11 = vadd.f32 %v1269_v2, %v1129_v58  ;;  %v4373_v15 = vadd.f32 %v1270_v48, %v1130_v3  ;;  %v1977_v48 = vmul.f32 %v4277_v54, %v4190_v61  ;;  %v4396_v58 = vld [vmem:[%s3454_s5 + $0xc2] sm:$0xff] }
 0x2b9   : > { %v1100_v6 = vpop.permute.xlu1 %1099  ;;  %v1098_v51 = vpop.permute.xlu0 %1097  ;;  %v1675_v26 = vmul.f32 %v4396_v58, %v4138_v56 }
 0x2ba   : > { %6078 = vst [vmem:[#allocation77_spill] sm:$0xff] %v4371_v11  ;;  %6079 = vst [vmem:[#allocation98_spill] sm:$0xff] %v4373_v15  ;;  %v1132_v38 = vadd.f32 %v1100_v6, %v911_v23  ;;  %v1131_v2 = vadd.f32 %v1098_v51, %v910_v52  ;;  %v6082_v23 = vld [vmem:[#allocation52_spill] sm:$0xff]  ;;  %v1467_v52 = vmul.f32 %v4396_v58, %v4108_v44  ;;  %v6090_v15 = vld [vmem:[#allocation67_spill] sm:$0xff] }
 0x2bb   : > { %1703 = vrot.lane.b32.xlu0 %v1666_v30, %s3325_s9  ;;  %1719 = vrot.lane.b32.xlu1 %v1674_v19, %s3325_s9  ;;  %v1459_v32 = vmul.f32 %v4108_v44, %v6082_v23  ;;  %v2184_v30 = vmul.f32 %v4274_v13, %v4038_v17  ;;  %v2192_v19 = vmul.f32 %v4340_v33, %v4038_v17 }
 0x2bc   : > { %v4389_v40 = vadd.f32 %v1271_v46, %v1131_v2  ;;  %v4391_v3 = vadd.f32 %v1272_v29, %v1132_v38  ;;  %v4419_v38 = vld [vmem:[%s3454_s5 + $0xca] sm:$0xff]  ;;  %v776_v27 = vmul.f32 %v6090_v15, %v6089_v55  ;;  %v1667_v25 = vmul.f32 %v4138_v56, %v6082_v23 }
 0x2bd   : > { %v4393_v36 = vpop.permute.xlu1 %1175  ;;  %v1174_v1 = vpop.permute.xlu0 %1173  ;;  %6084 = vst [vmem:[#allocation101_spill] sm:$0xff] %v4419_v38  ;;  %v6085_v2 = vld [vmem:[#allocation51_spill] sm:$0xff]  ;;  %v1978_v55 = vmul.f32 %v4302_v7, %v4190_v61  ;;  %v1986_v23 = vmul.f32 %v4366_v8, %v4190_v61  ;;  %v777_v63 = vmul.f32 %v6090_v15, %v6094_v10 }
 0x2be   : > { %6080 = vst [vmem:[#allocation99_spill] sm:$0xff] %v4389_v40  ;;  %6081 = vst [vmem:[#allocation100_spill] sm:$0xff] %v4391_v3 }
 0x2bf   : > { %2012 = vrot.lane.b32.xlu0 %v1977_v48, %s3322_s14  ;;  %2028 = vrot.lane.b32.xlu1 %v1985_v49, %s3322_s14  ;;  %v1460_v48 = vmul.f32 %v4108_v44, %v6085_v2  ;;  %v1468_v49 = vmul.f32 %v4419_v38, %v4108_v44  ;;  %v6087_v44 = vld [vmem:[#allocation5_spill] sm:$0xff] }
 0x2c0   : > { %v272_v40 = vmul.f32 %v4440_v18, %v6087_v44 }
 0x2c1   : > { %v4404_v46 = vpop.permute.xlu1 %1189  ;;  %v4406_v29 = vpop.permute.xlu0 %1177 }
 0x2c2   : > { %6083 = vst [vmem:[#allocation52_spill] sm:$0xff] %v4406_v29 }
 0x2c3   : > { %1497 = vrot.lane.b32.xlu0 %v1459_v32, %s3322_s14  ;;  %1513 = vrot.lane.b32.xlu1 %v1467_v52, %s3322_s14 }
 0x2c5   : > { %v4410_v6 = vpop.permute.xlu1 %1334  ;;  %v4412_v51 = vpop.permute.xlu0 %1294 }
 0x2c6   : > { %v1297_v29 = vmul.f32 %v4473_v22, %v4412_v51 }
 0x2c7   : > { %2218 = vrot.lane.b32.xlu0 %v2184_v30, %s3325_s9  ;;  %2234 = vrot.lane.b32.xlu1 %v2192_v19, %s3325_s9  ;;  %v2185_v30 = vmul.f32 %v4277_v54, %v4038_v17  ;;  %v2193_v19 = vmul.f32 %v4349_v59, %v4038_v17 }
 0x2c9   : > { %v4427_v32 = vpop.permute.xlu1 %1554  ;;  %v4429_v52 = vpop.permute.xlu0 %1191 }
 0x2ca   : > { %v1560_v21 = vmul.f32 %v4683_v45, %v4427_v32 }
 0x2cb   : > { %1499 = vrot.lane.b32.xlu0 %v1460_v48, %s3322_s14  ;;  %1515 = vrot.lane.b32.xlu1 %v1468_v49, %s3322_s14  ;;  %v6088_v48 = vld [vmem:[#allocation6_spill] sm:$0xff] }
 0x2cc   : > { %v492_v49 = vadd.f32 %v6088_v48, %v272_v40  ;;  %v6092_v40 = vld [vmem:[#allocation53_spill] sm:$0xff]  ;;  %v6093_v48 = vld [vmem:[#allocation10_spill] sm:$0xff]  ;;  %6095 = vst [vmem:[#allocation6_spill] sm:$0xff] %v4473_v22 }
 0x2cd   : > { %v1486_v42 = vpop.permute.xlu1 %1485  ;;  %v4433_v3 = vpop.permute.xlu0 %1193 }
 0x2ce   : > { %6086 = vst [vmem:[#allocation51_spill] sm:$0xff] %v4433_v3  ;;  %v4678_v3 = vld [vmem:[%s3454_s5 + $0x9a] sm:$0xff] }
 0x2cf   : > { %2220 = vrot.lane.b32.xlu0 %v2185_v30, %s3325_s9  ;;  %2236 = vrot.lane.b32.xlu1 %v2193_v19, %s3325_s9  ;;  %v273_v30 = vmul.f32 %v4458_v20, %v6087_v44  ;;  %v700_v19 = vadd.f32 %v6092_v40, %v492_v49  ;;  %6136 = vst [vmem:[#allocation131_spill] sm:$0xff] %v4678_v3 }
 0x2d0   : > { %v1568_v28 = vmul.f32 %v4678_v3, %v4427_v32 }
 0x2d1   : > { %v4449_v11 = vpop.permute.xlu1 %1179  ;;  %v4451_v35 = vpop.permute.xlu0 %1501  ;;  %v493_v16 = vadd.f32 %v6093_v48, %v273_v30  ;;  %v792_v12 = vadd.f32 %v776_v27, %v700_v19  ;;  %v4484_v27 = vld [vmem:[%s3454_s5 + $0x21] sm:$0xff] }
 0x2d2   : > { %6091 = vst [vmem:[#allocation5_spill] sm:$0xff] %v4449_v11  ;;  %6099 = vst [vmem:[#allocation67_spill] sm:$0xff] %v4484_v27 }
 0x2d3   : > { %1705 = vrot.lane.b32.xlu0 %v1667_v25, %s3325_s9  ;;  %1721 = vrot.lane.b32.xlu1 %v1675_v26, %s3325_s9  ;;  %v6097_v25 = vld [vmem:[#allocation41_spill] sm:$0xff]  ;;  %v1013_v11 = vadd.f32 %v6098_v43, %v792_v12  ;;  %v1676_v12 = vmul.f32 %v4419_v38, %v4138_v56 }
 0x2d4   : > { %v701_v26 = vadd.f32 %v6097_v25, %v493_v16  ;;  %v1668_v16 = vmul.f32 %v4138_v56, %v6085_v2  ;;  %v6101_v43 = vld [vmem:[#allocation65_spill] sm:$0xff] }
 0x2d5   : > { %v1488_v49 = vpop.permute.xlu1 %1487  ;;  %v4475_v40 = vpop.permute.xlu0 %1195  ;;  %v1221_v10 = vadd.f32 %v1174_v1, %v1013_v11  ;;  %v1987_v11 = vmul.f32 %v4369_v0, %v4190_v61  ;;  %v4502_v1 = vld [vmem:[%s3454_s5 + $0x30] sm:$0xff] }
 0x2d6   : > { %6096 = vst [vmem:[#allocation50_spill] sm:$0xff] %v4475_v40  ;;  %v793_v30 = vadd.f32 %v777_v63, %v701_v26  ;;  %v1979_v63 = vmul.f32 %v4305_v9, %v4190_v61  ;;  %6102 = vst [vmem:[#allocation10_spill] sm:$0xff] %v4502_v1 }
 0x2d7   : > { %2014 = vrot.lane.b32.xlu0 %v1978_v55, %s3322_s14  ;;  %2030 = vrot.lane.b32.xlu1 %v1986_v23, %s3322_s14  ;;  %v1313_v40 = vadd.f32 %v1297_v29, %v1221_v10  ;;  %v1298_v55 = vmul.f32 %v4484_v27, %v4412_v51 }
 0x2d8   : > { %v1014_v25 = vadd.f32 %v6101_v43, %v793_v30  ;;  %v2186_v43 = vmul.f32 %v4302_v7, %v4038_v17 }
 0x2d9   : > { %v1694_v19 = vpop.permute.xlu1 %1693  ;;  %v4486_v48 = vpop.permute.xlu0 %1503  ;;  %v1533_v2 = vadd.f32 %v1486_v42, %v1313_v40 }
 0x2da   : > { %6100 = vst [vmem:[#allocation53_spill] sm:$0xff] %v4486_v48  ;;  %v1222_v56 = vadd.f32 %v4393_v36, %v1014_v25 }
 0x2db   : > { %1707 = vrot.lane.b32.xlu0 %v1668_v16, %s3325_s9  ;;  %1723 = vrot.lane.b32.xlu1 %v1676_v12, %s3325_s9  ;;  %v1741_v30 = vadd.f32 %v1694_v19, %v1533_v2  ;;  %v4514_v16 = vld [vmem:[%s3454_s5 + $0x38] sm:$0xff]  ;;  %v2194_v19 = vmul.f32 %v4366_v8, %v4038_v17  ;;  %v2187_v2 = vmul.f32 %v4305_v9, %v4038_v17 }
 0x2dc   : > { %v1314_v26 = vadd.f32 %v1298_v55, %v1222_v56  ;;  %6103 = vst [vmem:[#allocation49_spill] sm:$0xff] %v4514_v16  ;;  %v2195_v56 = vmul.f32 %v4369_v0, %v4038_v17 }
 0x2dd   : > { %v4505_v29 = vpop.permute.xlu1 %1815  ;;  %v4507_v23 = vpop.permute.xlu0 %1709 }
 0x2de   : > { %v1818_v10 = vmul.f32 %v4502_v1, %v4505_v29  ;;  %v1534_v12 = vadd.f32 %v1488_v49, %v1314_v26  ;;  %v1819_v55 = vmul.f32 %v4514_v16, %v4505_v29  ;;  %v4539_v26 = vld [vmem:[%s3454_s5 + $0x79] sm:$0xff] }
 0x2df   : > { %2016 = vrot.lane.b32.xlu0 %v1979_v63, %s3322_s14  ;;  %2032 = vrot.lane.b32.xlu1 %v1987_v11, %s3322_s14 }
 0x2e0   : > { %v4516_v36 = vadd.f32 %v1818_v10, %v1741_v30  ;;  %v2965_v30 = vld [vmem:[%s3454_s5 + $0xd9] sm:$0xff] }
 0x2e1   : > { %v1696_v42 = vpop.permute.xlu1 %1695  ;;  %v4518_v40 = vpop.permute.xlu0 %1855  ;;  %v1988_v10 = vmul.f32 %v2965_v30, %v4190_v61 }
 0x2e2   : > { %6104 = vst [vmem:[#allocation41_spill] sm:$0xff] %v4516_v36  ;;  %6105 = vst [vmem:[#allocation78_spill] sm:$0xff] %v4518_v40  ;;  %v1742_v25 = vadd.f32 %v1696_v42, %v1534_v12  ;;  %v1980_v12 = vmul.f32 %v4539_v26, %v4190_v61 }
 0x2e3   : > { %2238 = vrot.lane.b32.xlu1 %v2194_v19, %s3325_s9  ;;  %2222 = vrot.lane.b32.xlu0 %v2186_v43, %s3325_s9  ;;  %v4552_v43 = vld [vmem:[%s3454_s5 + $0x81] sm:$0xff] }
 0x2e4   : > { %v4528_v49 = vadd.f32 %v1819_v55, %v1742_v25  ;;  %6111 = vst [vmem:[#allocation106_spill] sm:$0xff] %v4552_v43  ;;  %v2966_v25 = vld [vmem:[%s3454_s5 + $0xe1] sm:$0xff] }
 0x2e5   : > { %v4530_v63 = vpop.permute.xlu1 %1181  ;;  %v4532_v11 = vpop.permute.xlu0 %1711  ;;  %v1989_v55 = vmul.f32 %v2966_v25, %v4190_v61 }
 0x2e6   : > { %6106 = vst [vmem:[#allocation65_spill] sm:$0xff] %v4528_v49  ;;  %6107 = vst [vmem:[#allocation102_spill] sm:$0xff] %v4530_v63  ;;  %v3188_v49 = vld [vmem:[%s3454_s5 + $0x48] sm:$0xff] }
 0x2e7   : > { %6108 = vst [vmem:[#allocation103_spill] sm:$0xff] %v4532_v11  ;;  %2240 = vrot.lane.b32.xlu1 %v2195_v56, %s3325_s9  ;;  %2224 = vrot.lane.b32.xlu0 %v2187_v2, %s3325_s9  ;;  %v1981_v56 = vmul.f32 %v4552_v43, %v4190_v61 }
 0x2e9   : > { %v4547_v42 = vpop.permute.xlu1 %1489  ;;  %v4549_v19 = vpop.permute.xlu0 %1197 }
 0x2ea   : > { %6109 = vst [vmem:[#allocation104_spill] sm:$0xff] %v4547_v42  ;;  %6110 = vst [vmem:[#allocation105_spill] sm:$0xff] %v4549_v19 }
 0x2eb   : > { %2034 = vrot.lane.b32.xlu1 %v1988_v10, %s3322_s14  ;;  %2018 = vrot.lane.b32.xlu0 %v1980_v12, %s3322_s14  ;;  %v2196_v10 = vmul.f32 %v2965_v30, %v4038_v17  ;;  %v2188_v12 = vmul.f32 %v4539_v26, %v4038_v17 }
 0x2ed   : > { %v4560_v2 = vpop.permute.xlu1 %2075  ;;  %v4562_v63 = vpop.permute.xlu0 %1505 }
 0x2ee   : > { %6112 = vst [vmem:[#allocation107_spill] sm:$0xff] %v4562_v63 }
 0x2ef   : > { %2036 = vrot.lane.b32.xlu1 %v1989_v55, %s3322_s14  ;;  %2020 = vrot.lane.b32.xlu0 %v1981_v56, %s3322_s14  ;;  %v2197_v55 = vmul.f32 %v2966_v25, %v4038_v17  ;;  %v2189_v56 = vmul.f32 %v4552_v43, %v4038_v17 }
 0x2f1   : > { %v4566_v19 = vpop.permute.xlu1 %1199  ;;  %v4568_v42 = vpop.permute.xlu0 %1183 }
 0x2f2   : > { %6113 = vst [vmem:[#allocation108_spill] sm:$0xff] %v4566_v19  ;;  %6114 = vst [vmem:[#allocation109_spill] sm:$0xff] %v4568_v42 }
 0x2f3   : > { %2242 = vrot.lane.b32.xlu1 %v2196_v10, %s3325_s9  ;;  %2226 = vrot.lane.b32.xlu0 %v2188_v12, %s3325_s9  ;;  %v1345_v10 = vmul.f32 %v4539_v26, %v4410_v6  ;;  %v1337_v12 = vmul.f32 %v4473_v22, %v4410_v6  ;;  %v3183_v22 = vld [vmem:[%s3454_s5 + $0x20] sm:$0xff] }
 0x2f5   : > { %v4575_v61 = vpop.permute.xlu1 %1507  ;;  %v4577_v63 = vpop.permute.xlu0 %1491 }
 0x2f6   : > { %6115 = vst [vmem:[#allocation110_spill] sm:$0xff] %v4575_v61  ;;  %6116 = vst [vmem:[#allocation111_spill] sm:$0xff] %v4577_v63 }
 0x2f7   : > { %2244 = vrot.lane.b32.xlu1 %v2197_v55, %s3325_s9  ;;  %2228 = vrot.lane.b32.xlu0 %v2189_v56, %s3325_s9  ;;  %v1346_v55 = vmul.f32 %v4552_v43, %v4410_v6  ;;  %v1338_v56 = vmul.f32 %v4484_v27, %v4410_v6 }
 0x2f9   : > { %v4584_v30 = vpop.permute.xlu1 %1713  ;;  %v4586_v42 = vpop.permute.xlu0 %1697 }
 0x2fa   : > { %6117 = vst [vmem:[#allocation112_spill] sm:$0xff] %v4584_v30  ;;  %6118 = vst [vmem:[#allocation113_spill] sm:$0xff] %v4586_v42  ;;  %v1858_v30 = vmul.f32 %v4502_v1, %v4518_v40  ;;  %v1859_v1 = vmul.f32 %v4514_v16, %v4518_v40 }
 0x2fb   : > { %1385 = vrot.lane.b32.xlu1 %v1345_v10, %s3324_s8  ;;  %1369 = vrot.lane.b32.xlu0 %v1337_v12, %s3324_s8  ;;  %v1565_v10 = vmul.f32 %v4427_v32, %v3911_v60  ;;  %v1557_v12 = vmul.f32 %v4427_v32, %v3883_v39 }
 0x2fd   : > { %v4594_v25 = vpop.permute.xlu1 %2022  ;;  %v4596_v17 = vpop.permute.xlu0 %2006 }
 0x2fe   : > { %6119 = vst [vmem:[#allocation114_spill] sm:$0xff] %v4594_v25  ;;  %6120 = vst [vmem:[#allocation115_spill] sm:$0xff] %v4596_v17  ;;  %v4963_v17 = vld [vmem:[%s3454_s5 + $0x7a] sm:$0xff]  ;;  %v6206_v25 = vld [vmem:[#allocation27_spill] sm:$0xff] }
 0x2ff   : > { %1387 = vrot.lane.b32.xlu1 %v1346_v55, %s3324_s8  ;;  %1371 = vrot.lane.b32.xlu0 %v1338_v56, %s3324_s8  ;;  %v1566_v55 = vmul.f32 %v4427_v32, %v3908_v50  ;;  %v1558_v56 = vmul.f32 %v4427_v32, %v3880_v34  ;;  %6201 = vst [vmem:[#allocation162_spill] sm:$0xff] %v4963_v17 }
 0x301   : > { %v4604_v19 = vpop.permute.xlu1 %1715  ;;  %v4606_v63 = vpop.permute.xlu0 %1699 }
 0x302   : > { %6121 = vst [vmem:[#allocation116_spill] sm:$0xff] %v4604_v19  ;;  %6122 = vst [vmem:[#allocation117_spill] sm:$0xff] %v4606_v63 }
 0x303   : > { %1605 = vrot.lane.b32.xlu1 %v1565_v10, %s3325_s9  ;;  %1589 = vrot.lane.b32.xlu0 %v1557_v12, %s3325_s9  ;;  %v1347_v10 = vmul.f32 %v4202_v41, %v4410_v6  ;;  %v1339_v12 = vmul.f32 %v4199_v53, %v4410_v6 }
 0x305   : > { %v4614_v61 = vpop.permute.xlu1 %2024  ;;  %v4616_v42 = vpop.permute.xlu0 %2008 }
 0x306   : > { %6123 = vst [vmem:[#allocation118_spill] sm:$0xff] %v4614_v61  ;;  %6124 = vst [vmem:[#allocation119_spill] sm:$0xff] %v4616_v42  ;;  %v278_v61 = vmul.f32 %v3188_v49, %v6087_v44 }
 0x307   : > { %1607 = vrot.lane.b32.xlu1 %v1566_v55, %s3325_s9  ;;  %1591 = vrot.lane.b32.xlu0 %v1558_v56, %s3325_s9  ;;  %v1348_v55 = vmul.f32 %v4222_v62, %v4410_v6  ;;  %v1340_v56 = vmul.f32 %v4219_v4, %v4410_v6 }
 0x309   : > { %v4624_v39 = vpop.permute.xlu1 %1201  ;;  %v4626_v60 = vpop.permute.xlu0 %1185 }
 0x30a   : > { %6125 = vst [vmem:[#allocation120_spill] sm:$0xff] %v4624_v39  ;;  %6126 = vst [vmem:[#allocation121_spill] sm:$0xff] %v4626_v60 }
 0x30b   : > { %1389 = vrot.lane.b32.xlu1 %v1347_v10, %s3324_s8  ;;  %1373 = vrot.lane.b32.xlu0 %v1339_v12, %s3324_s8  ;;  %v4649_v12 = vld [vmem:[%s3454_s5 + $0x92] sm:$0xff] }
 0x30c   : > { %6131 = vst [vmem:[#allocation126_spill] sm:$0xff] %v4649_v12  ;;  %v1567_v39 = vmul.f32 %v4649_v12, %v4427_v32  ;;  %v3192_v12 = vld [vmem:[%s3454_s5 + $0x78] sm:$0xff] }
 0x30d   : > { %v4634_v34 = vpop.permute.xlu1 %1509  ;;  %v4636_v50 = vpop.permute.xlu0 %1493  ;;  %v282_v38 = vmul.f32 %v3192_v12, %v6087_v44 }
 0x30e   : > { %6127 = vst [vmem:[#allocation122_spill] sm:$0xff] %v4634_v34  ;;  %6128 = vst [vmem:[#allocation123_spill] sm:$0xff] %v4636_v50  ;;  %v4654_v50 = vld [vmem:[%s3454_s5 + $0x32] sm:$0xff] }
 0x30f   : > { %1391 = vrot.lane.b32.xlu1 %v1348_v55, %s3324_s8  ;;  %1375 = vrot.lane.b32.xlu0 %v1340_v56, %s3324_s8  ;;  %6132 = vst [vmem:[#allocation127_spill] sm:$0xff] %v4654_v50  ;;  %v1559_v34 = vmul.f32 %v4654_v50, %v4427_v32  ;;  %v4661_v55 = vld [vmem:[%s3454_s5 + $0x90] sm:$0xff]  ;;  %v1343_v50 = vmul.f32 %v4302_v7, %v4410_v6 }
 0x310   : > { %v1866_v19 = vmul.f32 %v4661_v55, %v4518_v40  ;;  %v6171_v7 = vld [vmem:[#allocation15_spill] sm:$0xff] }
 0x311   : > { %v4644_v60 = vpop.permute.xlu1 %2230  ;;  %v4646_v10 = vpop.permute.xlu0 %2214 }
 0x312   : > { %6129 = vst [vmem:[#allocation124_spill] sm:$0xff] %v4644_v60  ;;  %6130 = vst [vmem:[#allocation125_spill] sm:$0xff] %v4646_v10 }
 0x313   : > { %1609 = vrot.lane.b32.xlu1 %v1567_v39, %s3325_s9  ;;  %1593 = vrot.lane.b32.xlu0 %v1559_v34, %s3325_s9 }
 0x315   : > { %v4663_v56 = vpop.permute.xlu1 %2375  ;;  %v4665_v63 = vpop.permute.xlu0 %2335 }
 0x316   : > { %6133 = vst [vmem:[#allocation128_spill] sm:$0xff] %v4665_v63 }
 0x317   : > { %1906 = vrot.lane.b32.xlu1 %v1866_v19, %s3324_s8  ;;  %1890 = vrot.lane.b32.xlu0 %v1858_v30, %s3324_s8  ;;  %v4690_v19 = vld [vmem:[%s3454_s5 + $0x98] sm:$0xff] }
 0x318   : > { %6138 = vst [vmem:[#allocation133_spill] sm:$0xff] %v4690_v19 }
 0x319   : > { %v4673_v39 = vpop.permute.xlu1 %1203  ;;  %v4675_v34 = vpop.permute.xlu0 %1187 }
 0x31a   : > { %6134 = vst [vmem:[#allocation129_spill] sm:$0xff] %v4673_v39  ;;  %6135 = vst [vmem:[#allocation130_spill] sm:$0xff] %v4675_v34  ;;  %v1867_v34 = vmul.f32 %v4690_v19, %v4518_v40  ;;  %v3193_v19 = vld [vmem:[%s3454_s5 + $0xb0] sm:$0xff] }
 0x31b   : > { %1611 = vrot.lane.b32.xlu1 %v1568_v28, %s3325_s9  ;;  %1595 = vrot.lane.b32.xlu0 %v1560_v21, %s3325_s9  ;;  %v1349_v21 = vmul.f32 %v4340_v33, %v4410_v6  ;;  %v287_v49 = vmul.f32 %v3193_v19, %v6087_v44 }
 0x31d   : > { %v4692_v30 = vpop.permute.xlu1 %1511  ;;  %v4694_v39 = vpop.permute.xlu0 %1495 }
 0x31e   : > { %6139 = vst [vmem:[#allocation134_spill] sm:$0xff] %v4692_v30  ;;  %6140 = vst [vmem:[#allocation135_spill] sm:$0xff] %v4694_v39  ;;  %v1341_v39 = vmul.f32 %v4274_v13, %v4410_v6 }
 0x31f   : > { %1908 = vrot.lane.b32.xlu1 %v1867_v34, %s3324_s8  ;;  %1892 = vrot.lane.b32.xlu0 %v1859_v1, %s3324_s8  ;;  %v2086_v1 = vmul.f32 %v4202_v41, %v4560_v2  ;;  %v2078_v34 = vmul.f32 %v4199_v53, %v4560_v2 }
 0x321   : > { %v4702_v27 = vpop.permute.xlu1 %2232  ;;  %v4704_v28 = vpop.permute.xlu0 %2216 }
 0x322   : > { %6141 = vst [vmem:[#allocation136_spill] sm:$0xff] %v4702_v27  ;;  %6142 = vst [vmem:[#allocation137_spill] sm:$0xff] %v4704_v28  ;;  %v4802_v28 = vld [vmem:[%s3454_s5 + $0x50] sm:$0xff] }
 0x323   : > { %1393 = vrot.lane.b32.xlu1 %v1349_v21, %s3324_s8  ;;  %1377 = vrot.lane.b32.xlu0 %v1341_v39, %s3324_s8  ;;  %v1350_v39 = vmul.f32 %v4349_v59, %v4410_v6  ;;  %6164 = vst [vmem:[#allocation157_spill] sm:$0xff] %v4802_v28  ;;  %v1861_v27 = vmul.f32 %v4802_v28, %v4518_v40  ;;  %v3187_v28 = vld [vmem:[%s3454_s5 + $0x68] sm:$0xff] }
 0x324   : > { %v281_v42 = vmul.f32 %v3187_v28, %v6087_v44 }
 0x325   : > { %v4712_v30 = vpop.permute.xlu1 %1717  ;;  %v4714_v16 = vpop.permute.xlu0 %1701 }
 0x326   : > { %6143 = vst [vmem:[#allocation138_spill] sm:$0xff] %v4712_v30  ;;  %6144 = vst [vmem:[#allocation139_spill] sm:$0xff] %v4714_v16  ;;  %v1342_v16 = vmul.f32 %v4277_v54, %v4410_v6 }
 0x327   : > { %2126 = vrot.lane.b32.xlu1 %v2086_v1, %s3325_s9  ;;  %2110 = vrot.lane.b32.xlu0 %v2078_v34, %s3325_s9  ;;  %v2087_v1 = vmul.f32 %v4222_v62, %v4560_v2  ;;  %v2079_v34 = vmul.f32 %v4219_v4, %v4560_v2  ;;  %v4759_v62 = vld [vmem:[%s3454_s5 + $0xa8] sm:$0xff] }
 0x328   : > { %6153 = vst [vmem:[#allocation148_spill] sm:$0xff] %v4759_v62 }
 0x329   : > { %v4722_v37 = vpop.permute.xlu1 %2026  ;;  %v4724_v21 = vpop.permute.xlu0 %2010 }
 0x32a   : > { %6145 = vst [vmem:[#allocation140_spill] sm:$0xff] %v4722_v37  ;;  %6146 = vst [vmem:[#allocation141_spill] sm:$0xff] %v4724_v21  ;;  %v4779_v37 = vld [vmem:[%s3454_s5 + $0xb2] sm:$0xff] }
 0x32b   : > { %1395 = vrot.lane.b32.xlu1 %v1350_v39, %s3324_s8  ;;  %1379 = vrot.lane.b32.xlu0 %v1342_v16, %s3324_s8  ;;  %v4747_v16 = vld [vmem:[%s3454_s5 + $0xaa] sm:$0xff]  ;;  %6159 = vst [vmem:[#allocation154_spill] sm:$0xff] %v4779_v37 }
 0x32c   : > { %6151 = vst [vmem:[#allocation146_spill] sm:$0xff] %v4747_v16 }
 0x32d   : > { %v4732_v53 = vpop.permute.xlu1 %1719  ;;  %v4734_v41 = vpop.permute.xlu0 %1703 }
 0x32e   : > { %6147 = vst [vmem:[#allocation142_spill] sm:$0xff] %v4732_v53  ;;  %6148 = vst [vmem:[#allocation143_spill] sm:$0xff] %v4734_v41  ;;  %v1569_v41 = vmul.f32 %v4747_v16, %v4427_v32  ;;  %v4752_v53 = vld [vmem:[%s3454_s5 + $0x4a] sm:$0xff]  ;;  %v3191_v16 = vld [vmem:[%s3454_s5 + $0x98] sm:$0xff] }
 0x32f   : > { %2128 = vrot.lane.b32.xlu1 %v2087_v1, %s3325_s9  ;;  %2112 = vrot.lane.b32.xlu0 %v2079_v34, %s3325_s9  ;;  %6152 = vst [vmem:[#allocation147_spill] sm:$0xff] %v4752_v53  ;;  %v1561_v4 = vmul.f32 %v4752_v53, %v4427_v32  ;;  %v4762_v1 = vld [vmem:[%s3454_s5 + $0x48] sm:$0xff]  ;;  %v3194_v53 = vld [vmem:[%s3454_s5 + $0x90] sm:$0xff] }
 0x330   : > { %6154 = vst [vmem:[#allocation149_spill] sm:$0xff] %v4762_v1  ;;  %v1860_v21 = vmul.f32 %v4762_v1, %v4518_v40  ;;  %v4799_v1 = vld [vmem:[%s3454_s5 + $0xb0] sm:$0xff] }
 0x331   : > { %v4742_v30 = vpop.permute.xlu1 %2028  ;;  %v4744_v39 = vpop.permute.xlu0 %2012 }
 0x332   : > { %6149 = vst [vmem:[#allocation144_spill] sm:$0xff] %v4742_v30  ;;  %6150 = vst [vmem:[#allocation145_spill] sm:$0xff] %v4744_v39  ;;  %v1868_v30 = vmul.f32 %v4759_v62, %v4518_v40 }
 0x333   : > { %1613 = vrot.lane.b32.xlu1 %v1569_v41, %s3325_s9  ;;  %1597 = vrot.lane.b32.xlu0 %v1561_v4, %s3325_s9 }
 0x335   : > { %v4764_v34 = vpop.permute.xlu1 %1513  ;;  %v4766_v39 = vpop.permute.xlu0 %1497 }
 0x336   : > { %6155 = vst [vmem:[#allocation150_spill] sm:$0xff] %v4764_v34  ;;  %6156 = vst [vmem:[#allocation151_spill] sm:$0xff] %v4766_v39  ;;  %v1570_v39 = vmul.f32 %v4779_v37, %v4427_v32  ;;  %v4784_v34 = vld [vmem:[%s3454_s5 + $0x52] sm:$0xff] }
 0x337   : > { %1910 = vrot.lane.b32.xlu1 %v1868_v30, %s3324_s8  ;;  %1894 = vrot.lane.b32.xlu0 %v1860_v21, %s3324_s8  ;;  %6160 = vst [vmem:[#allocation155_spill] sm:$0xff] %v4784_v34  ;;  %v1562_v62 = vmul.f32 %v4784_v34, %v4427_v32  ;;  %v4792_v30 = vrot.slane %v3953_v14, %v3441_v5  ;;  %v3182_v21 = vld [vmem:[%s3454_s5 + $0x18] sm:$0xff]  ;;  %v3186_v37 = vld [vmem:[%s3454_s5 + $0x30] sm:$0xff] }
 0x338   : > { %v274_v47 = vmul.f32 %v3182_v21, %v6087_v44  ;;  %v1351_v34 = vmul.f32 %v4366_v8, %v4410_v6 }
 0x339   : > { %v4774_v41 = vpop.permute.xlu1 %2234  ;;  %v4776_v4 = vpop.permute.xlu0 %2218  ;;  %6161 = vst [vmem:[#allocation156_spill] sm:$0xff] %v4792_v30  ;;  %v1869_v30 = vmul.f32 %v4799_v1, %v4518_v40  ;;  %v6205_v40 = vld [vmem:[#allocation26_spill] sm:$0xff] }
 0x33a   : > { %6157 = vst [vmem:[#allocation152_spill] sm:$0xff] %v4774_v41  ;;  %6158 = vst [vmem:[#allocation153_spill] sm:$0xff] %v4776_v4  ;;  %v6162_v4 = vld [vmem:[#allocation33_spill] sm:$0xff] }
 0x33b   : > { %1615 = vrot.lane.b32.xlu1 %v1570_v39, %s3325_s9  ;;  %1599 = vrot.lane.b32.xlu0 %v1562_v62, %s3325_s9  ;;  %v4796_v41 = vmul.f32 %v3182_v21, %v6162_v4  ;;  %6163 = vst [vmem:[#allocation33_spill] sm:$0xff] %v4799_v1  ;;  %v4806_v39 = vmul.f32 %v4440_v18, %v6162_v4 }
 0x33c   : > { %v4810_v62 = vmul.f32 %v4458_v20, %v6162_v4  ;;  %v275_v18 = vmul.f32 %v3183_v22, %v6087_v44  ;;  %v277_v20 = vmul.f32 %v3184_v24, %v6087_v44  ;;  %v276_v1 = vmul.f32 %v3186_v37, %v6087_v44  ;;  %v3189_v24 = vld [vmem:[%s3454_s5 + $0x80] sm:$0xff] }
 0x33d   : > { %v4812_v5 = vpop.permute.xlu1 %1515  ;;  %v4814_v14 = vpop.permute.xlu0 %1499  ;;  %v283_v21 = vmul.f32 %v3189_v24, %v6087_v44  ;;  %v285_v37 = vmul.f32 %v3191_v16, %v6087_v44  ;;  %v3195_v16 = vld [vmem:[%s3454_s5 + $0xa8] sm:$0xff]  ;;  %v251_v10 = vmul.f32 %v3183_v22, %v6162_v4  ;;  %v4860_v60 = vmul.f32 %v3192_v12, %v6162_v4 }
 0x33e   : > { %6165 = vst [vmem:[#allocation158_spill] sm:$0xff] %v4812_v5  ;;  %6166 = vst [vmem:[#allocation159_spill] sm:$0xff] %v4814_v14  ;;  %v3185_v5 = vld [vmem:[%s3454_s5 + $0x50] sm:$0xff]  ;;  %v286_v45 = vmul.f32 %v3195_v16, %v6087_v44  ;;  %v257_v8 = vmul.f32 %v3187_v28, %v6162_v4  ;;  %v4872_v22 = vadd.f32 %v6171_v7, %v277_v20  ;;  %v6181_v7 = vld [vmem:[#allocation20_spill] sm:$0xff] }
 0x33f   : > { %v279_v14 = vmul.f32 %v3185_v5, %v6087_v44  ;;  %1912 = vrot.lane.b32.xlu1 %v1869_v30, %s3324_s8  ;;  %1896 = vrot.lane.b32.xlu0 %v1861_v27, %s3324_s8  ;;  %v3190_v5 = vld [vmem:[%s3454_s5 + $0x60] sm:$0xff]  ;;  %v284_v30 = vmul.f32 %v3194_v53, %v6087_v44  ;;  %v6169_v53 = vld [vmem:[#allocation12_spill] sm:$0xff] }
 0x340   : > { %v280_v3 = vmul.f32 %v3190_v5, %v6087_v44  ;;  %v256_v19 = vmul.f32 %v3190_v5, %v6162_v4  ;;  %v6172_v44 = vld [vmem:[#allocation17_spill] sm:$0xff]  ;;  %v6173_v5 = vld [vmem:[#allocation8_spill] sm:$0xff] }
 0x341   : > { %v4847_v27 = vpop.permute.xlu1 %2236  ;;  %v4849_v11 = vpop.permute.xlu0 %2220  ;;  %v4875_v12 = vadd.f32 %v6172_v44, %v279_v14  ;;  %v2088_v14 = vmul.f32 %v4340_v33, %v4560_v2  ;;  %v6183_v44 = vld [vmem:[#allocation13_spill] sm:$0xff]  ;;  %v4909_v33 = vld [vmem:[%s3454_s5 + $0x32] sm:$0xff] }
 0x342   : > { %6167 = vst [vmem:[#allocation160_spill] sm:$0xff] %v4847_v27  ;;  %6168 = vst [vmem:[#allocation161_spill] sm:$0xff] %v4849_v11  ;;  %v4863_v27 = vadd.f32 %v6169_v53, %v275_v18  ;;  %v6170_v11 = vld [vmem:[#allocation7_spill] sm:$0xff]  ;;  %v4878_v18 = vadd.f32 %v6173_v5, %v276_v1  ;;  %v2080_v1 = vmul.f32 %v4274_v13, %v4560_v2 }
 0x343   : > { %v4866_v48 = vadd.f32 %v6170_v11, %v274_v47  ;;  %1397 = vrot.lane.b32.xlu1 %v1351_v34, %s3324_s8  ;;  %1381 = vrot.lane.b32.xlu0 %v1343_v50, %s3324_s8  ;;  %v259_v47 = vmul.f32 %v3189_v24, %v6162_v4  ;;  %v6174_v11 = vld [vmem:[#allocation18_spill] sm:$0xff]  ;;  %v6175_v34 = vld [vmem:[#allocation9_spill] sm:$0xff]  ;;  %v6178_v53 = vld [vmem:[#allocation19_spill] sm:$0xff]  ;;  %v4903_v5 = vadd.f32 %v6183_v44, %v282_v38 }
 0x344   : > { %v4882_v28 = vadd.f32 %v6174_v11, %v281_v42  ;;  %v4885_v16 = vadd.f32 %v6175_v34, %v278_v61  ;;  %v4896_v4 = vadd.f32 %v6178_v53, %v283_v21  ;;  %v6180_v24 = vld [vmem:[#allocation11_spill] sm:$0xff]  ;;  %v4900_v61 = vadd.f32 %v6181_v7, %v285_v37  ;;  %6186 = vst [vmem:[#allocation9_spill] sm:$0xff] %v4909_v33  ;;  %v6187_v34 = vld [vmem:[#allocation14_spill] sm:$0xff]  ;;  %v6189_v53 = vld [vmem:[#allocation36_spill] sm:$0xff] }
 0x345   : > { %v4887_v50 = vpop.permute.xlu1 %1721  ;;  %v4889_v20 = vpop.permute.xlu0 %1705  ;;  %v500_v42 = vadd.f32 %v6180_v24, %v280_v3  ;;  %6184 = vst [vmem:[#allocation8_spill] sm:$0xff] %v4903_v5  ;;  %v4906_v11 = vld [vmem:[%s3454_s5 + $0x92] sm:$0xff]  ;;  %v4912_v13 = vadd.f32 %v6187_v34, %v284_v30  ;;  %v3196_v21 = vld [vmem:[%s3454_s5 + $0xa] sm:$0xff]  ;;  %v3197_v3 = vld [vmem:[%s3454_s5 + $0x2] sm:$0xff] }
 0x346   : > { %6176 = vst [vmem:[#allocation12_spill] sm:$0xff] %v4887_v50  ;;  %6177 = vst [vmem:[#allocation7_spill] sm:$0xff] %v4889_v20  ;;  %v737_v20 = vmul.f32 %v3196_v21, %v6189_v53  ;;  %v736_v24 = vmul.f32 %v3197_v3, %v6189_v53  ;;  %v6190_v38 = vld [vmem:[#allocation21_spill] sm:$0xff]  ;;  %v6192_v7 = vld [vmem:[#allocation16_spill] sm:$0xff] }
 0x347   : > { %6179 = vst [vmem:[#allocation15_spill] sm:$0xff] %v4896_v4  ;;  %6182 = vst [vmem:[#allocation17_spill] sm:$0xff] %v4900_v61  ;;  %2130 = vrot.lane.b32.xlu1 %v2088_v14, %s3325_s9  ;;  %2114 = vrot.lane.b32.xlu0 %v2080_v1, %s3325_s9  ;;  %v4921_v37 = vadd.f32 %v6190_v38, %v287_v49  ;;  %v4924_v44 = vadd.f32 %v6192_v7, %v286_v45  ;;  %v4927_v50 = vld [vmem:[%s3454_s5 + $0x22] sm:$0xff]  ;;  %v4937_v21 = vld [vmem:[%s3454_s5 + $0x1a] sm:$0xff] }
 0x348   : > { %6185 = vst [vmem:[#allocation18_spill] sm:$0xff] %v4906_v11  ;;  %6188 = vst [vmem:[#allocation19_spill] sm:$0xff] %v4912_v13  ;;  %v739_v30 = vmul.f32 %v4927_v50, %v6189_v53  ;;  %v4932_v34 = vld [vmem:[%s3454_s5 + $0x62] sm:$0xff]  ;;  %v738_v49 = vmul.f32 %v4937_v21, %v6189_v53  ;;  %v4942_v1 = vld [vmem:[%s3454_s5 + $0x6a] sm:$0xff]  ;;  %v2386_v7 = vmul.f32 %v4906_v11, %v4663_v56 }
 0x349   : > { %6191 = vst [vmem:[#allocation11_spill] sm:$0xff] %v4921_v37  ;;  %6193 = vst [vmem:[#allocation20_spill] sm:$0xff] %v4924_v44  ;;  %v784_v14 = vmul.f32 %v4932_v34, %v6090_v15  ;;  %v745_v45 = vmul.f32 %v4942_v1, %v6189_v53  ;;  %v4946_v3 = vpop.permute.xlu1 %2030  ;;  %v4948_v38 = vpop.permute.xlu0 %2014  ;;  %v2378_v37 = vmul.f32 %v4909_v33, %v4663_v56  ;;  %v6199_v44 = vld [vmem:[#allocation59_spill] sm:$0xff]  ;;  %v6203_v33 = vld [vmem:[#allocation24_spill] sm:$0xff] }
 0x34a   : > { %6194 = vst [vmem:[#allocation13_spill] sm:$0xff] %v4927_v50  ;;  %6195 = vst [vmem:[#allocation14_spill] sm:$0xff] %v4932_v34  ;;  %v708_v61 = vadd.f32 %v6199_v44, %v500_v42  ;;  %v4958_v50 = vld [vmem:[%s3454_s5 + $0x82] sm:$0xff]  ;;  %v376_v36 = vadd.f32 %v6203_v33, %v4806_v39  ;;  %v384_v13 = vadd.f32 %v6206_v25, %v256_v19 }
 0x34b   : > { %6196 = vst [vmem:[#allocation36_spill] sm:$0xff] %v4937_v21  ;;  %6197 = vst [vmem:[#allocation21_spill] sm:$0xff] %v4946_v3  ;;  %v744_v21 = vmul.f32 %v4932_v34, %v6189_v53  ;;  %v747_v63 = vmul.f32 %v4958_v50, %v6189_v53  ;;  %v6202_v3 = vld [vmem:[#allocation23_spill] sm:$0xff]  ;;  %v6204_v42 = vld [vmem:[#allocation25_spill] sm:$0xff]  ;;  %2426 = vrot.lane.b32.xlu1 %v2386_v7, %s3324_s8  ;;  %2410 = vrot.lane.b32.xlu0 %v2378_v37, %s3324_s8 }
 0x34c   : > { %6198 = vst [vmem:[#allocation16_spill] sm:$0xff] %v4948_v38  ;;  %6200 = vst [vmem:[#allocation59_spill] sm:$0xff] %v4958_v50  ;;  %v746_v38 = vmul.f32 %v4963_v17, %v6189_v53  ;;  %v378_v11 = vadd.f32 %v6202_v3, %v4796_v41  ;;  %v377_v44 = vadd.f32 %v6204_v42, %v4810_v62  ;;  %v6207_v4 = vld [vmem:[#allocation29_spill] sm:$0xff]  ;;  %v6208_v17 = vld [vmem:[#allocation30_spill] sm:$0xff] }
 0x34d   : > { %v379_v50 = vadd.f32 %v6205_v40, %v251_v10  ;;  %v385_v43 = vadd.f32 %v6207_v4, %v257_v8  ;;  %v800_v53 = vadd.f32 %v784_v14, %v708_v61  ;;  %v387_v5 = vadd.f32 %v6208_v17, %v259_v47  ;;  %v6209_v41 = vld [vmem:[#allocation31_spill] sm:$0xff]  ;;  %v4980_v34 = vpop.permute.xlu1 %1723  ;;  %v4982_v39 = vpop.permute.xlu0 %1707  ;;  %v6212_v40 = vld [vmem:[#allocation32_spill] sm:$0xff]  ;;  %v6213_v10 = vld [vmem:[#allocation34_spill] sm:$0xff] }
 0x34e   : > { %v597_v3 = vadd.f32 %v6209_v41, %v377_v44  ;;  %6210 = vst [vmem:[#allocation23_spill] sm:$0xff] %v4980_v34  ;;  %6211 = vst [vmem:[#allocation24_spill] sm:$0xff] %v4982_v39  ;;  %v1352_v62 = vmul.f32 %v4369_v0, %v4410_v6  ;;  %v1344_v33 = vmul.f32 %v4305_v9, %v4410_v6  ;;  %v6214_v47 = vld [vmem:[#allocation28_spill] sm:$0xff]  ;;  %v6215_v61 = vld [vmem:[#allocation35_spill] sm:$0xff] }
 0x34f   : > { %v596_v25 = vadd.f32 %v6212_v40, %v376_v36  ;;  %v599_v19 = vadd.f32 %v6213_v10, %v379_v50  ;;  %v1021_v8 = vadd.f32 %v4116_v57, %v800_v53  ;;  %v1305_v17 = vmul.f32 %v4539_v26, %v4412_v51  ;;  %v6216_v14 = vld [vmem:[#allocation37_spill] sm:$0xff]  ;;  %v6217_v9 = vld [vmem:[#allocation38_spill] sm:$0xff]  ;;  %v6218_v36 = vld [vmem:[#allocation39_spill] sm:$0xff] }
 0x350   : > { %v386_v4 = vadd.f32 %v6214_v47, %v4860_v60  ;;  %v598_v37 = vadd.f32 %v6215_v61, %v378_v11  ;;  %v605_v0 = vadd.f32 %v6216_v14, %v385_v43  ;;  %1399 = vrot.lane.b32.xlu1 %v1352_v62, %s3324_s8  ;;  %1383 = vrot.lane.b32.xlu0 %v1344_v33, %s3324_s8  ;;  %v6219_v42 = vld [vmem:[#allocation40_spill] sm:$0xff]  ;;  %v6223_v41 = vld [vmem:[#allocation45_spill] sm:$0xff]  ;;  %v6227_v61 = vld [vmem:[#allocation54_spill] sm:$0xff] }
 0x351   : > { %v604_v6 = vadd.f32 %v6217_v9, %v384_v13  ;;  %v607_v50 = vadd.f32 %v6218_v36, %v387_v5  ;;  %v785_v57 = vmul.f32 %v4942_v1, %v6090_v15  ;;  %v1229_v7 = vadd.f32 %v4404_v46, %v1021_v8  ;;  %v5008_v11 = vld [vmem:[%s3454_s5 + $0x9a] sm:$0xff]  ;;  %v5010_v43 = vpop.permute.xlu1 %2032  ;;  %v5012_v53 = vpop.permute.xlu0 %2016  ;;  %v6260_v39 = vld [vmem:[#allocation127_spill] sm:$0xff] }
 0x352   : > { %v606_v60 = vadd.f32 %v6219_v42, %v386_v4  ;;  %v5005_v44 = vadd.f32 %v737_v20, %v597_v3  ;;  %6220 = vst [vmem:[#allocation25_spill] sm:$0xff] %v5008_v11  ;;  %6221 = vst [vmem:[#allocation26_spill] sm:$0xff] %v5010_v43  ;;  %v2089_v13 = vmul.f32 %v4349_v59, %v4560_v2  ;;  %v5025_v3 = vld [vmem:[%s3454_s5 + $0x3a] sm:$0xff]  ;;  %v2555_v59 = vld [vmem:[%s5916_s2 + $0x8] sm:$0xff] }
 0x353   : > { %6222 = vst [vmem:[#allocation27_spill] sm:$0xff] %v5012_v53  ;;  %v2081_v5 = vmul.f32 %v4277_v54, %v4560_v2  ;;  %v709_v62 = vadd.f32 %v6223_v41, %v4882_v28  ;;  %v5020_v46 = vadd.f32 %v736_v24, %v596_v25  ;;  %v5022_v33 = vadd.f32 %v739_v30, %v599_v19  ;;  %v2554_v40 = vld [vmem:[%s5916_s2] sm:$0xff]  ;;  %v2557_v4 = vld [vmem:[%s5916_s2 + $0x18] sm:$0xff] }
 0x354   : > { %v1321_v20 = vadd.f32 %v1305_v17, %v1229_v7  ;;  %6224 = vst [vmem:[#allocation29_spill] sm:$0xff] %v5025_v3  ;;  %v5033_v10 = vadd.f32 %v738_v49, %v598_v37  ;;  %v5035_v54 = vadd.f32 %v745_v45, %v605_v0  ;;  %2132 = vrot.lane.b32.xlu1 %v2089_v13, %s3325_s9  ;;  %v6229_v0 = vld [vmem:[#allocation56_spill] sm:$0xff] }
 0x355   : > { %2116 = vrot.lane.b32.xlu0 %v2081_v5, %s3325_s9  ;;  %v3070_v28 = vpack.c.bf16 %v2555_v59, %v2554_v40  ;;  %v5039_v24 = vadd.f32 %v744_v21, %v604_v6  ;;  %v5041_v30 = vadd.f32 %v747_v63, %v607_v50  ;;  %v801_v25 = vadd.f32 %v785_v57, %v709_v62  ;;  %v5046_v17 = vpop.permute.xlu1 %2238  ;;  %v5048_v49 = vpop.permute.xlu0 %2222  ;;  %v6230_v6 = vld [vmem:[#allocation43_spill] sm:$0xff]  ;;  %v6232_v57 = vld [vmem:[#allocation44_spill] sm:$0xff]  ;;  %v6240_v59 = vld [vmem:[#allocation46_spill] sm:$0xff] }
 0x356   : > { %v1541_v19 = vadd.f32 %v4451_v35, %v1321_v20  ;;  %v5044_v8 = vadd.f32 %v746_v38, %v606_v60  ;;  %6225 = vst [vmem:[#allocation30_spill] sm:$0xff] %v5046_v17  ;;  %6226 = vst [vmem:[#allocation31_spill] sm:$0xff] %v5048_v49  ;;  %v2387_v45 = vmul.f32 %v5008_v11, %v4663_v56  ;;  %v2556_v38 = vld [vmem:[%s5916_s2 + $0x10] sm:$0xff]  ;;  %v6235_v60 = vld [vmem:[#allocation14_spill] sm:$0xff] }
 0x357   : > { %v2379_v47 = vmul.f32 %v5025_v3, %v4663_v56  ;;  %3071 = vmatprep.subr.bf16.mxu0 %v3070_v28  ;;  %3086 = vmatprep.subr.bf16.mxu1 %v3070_v28  ;;  %v1022_v63 = vadd.f32 %v4128_v31, %v801_v25  ;;  %v1826_v35 = vmul.f32 %v4661_v55, %v4505_v29  ;;  %v6228_v31 = vld [vmem:[#allocation42_spill] sm:$0xff]  ;;  %v2558_v20 = vld [vmem:[%s5916_s2 + $0x20] sm:$0xff]  ;;  %v6239_v40 = vld [vmem:[#allocation15_spill] sm:$0xff] }
 0x358   : > { %v1749_v21 = vadd.f32 %v4507_v23, %v1541_v19  ;;  %3073 = vmatpush3.bf16.msra.mxu0 %v3070_v28  ;;  %3090 = vmatpush3.bf16.msra.mxu1 %v3070_v28  ;;  %v5066_v37 = vadd.f32 %v6227_v61, %v4866_v48  ;;  %v5070_v23 = vadd.f32 %v6228_v31, %v4863_v27  ;;  %v6231_v48 = vld [vmem:[#allocation58_spill] sm:$0xff]  ;;  %v6241_v25 = vld [vmem:[#allocation19_spill] sm:$0xff] }
 0x359   : > { %2428 = vrot.lane.b32.xlu1 %v2387_v45, %s3324_s8  ;;  %2412 = vrot.lane.b32.xlu0 %v2379_v47, %s3324_s8  ;;  %v3074_v14 = vpack.c.bf16 %v2557_v4, %v2556_v38  ;;  %v5076_v9 = vadd.f32 %v6229_v0, %v4878_v18  ;;  %v5080_v36 = vadd.f32 %v6230_v6, %v4872_v22  ;;  %v5091_v42 = vpop.permute.xlu1 %2240  ;;  %v5093_v18 = vpop.permute.xlu0 %2224  ;;  %v6242_v19 = vld [vmem:[#allocation63_spill] sm:$0xff]  ;;  %v5120_v47 = vld [vmem:[%s3454_s5 + $0xc0] sm:$0xff]  ;;  %v6243_v38 = vld [vmem:[#allocation114_spill] sm:$0xff] }
 0x35a   : > { %v5084_v50 = vadd.f32 %v6231_v48, %v4885_v16  ;;  %v1230_v27 = vadd.f32 %v4429_v52, %v1022_v63  ;;  %v5089_v7 = vadd.f32 %v6232_v57, %v4875_v12  ;;  %6233 = vst [vmem:[#allocation32_spill] sm:$0xff] %v5091_v42  ;;  %6234 = vst [vmem:[#allocation34_spill] sm:$0xff] %v5093_v18  ;;  %v6236_v16 = vld [vmem:[#allocation8_spill] sm:$0xff]  ;;  %v6237_v52 = vld [vmem:[#allocation61_spill] sm:$0xff] }
 0x35b   : > { %v1571_v22 = vmul.f32 %v4396_v58, %v4427_v32  ;;  %v1563_v13 = vmul.f32 %v6235_v60, %v4427_v32  ;;  %3075 = vmatprep.subr.bf16.mxu0 %v3074_v14  ;;  %3087 = vmatprep.subr.bf16.mxu1 %v3074_v14  ;;  %v5101_v5 = vadd.f32 %v6237_v52, %v6236_v16  ;;  %v6238_v12 = vld [vmem:[#allocation106_spill] sm:$0xff]  ;;  %v5123_v63 = vld [vmem:[%s3454_s5 + $0x60] sm:$0xff]  ;;  %v6246_v6 = vld [vmem:[#allocation115_spill] sm:$0xff] }
 0x35c   : > { %v1306_v41 = vmul.f32 %v6238_v12, %v4412_v51  ;;  %v1842_v62 = vadd.f32 %v1826_v35, %v1749_v21  ;;  %3077 = vmatpush3.bf16.msra.mxu0 %v3074_v14  ;;  %3091 = vmatpush3.bf16.msra.mxu1 %v3074_v14  ;;  %v2559_v58 = vld [vmem:[%s5916_s2 + $0x28] sm:$0xff]  ;;  %v5113_v28 = vadd.f32 %v6240_v59, %v6239_v40  ;;  %v6245_v0 = vld [vmem:[#allocation41_spill] sm:$0xff]  ;;  %v6261_v18 = vld [vmem:[#allocation155_spill] sm:$0xff] }
 0x35d   : > { %v5117_v45 = vadd.f32 %v6242_v19, %v6241_v25  ;;  %1617 = vrot.lane.b32.xlu1 %v1571_v22, %s3325_s9  ;;  %1601 = vrot.lane.b32.xlu0 %v1563_v13, %s3325_s9  ;;  %v3078_v21 = vpack.c.bf16 %v2559_v58, %v2558_v20  ;;  %v6244_v61 = vld [vmem:[#allocation78_spill] sm:$0xff]  ;;  %v2054_v48 = vadd.f32 %v6246_v6, %v6245_v0  ;;  %v5134_v57 = vpop.permute.xlu1 %2034  ;;  %v5136_v60 = vpop.permute.xlu0 %2018  ;;  %v6249_v22 = vld [vmem:[#allocation128_spill] sm:$0xff]  ;;  %v6254_v40 = vld [vmem:[#allocation53_spill] sm:$0xff] }
 0x35e   : > { %v1322_v35 = vadd.f32 %v1306_v41, %v1230_v27  ;;  %v2062_v4 = vadd.f32 %v6243_v38, %v1842_v62  ;;  %v1870_v31 = vmul.f32 %v5120_v47, %v6244_v61  ;;  %v1862_v14 = vmul.f32 %v5123_v63, %v6244_v61  ;;  %6247 = vst [vmem:[#allocation28_spill] sm:$0xff] %v5134_v57  ;;  %v6250_v16 = vld [vmem:[#allocation18_spill] sm:$0xff]  ;;  %v6251_v27 = vld [vmem:[#allocation9_spill] sm:$0xff]  ;;  %v6253_v20 = vld [vmem:[#allocation36_spill] sm:$0xff] }
 0x35f   : > { %6248 = vst [vmem:[#allocation35_spill] sm:$0xff] %v5136_v60  ;;  %v2346_v13 = vmul.f32 %v6250_v16, %v6249_v22  ;;  %v2338_v52 = vmul.f32 %v6251_v27, %v6249_v22  ;;  %3079 = vmatprep.subr.bf16.mxu0 %v3078_v21  ;;  %3088 = vmatprep.subr.bf16.mxu1 %v3078_v21  ;;  %v6252_v41 = vld [vmem:[#allocation13_spill] sm:$0xff]  ;;  %v2560_v25 = vld [vmem:[%s5916_s2 + $0x30] sm:$0xff]  ;;  %v2561_v19 = vld [vmem:[%s5916_s2 + $0x38] sm:$0xff] }
 0x360   : > { %v779_v62 = vmul.f32 %v6252_v41, %v6090_v15  ;;  %v778_v58 = vmul.f32 %v6253_v20, %v6090_v15  ;;  %v1542_v59 = vadd.f32 %v6254_v40, %v1322_v35  ;;  %3081 = vmatpush3.bf16.msra.mxu0 %v3078_v21  ;;  %3092 = vmatpush3.bf16.msra.mxu1 %v3078_v21  ;;  %v6255_v38 = vld [vmem:[#allocation124_spill] sm:$0xff]  ;;  %v6256_v6 = vld [vmem:[#allocation125_spill] sm:$0xff]  ;;  %v6258_v20 = vld [vmem:[#allocation47_spill] sm:$0xff] }
 0x361   : > { %v2270_v0 = vadd.f32 %v6255_v38, %v2062_v4  ;;  %v2262_v60 = vadd.f32 %v6256_v6, %v2054_v48  ;;  %1914 = vrot.lane.b32.xlu1 %v1870_v31, %s3324_s8  ;;  %1898 = vrot.lane.b32.xlu0 %v1862_v14, %s3324_s8  ;;  %v3082_v41 = vpack.c.bf16 %v2561_v19, %v2560_v25  ;;  %v6257_v35 = vld [vmem:[#allocation17_spill] sm:$0xff]  ;;  %v6259_v40 = vld [vmem:[#allocation132_spill] sm:$0xff]  ;;  %v6262_v4 = vld [vmem:[#allocation103_spill] sm:$0xff]  ;;  %v5166_v48 = vpop.permute.xlu1 %2036  ;;  %v5168_v31 = vpop.permute.xlu0 %2020 }
 0x362   : > { %v713_v21 = vadd.f32 %v6258_v20, %v6257_v35  ;;  %v781_v57 = vmul.f32 %v6259_v40, %v6090_v15  ;;  %v780_v34 = vmul.f32 %v6260_v39, %v6090_v15  ;;  %v783_v42 = vmul.f32 %v6261_v18, %v6090_v15  ;;  %6263 = vst [vmem:[#allocation37_spill] sm:$0xff] %v5166_v48  ;;  %v6265_v19 = vld [vmem:[#allocation20_spill] sm:$0xff]  ;;  %v6267_v20 = vld [vmem:[#allocation11_spill] sm:$0xff] }
 0x363   : > { %v1750_v38 = vadd.f32 %v6262_v4, %v1542_v59  ;;  %6264 = vst [vmem:[#allocation38_spill] sm:$0xff] %v5168_v31  ;;  %v2362_v14 = vadd.f32 %v2346_v13, %v2270_v0  ;;  %v2354_v25 = vadd.f32 %v2338_v52, %v2262_v60  ;;  %3083 = vmatprep.subr.bf16.mxu0 %v3082_v41  ;;  %v6266_v6 = vld [vmem:[#allocation64_spill] sm:$0xff]  ;;  %v6269_v59 = vld [vmem:[#allocation147_spill] sm:$0xff]  ;;  %v6270_v60 = vld [vmem:[#allocation133_spill] sm:$0xff] }
 0x364   : > { %3089 = vmatprep.subr.bf16.mxu1 %v3082_v41  ;;  %v714_v35 = vadd.f32 %v6266_v6, %v6265_v19  ;;  %v6268_v40 = vld [vmem:[#allocation48_spill] sm:$0xff]  ;;  %v5175_v39 = vadd.f32 %v779_v62, %v5070_v23  ;;  %3085 = vmatpush3.bf16.msra.mxu0 %v3082_v41  ;;  %v5178_v18 = vadd.f32 %v778_v58, %v5066_v37  ;;  %v6271_v37 = vld [vmem:[#allocation162_spill] sm:$0xff]  ;;  %v6282_v31 = vld [vmem:[#allocation119_spill] sm:$0xff] }
 0x365   : > { %v715_v53 = vadd.f32 %v6268_v40, %v6267_v20  ;;  %3093 = vmatpush3.bf16.msra.mxu1 %v3082_v41  ;;  %v782_v13 = vmul.f32 %v6269_v59, %v6090_v15  ;;  %v1827_v52 = vmul.f32 %v6270_v60, %v4505_v29  ;;  %2506 = vrot.lane.b32.xlu1 %v2362_v14, %s3325_s9  ;;  %v6272_v41 = vld [vmem:[#allocation59_spill] sm:$0xff]  ;;  %v5199_v6 = vpop.permute.xlu1 %2242  ;;  %v5201_v14 = vpop.permute.xlu0 %2226  ;;  %v6289_v48 = vld [vmem:[#allocation136_spill] sm:$0xff] }
 0x366   : > { %2490 = vrot.lane.b32.xlu0 %v2354_v25, %s3325_s9  ;;  %v5187_v0 = vadd.f32 %v781_v57, %v5080_v36  ;;  %v5190_v23 = vadd.f32 %v780_v34, %v5076_v9  ;;  %v5193_v62 = vadd.f32 %v783_v42, %v5089_v7  ;;  %v786_v58 = vmul.f32 %v6271_v37, %v6090_v15  ;;  %v6275_v36 = vld [vmem:[#allocation101_spill] sm:$0xff]  ;;  %v6277_v57 = vld [vmem:[#allocation126_spill] sm:$0xff]  ;;  %v6279_v40 = vld [vmem:[#allocation131_spill] sm:$0xff] }
 0x367   : > { %v787_v4 = vmul.f32 %v6272_v41, %v6090_v15  ;;  %v1843_v19 = vadd.f32 %v1827_v52, %v1750_v38  ;;  %6273 = vst [vmem:[#allocation39_spill] sm:$0xff] %v5199_v6  ;;  %6274 = vst [vmem:[#allocation40_spill] sm:$0xff] %v5201_v14  ;;  %v1572_v34 = vmul.f32 %v6275_v36, %v4427_v32  ;;  %v6276_v7 = vld [vmem:[#allocation69_spill] sm:$0xff]  ;;  %v6278_v38 = vld [vmem:[#allocation146_spill] sm:$0xff] }
 0x368   : > { %v1564_v9 = vmul.f32 %v4942_v1, %v4427_v32  ;;  %v896_v42 = vadd.f32 %v6276_v7, %v5020_v46  ;;  %v788_v25 = vmul.f32 %v6277_v57, %v6090_v15  ;;  %v790_v20 = vmul.f32 %v6278_v38, %v6090_v15  ;;  %v6280_v37 = vld [vmem:[#allocation118_spill] sm:$0xff]  ;;  %v6281_v36 = vld [vmem:[#allocation65_spill] sm:$0xff]  ;;  %v3207_v6 = vld [vmem:[%s3454_s5 + $0x91] sm:$0xff] }
 0x369   : > { %v789_v59 = vmul.f32 %v6279_v40, %v6090_v15  ;;  %v5216_v52 = vadd.f32 %v782_v13, %v5084_v50  ;;  %v2063_v41 = vadd.f32 %v6280_v37, %v1843_v19  ;;  %v2055_v32 = vadd.f32 %v6282_v31, %v6281_v36  ;;  %1619 = vrot.lane.b32.xlu1 %v1572_v34, %s3325_s9  ;;  %v6283_v46 = vld [vmem:[#allocation154_spill] sm:$0xff]  ;;  %v6287_v13 = vld [vmem:[#allocation89_spill] sm:$0xff]  ;;  %v5237_v14 = vpop.permute.xlu1 %2244  ;;  %v5400_v27 = vld [vmem:[%s3454_s5 + $0x78] sm:$0xff] }
 0x36a   : > { %1603 = vrot.lane.b32.xlu0 %v1564_v9, %s3325_s9  ;;  %v802_v1 = vadd.f32 %v786_v58, %v5101_v5  ;;  %v791_v7 = vmul.f32 %v6283_v46, %v6090_v15  ;;  %v6284_v57 = vld [vmem:[#allocation86_spill] sm:$0xff]  ;;  %v6290_v36 = vld [vmem:[#allocation137_spill] sm:$0xff]  ;;  %6291 = vst [vmem:[#allocation42_spill] sm:$0xff] %v5237_v14  ;;  %v5239_v9 = vpop.permute.xlu0 %2228  ;;  %v6293_v58 = vld [vmem:[#allocation55_spill] sm:$0xff]  ;;  %v803_v46 = vadd.f32 %v787_v4, %v5113_v28 }
 0x36b   : > { %v1117_v38 = vadd.f32 %v6284_v57, %v896_v42  ;;  %v5228_v40 = vld [vmem:[%s3454_s5 + $0xc8] sm:$0xff]  ;;  %v2271_v31 = vadd.f32 %v6289_v48, %v2063_v41  ;;  %v2263_v34 = vadd.f32 %v6290_v36, %v2055_v32  ;;  %6292 = vst [vmem:[#allocation56_spill] sm:$0xff] %v5239_v9  ;;  %v897_v42 = vadd.f32 %v6293_v58, %v5005_v44  ;;  %v6294_v44 = vld [vmem:[#allocation75_spill] sm:$0xff]  ;;  %v6295_v4 = vld [vmem:[#allocation85_spill] sm:$0xff] }
 0x36c   : > { %6285 = vst [vmem:[#allocation45_spill] sm:$0xff] %v5228_v40  ;;  %v5231_v50 = vld [vmem:[%s3454_s5 + $0x68] sm:$0xff]  ;;  %v1871_v15 = vmul.f32 %v5228_v40, %v6244_v61  ;;  %v5249_v57 = vadd.f32 %v788_v25, %v5117_v45  ;;  %v5251_v48 = vadd.f32 %v790_v20, %v714_v35  ;;  %v5253_v41 = vadd.f32 %v789_v59, %v713_v21  ;;  %v6296_v35 = vld [vmem:[#allocation67_spill] sm:$0xff]  ;;  %v6297_v20 = vld [vmem:[#allocation57_spill] sm:$0xff] }
 0x36d   : > { %6286 = vst [vmem:[#allocation54_spill] sm:$0xff] %v5231_v50  ;;  %v6288_v19 = vld [vmem:[#allocation6_spill] sm:$0xff]  ;;  %v1863_v5 = vmul.f32 %v5231_v50, %v6244_v61  ;;  %v2347_v32 = vmul.f32 %v5008_v11, %v6249_v22  ;;  %v904_v28 = vadd.f32 %v6294_v44, %v5039_v24  ;;  %v1118_v45 = vadd.f32 %v6295_v4, %v897_v42  ;;  %v6298_v14 = vld [vmem:[#allocation60_spill] sm:$0xff]  ;;  %v6299_v44 = vld [vmem:[#allocation95_spill] sm:$0xff] }
 0x36e   : > { %v1257_v37 = vmul.f32 %v6288_v19, %v6287_v13  ;;  %v2339_v19 = vmul.f32 %v5025_v3, %v6249_v22  ;;  %1916 = vrot.lane.b32.xlu1 %v1871_v15, %s3324_s8  ;;  %v1258_v21 = vmul.f32 %v6296_v35, %v6287_v13  ;;  %v5268_v59 = vadd.f32 %v6297_v20, %v5022_v33  ;;  %v1386_v15 = vpop.permute.xlu1 %1385  ;;  %v6300_v33 = vld [vmem:[#allocation71_spill] sm:$0xff]  ;;  %v5300_v20 = vld [vmem:[%s3454_s5 + $0xc1] sm:$0xff]  ;;  %v5397_v50 = vld [vmem:[%s3454_s5 + $0xd8] sm:$0xff] }
 0x36f   : > { %1900 = vrot.lane.b32.xlu0 %v1863_v5, %s3324_s8  ;;  %v5270_v36 = vadd.f32 %v791_v7, %v715_v53  ;;  %v2363_v58 = vadd.f32 %v2347_v32, %v2271_v31  ;;  %v1370_v5 = vpop.permute.xlu0 %1369  ;;  %v905_v24 = vadd.f32 %v6298_v14, %v5035_v54  ;;  %v1125_v42 = vadd.f32 %v6299_v44, %v904_v28  ;;  %v6301_v53 = vld [vmem:[#allocation62_spill] sm:$0xff]  ;;  %v6302_v31 = vld [vmem:[#allocation72_spill] sm:$0xff]  ;;  %v6303_v54 = vld [vmem:[#allocation79_spill] sm:$0xff] }
 0x370   : > { %v1273_v25 = vadd.f32 %v1257_v37, %v1117_v38  ;;  %v2355_v9 = vadd.f32 %v2339_v19, %v2263_v34  ;;  %v1265_v38 = vmul.f32 %v4539_v26, %v6287_v13  ;;  %v5279_v4 = vadd.f32 %v6300_v33, %v5033_v10  ;;  %v6304_v14 = vld [vmem:[#allocation94_spill] sm:$0xff]  ;;  %v6305_v28 = vld [vmem:[#allocation51_spill] sm:$0xff]  ;;  %6328 = vst [vmem:[#allocation58_spill] sm:$0xff] %v5397_v50  ;;  %v6336_v40 = vld [vmem:[#allocation157_spill] sm:$0xff] }
 0x371   : > { %v5283_v7 = vadd.f32 %v6301_v53, %v5041_v30  ;;  %v1023_v34 = vadd.f32 %v6302_v31, %v802_v1  ;;  %v1015_v26 = vadd.f32 %v6303_v54, %v5178_v18  ;;  %v1126_v32 = vadd.f32 %v6304_v14, %v905_v24  ;;  %v5316_v44 = vld [vmem:[%s3454_s5 + $0xaa] sm:$0xff]  ;;  %v6309_v14 = vld [vmem:[#allocation52_spill] sm:$0xff]  ;;  %6329 = vst [vmem:[#allocation44_spill] sm:$0xff] %v5400_v27 }
 0x372   : > { %v1417_v37 = vadd.f32 %v1370_v5, %v1273_v25  ;;  %2508 = vrot.lane.b32.xlu1 %v2363_v58, %s3325_s9  ;;  %v1266_v10 = vmul.f32 %v6238_v12, %v6287_v13  ;;  %v1274_v19 = vadd.f32 %v1258_v21, %v1118_v45  ;;  %v5295_v25 = vld [vmem:[%s3454_s5 + $0x31] sm:$0xff]  ;;  %v2090_v18 = vmul.f32 %v5300_v20, %v4560_v2  ;;  %v5305_v58 = vld [vmem:[%s3454_s5 + $0x61] sm:$0xff] }
 0x373   : > { %2492 = vrot.lane.b32.xlu0 %v2355_v9, %s3325_s9  ;;  %v1231_v30 = vadd.f32 %v6305_v28, %v1023_v34  ;;  %v1299_v1 = vmul.f32 %v5295_v25, %v4412_v51  ;;  %v1388_v9 = vpop.permute.xlu1 %1387  ;;  %v1372_v35 = vpop.permute.xlu0 %1371  ;;  %v2082_v12 = vmul.f32 %v5305_v58, %v4560_v2  ;;  %v6306_v45 = vld [vmem:[#allocation76_spill] sm:$0xff]  ;;  %v6307_v5 = vld [vmem:[#allocation66_spill] sm:$0xff]  ;;  %v1281_v53 = vadd.f32 %v1265_v38, %v1125_v42  ;;  %v6308_v34 = vld [vmem:[#allocation73_spill] sm:$0xff] }
 0x374   : > { %v5311_v21 = vadd.f32 %v6306_v45, %v5044_v8  ;;  %v1016_v24 = vadd.f32 %v6307_v5, %v5175_v39  ;;  %v5319_v33 = vld [vmem:[%s3454_s5 + $0x4a] sm:$0xff]  ;;  %v1418_v31 = vadd.f32 %v1372_v35, %v1274_v19  ;;  %v1024_v54 = vadd.f32 %v6308_v34, %v803_v46  ;;  %v6310_v39 = vld [vmem:[#allocation156_spill] sm:$0xff]  ;;  %v6312_v34 = vld [vmem:[#allocation5_spill] sm:$0xff] }
 0x375   : > { %v1223_v28 = vadd.f32 %v6309_v14, %v1015_v26  ;;  %v1307_v3 = vmul.f32 %v3207_v6, %v4412_v51  ;;  %v1425_v8 = vadd.f32 %v1386_v15, %v1281_v53  ;;  %v1282_v45 = vadd.f32 %v1266_v10, %v1126_v32  ;;  %v6311_v11 = vld [vmem:[#allocation10_spill] sm:$0xff]  ;;  %v6314_v53 = vld [vmem:[#allocation104_spill] sm:$0xff]  ;;  %v6316_v14 = vld [vmem:[#allocation49_spill] sm:$0xff] }
 0x376   : > { %2134 = vrot.lane.b32.xlu1 %v2090_v18, %s3325_s9  ;;  %v1786_v5 = vmul.f32 %v4661_v55, %v6310_v39  ;;  %v1778_v42 = vmul.f32 %v6311_v11, %v6310_v39  ;;  %v2388_v26 = vmul.f32 %v5316_v44, %v4663_v56  ;;  %v2380_v18 = vmul.f32 %v5319_v33, %v4663_v56  ;;  %v6313_v15 = vld [vmem:[#allocation50_spill] sm:$0xff] }
 0x377   : > { %2118 = vrot.lane.b32.xlu0 %v2082_v12, %s3325_s9  ;;  %v1315_v38 = vadd.f32 %v1299_v1, %v1223_v28  ;;  %v1323_v19 = vadd.f32 %v1307_v3, %v1231_v30  ;;  %v1606_v46 = vpop.permute.xlu1 %1605  ;;  %v1590_v35 = vpop.permute.xlu0 %1589  ;;  %v1224_v12 = vadd.f32 %v6312_v34, %v1016_v24  ;;  %v1232_v32 = vadd.f32 %v6313_v15, %v1024_v54  ;;  %v6315_v1 = vld [vmem:[#allocation107_spill] sm:$0xff]  ;;  %v3211_v34 = vld [vmem:[%s3454_s5 + $0x39] sm:$0xff] }
 0x378   : > { %v1645_v10 = vadd.f32 %v1606_v46, %v1425_v8  ;;  %v1637_v55 = vadd.f32 %v1590_v35, %v1417_v37  ;;  %v1787_v30 = vmul.f32 %v6270_v60, %v6310_v39  ;;  %v1426_v24 = vadd.f32 %v1388_v9, %v1282_v45  ;;  %v6317_v8 = vld [vmem:[#allocation112_spill] sm:$0xff]  ;;  %v5357_v9 = vld [vmem:[%s3454_s5 + $0x69] sm:$0xff] }
 0x379   : > { %v1535_v11 = vadd.f32 %v6314_v53, %v1315_v38  ;;  %v1543_v3 = vadd.f32 %v6315_v1, %v1323_v19  ;;  %v1779_v28 = vmul.f32 %v6316_v14, %v6310_v39  ;;  %v6318_v19 = vld [vmem:[#allocation113_spill] sm:$0xff]  ;;  %6319 = vst [vmem:[#allocation43_spill] sm:$0xff] %v5357_v9  ;;  %v2083_v45 = vmul.f32 %v5357_v9, %v4560_v2  ;;  %v6320_v1 = vld [vmem:[#allocation148_spill] sm:$0xff] }
 0x37a   : > { %2430 = vrot.lane.b32.xlu1 %v2388_v26, %s3324_s8  ;;  %v5343_v54 = vadd.f32 %v1786_v5, %v1645_v10  ;;  %v5345_v37 = vadd.f32 %v1778_v42, %v1637_v55  ;;  %v3210_v5 = vld [vmem:[%s3454_s5 + $0x99] sm:$0xff]  ;;  %v1300_v15 = vmul.f32 %v3211_v34, %v4412_v51 }
 0x37b   : > { %2414 = vrot.lane.b32.xlu0 %v2380_v18, %s3324_s8  ;;  %v1751_v38 = vadd.f32 %v6317_v8, %v1543_v3  ;;  %v1743_v46 = vadd.f32 %v6318_v19, %v1535_v11  ;;  %v1608_v35 = vpop.permute.xlu1 %1607  ;;  %v1592_v26 = vpop.permute.xlu0 %1591  ;;  %v5352_v18 = vld [vmem:[%s3454_s5 + $0xc9] sm:$0xff]  ;;  %v1308_v42 = vmul.f32 %v3210_v5, %v4412_v51  ;;  %v5366_v10 = vld [vmem:[%s3454_s5 + $0xb2] sm:$0xff]  ;;  %v1828_v3 = vmul.f32 %v6320_v1, %v4505_v29  ;;  %v6321_v14 = vld [vmem:[#allocation149_spill] sm:$0xff] }
 0x37c   : > { %v2091_v60 = vmul.f32 %v5352_v18, %v4560_v2  ;;  %v5369_v55 = vld [vmem:[%s3454_s5 + $0x52] sm:$0xff]  ;;  %v1646_v53 = vadd.f32 %v1608_v35, %v1426_v24  ;;  %v1638_v11 = vadd.f32 %v1592_v26, %v1418_v31  ;;  %v1820_v8 = vmul.f32 %v6321_v14, %v4505_v29 }
 0x37d   : > { %v1259_v19 = vmul.f32 %v5295_v25, %v6287_v13  ;;  %v1324_v9 = vadd.f32 %v1308_v42, %v1232_v32  ;;  %v1316_v43 = vadd.f32 %v1300_v15, %v1224_v12  ;;  %v1844_v24 = vadd.f32 %v1828_v3, %v1751_v38  ;;  %v6322_v25 = vld [vmem:[#allocation88_spill] sm:$0xff]  ;;  %v6323_v12 = vld [vmem:[#allocation97_spill] sm:$0xff]  ;;  %v6324_v42 = vld [vmem:[#allocation110_spill] sm:$0xff] }
 0x37e   : > { %2136 = vrot.lane.b32.xlu1 %v2091_v60, %s3325_s9  ;;  %v5379_v49 = vadd.f32 %v1787_v30, %v1646_v53  ;;  %v5381_v31 = vadd.f32 %v1779_v28, %v1638_v11  ;;  %v1836_v35 = vadd.f32 %v1820_v8, %v1743_v46  ;;  %v2389_v60 = vmul.f32 %v5366_v10, %v4663_v56  ;;  %v6325_v38 = vld [vmem:[#allocation111_spill] sm:$0xff]  ;;  %v6326_v53 = vld [vmem:[#allocation140_spill] sm:$0xff]  ;;  %v6327_v3 = vld [vmem:[#allocation141_spill] sm:$0xff] }
 0x37f   : > { %2120 = vrot.lane.b32.xlu0 %v2083_v45, %s3325_s9  ;;  %v1390_v26 = vpop.permute.xlu1 %1389  ;;  %v1374_v17 = vpop.permute.xlu0 %1373  ;;  %v2381_v45 = vmul.f32 %v5369_v55, %v4663_v56  ;;  %v1119_v32 = vadd.f32 %v6322_v25, %v5279_v4  ;;  %v1127_v30 = vadd.f32 %v6323_v12, %v5311_v21  ;;  %v1544_v15 = vadd.f32 %v6324_v42, %v1324_v9  ;;  %v6330_v4 = vld [vmem:[#allocation68_spill] sm:$0xff]  ;;  %v6332_v25 = vld [vmem:[#allocation117_spill] sm:$0xff] }
 0x380   : > { %v1267_v28 = vmul.f32 %v3207_v6, %v6287_v13  ;;  %v1536_v46 = vadd.f32 %v6325_v38, %v1316_v43  ;;  %v2064_v11 = vadd.f32 %v6326_v53, %v1844_v24  ;;  %v2056_v8 = vadd.f32 %v6327_v3, %v1836_v35  ;;  %v6331_v24 = vld [vmem:[#allocation116_spill] sm:$0xff]  ;;  %v6334_v38 = vld [vmem:[#allocation153_spill] sm:$0xff] }
 0x381   : > { %v5406_v21 = vadd.f32 %v6330_v4, %v5187_v0  ;;  %v1260_v6 = vmul.f32 %v3211_v34, %v6287_v13  ;;  %v1872_v43 = vmul.f32 %v5397_v50, %v6244_v61  ;;  %v1864_v9 = vmul.f32 %v5400_v27, %v6244_v61  ;;  %v6333_v42 = vld [vmem:[#allocation152_spill] sm:$0xff]  ;;  %v6335_v0 = vld [vmem:[#allocation33_spill] sm:$0xff] }
 0x382   : > { %2432 = vrot.lane.b32.xlu1 %v2389_v60, %s3324_s8  ;;  %v1752_v35 = vadd.f32 %v6331_v24, %v1544_v15  ;;  %v1744_v12 = vadd.f32 %v6332_v25, %v1536_v46  ;;  %v2272_v60 = vadd.f32 %v6333_v42, %v2064_v11  ;;  %v1829_v4 = vmul.f32 %v6335_v0, %v4505_v29 }
 0x383   : > { %2416 = vrot.lane.b32.xlu0 %v2381_v45, %s3324_s8  ;;  %v2264_v45 = vadd.f32 %v6334_v38, %v2056_v8  ;;  %v1392_v53 = vpop.permute.xlu1 %1391  ;;  %v1376_v3 = vpop.permute.xlu0 %1375  ;;  %v1283_v34 = vadd.f32 %v1267_v28, %v1127_v30  ;;  %v1275_v16 = vadd.f32 %v1259_v19, %v1119_v32  ;;  %v1268_v50 = vmul.f32 %v3210_v5, %v6287_v13 }
 0x384   : > { %v1821_v27 = vmul.f32 %v6336_v40, %v4505_v29  ;;  %v2348_v15 = vmul.f32 %v5316_v44, %v6249_v22  ;;  %v2340_v46 = vmul.f32 %v5319_v33, %v6249_v22  ;;  %v1788_v19 = vmul.f32 %v6320_v1, %v6310_v39  ;;  %v6339_v1 = vld [vmem:[#allocation80_spill] sm:$0xff] }
 0x385   : > { %v1427_v11 = vadd.f32 %v1390_v26, %v1283_v34  ;;  %v1419_v8 = vadd.f32 %v1374_v17, %v1275_v16  ;;  %v1780_v13 = vmul.f32 %v6321_v14, %v6310_v39  ;;  %v1845_v5 = vadd.f32 %v1829_v4, %v1752_v35  ;;  %v6338_v26 = vld [vmem:[#allocation96_spill] sm:$0xff]  ;;  %v5454_v4 = vld [vmem:[%s3454_s5 + $0x80] sm:$0xff] }
 0x386   : > { %1918 = vrot.lane.b32.xlu1 %v1872_v43, %s3324_s8  ;;  %v1837_v40 = vadd.f32 %v1821_v27, %v1744_v12  ;;  %v2364_v32 = vadd.f32 %v2348_v15, %v2272_v60  ;;  %v2356_v30 = vadd.f32 %v2340_v46, %v2264_v45  ;;  %v6337_v43 = vld [vmem:[#allocation87_spill] sm:$0xff]  ;;  %v1128_v17 = vadd.f32 %v6338_v26, %v5283_v7  ;;  %v6340_v14 = vld [vmem:[#allocation144_spill] sm:$0xff]  ;;  %v6341_v27 = vld [vmem:[#allocation145_spill] sm:$0xff] }
 0x387   : > { %1902 = vrot.lane.b32.xlu0 %v1864_v9, %s3324_s8  ;;  %v1610_v28 = vpop.permute.xlu1 %1609  ;;  %v1594_v24 = vpop.permute.xlu0 %1593  ;;  %v1120_v25 = vadd.f32 %v6337_v43, %v5268_v59  ;;  %v1017_v42 = vadd.f32 %v6339_v1, %v5190_v23  ;;  %v2065_v35 = vadd.f32 %v6340_v14, %v1845_v5  ;;  %v6342_v60 = vld [vmem:[#allocation70_spill] sm:$0xff]  ;;  %v6343_v59 = vld [vmem:[#allocation81_spill] sm:$0xff]  ;;  %v6344_v15 = vld [vmem:[#allocation160_spill] sm:$0xff]  ;;  %v2349_v43 = vmul.f32 %v5366_v10, %v6249_v22 }
 0x388   : > { %v1647_v16 = vadd.f32 %v1610_v28, %v1427_v11  ;;  %v1639_v9 = vadd.f32 %v1594_v24, %v1419_v8  ;;  %v2057_v12 = vadd.f32 %v6341_v27, %v1837_v40  ;;  %v5444_v38 = vadd.f32 %v6342_v60, %v5193_v62  ;;  %v5451_v45 = vld [vmem:[%s3454_s5 + $0xe0] sm:$0xff] }
 0x389   : > { %v5448_v7 = vadd.f32 %v6343_v59, %v5216_v52  ;;  %v2273_v46 = vadd.f32 %v6344_v15, %v2065_v35  ;;  %v6345_v11 = vld [vmem:[#allocation161_spill] sm:$0xff]  ;;  %v1873_v62 = vmul.f32 %v5451_v45, %v6244_v61  ;;  %v1865_v52 = vmul.f32 %v5454_v4, %v6244_v61  ;;  %v3212_v61 = vld [vmem:[%s5915_s1 + $0x18] sm:$0x7]  ;;  %v6351_v59 = vld [vmem:[#allocation83_spill] sm:$0xff] }
 0x38a   : > { %2510 = vrot.lane.b32.xlu1 %v2364_v32, %s3325_s9  ;;  %v5456_v23 = vadd.f32 %v1788_v19, %v1647_v16  ;;  %v5458_v34 = vadd.f32 %v1780_v13, %v1639_v9  ;;  %v2265_v8 = vadd.f32 %v6345_v11, %v2057_v12  ;;  %v1284_v32 = vadd.f32 %v1268_v50, %v1128_v17  ;;  %v6346_v13 = vld [vmem:[#allocation82_spill] sm:$0xff]  ;;  %v6349_v16 = vld [vmem:[#allocation105_spill] sm:$0xff] }
 0x38b   : > { %2494 = vrot.lane.b32.xlu0 %v2356_v30, %s3325_s9  ;;  %v1907_v5 = vpop.permute.xlu1 %1906  ;;  %v1891_v40 = vpop.permute.xlu0 %1890  ;;  %v1276_v30 = vadd.f32 %v1260_v6, %v1120_v25  ;;  %v1025_v24 = vadd.f32 %v6346_v13, %v5249_v57  ;;  %v2341_v26 = vmul.f32 %v5369_v55, %v6249_v22  ;;  %v6347_v50 = vld [vmem:[#allocation22_spill] sm:$0xff]  ;;  %v1789_v6 = vmul.f32 %v6335_v0, %v6310_v39  ;;  %v6352_v0 = vld [vmem:[#allocation84_spill] sm:$0xff] }
 0x38c   : > { %v5467_v28 = vadd.f32 %v1907_v5, %v5343_v54  ;;  %v5470_v19 = vadd.f32 %v1891_v40, %v5345_v37  ;;  %v5484_v54 = vrot.slane %v3212_v61, %v6347_v50  ;;  %v1428_v37 = vadd.f32 %v1392_v53, %v1284_v32  ;;  %v6348_v25 = vld [vmem:[#allocation102_spill] sm:$0xff]  ;;  %v6354_v40 = vld [vmem:[#allocation109_spill] sm:$0xff] }
 0x38d   : > { %v1420_v57 = vadd.f32 %v1376_v3, %v1276_v30  ;;  %v1225_v17 = vadd.f32 %v6348_v25, %v1017_v42  ;;  %v1233_v9 = vadd.f32 %v6349_v16, %v1025_v24  ;;  %v2365_v1 = vadd.f32 %v2349_v43, %v2273_v46  ;;  %v6350_v12 = vld [vmem:[#allocation74_spill] sm:$0xff]  ;;  %v3217_v50 = vld [vmem:[%s3454_s5 + $0x79] sm:$0xff] }
 0x38e   : > { %1920 = vrot.lane.b32.xlu1 %v1873_v62, %s3324_s8  ;;  %v2357_v14 = vadd.f32 %v2341_v26, %v2265_v8  ;;  %v1027_v60 = vadd.f32 %v6350_v12, %v5251_v48  ;;  %v1026_v53 = vadd.f32 %v6351_v59, %v5253_v41  ;;  %v5498_v11 = vadd.f32 %v6352_v0, %v5270_v36  ;;  %v3213_v42 = vld [vmem:[%s3454_s5 + $0xa9] sm:$0xff]  ;;  %v6353_v48 = vld [vmem:[#allocation108_spill] sm:$0xff] }
 0x38f   : > { %1904 = vrot.lane.b32.xlu0 %v1865_v52, %s3324_s8  ;;  %v1612_v35 = vpop.permute.xlu1 %1611  ;;  %v1596_v27 = vpop.permute.xlu0 %1595  ;;  %v1309_v46 = vmul.f32 %v3213_v42, %v4412_v51  ;;  %v3214_v8 = vld [vmem:[%s3454_s5 + $0x49] sm:$0xff]  ;;  %v1226_v36 = vadd.f32 %v6354_v40, %v5406_v21  ;;  %v3215_v62 = vld [vmem:[%s3454_s5 + $0xb1] sm:$0xff]  ;;  %v3216_v26 = vld [vmem:[%s3454_s5 + $0xd9] sm:$0xff]  ;;  %v1311_v21 = vmul.f32 %v5300_v20, %v4412_v51 }
 0x390   : > { %v1648_v15 = vadd.f32 %v1612_v35, %v1428_v37  ;;  %v5494_v3 = vadd.f32 %v1596_v27, %v1420_v57  ;;  %v1301_v5 = vmul.f32 %v3214_v8, %v4412_v51  ;;  %v1234_v41 = vadd.f32 %v6353_v48, %v1026_v53  ;;  %v3218_v57 = vld [vmem:[%s3454_s5 + $0x51] sm:$0xff]  ;;  %v5522_v16 = vld [vmem:[%s3454_s5 + $0x62] sm:$0xff] }
 0x391   : > { %v1310_v52 = vmul.f32 %v3215_v62, %v4412_v51  ;;  %v1325_v30 = vadd.f32 %v1309_v46, %v1233_v9  ;;  %v2092_v61 = vmul.f32 %v3216_v26, %v4560_v2  ;;  %v2084_v37 = vmul.f32 %v3217_v50, %v4560_v2  ;;  %v6355_v9 = vld [vmem:[#allocation122_spill] sm:$0xff] }
 0x392   : > { %2512 = vrot.lane.b32.xlu1 %v2365_v1, %s3325_s9  ;;  %v5511_v32 = vadd.f32 %v1789_v6, %v1648_v15  ;;  %v1317_v13 = vadd.f32 %v1301_v5, %v1225_v17  ;;  %v1302_v25 = vmul.f32 %v3218_v57, %v4412_v51  ;;  %v1303_v27 = vmul.f32 %v5305_v58, %v4412_v51  ;;  %v6357_v59 = vld [vmem:[#allocation138_spill] sm:$0xff]  ;;  %v6358_v15 = vld [vmem:[#allocation139_spill] sm:$0xff] }
 0x393   : > { %2496 = vrot.lane.b32.xlu0 %v2357_v14, %s3325_s9  ;;  %v1909_v24 = vpop.permute.xlu1 %1908  ;;  %v1893_v43 = vpop.permute.xlu0 %1892  ;;  %v1545_v1 = vadd.f32 %v6355_v9, %v1325_v30  ;;  %v6356_v14 = vld [vmem:[#allocation123_spill] sm:$0xff]  ;;  %v1326_v20 = vadd.f32 %v1310_v52, %v1234_v41  ;;  %v5545_v46 = vld [vmem:[%s3454_s5 + $0xc2] sm:$0xff]  ;;  %v1822_v5 = vmul.f32 %v5123_v63, %v4505_v29  ;;  %v6362_v52 = vld [vmem:[#allocation120_spill] sm:$0xff] }
 0x394   : > { %v5525_v6 = vadd.f32 %v1909_v24, %v5379_v49  ;;  %v5528_v17 = vadd.f32 %v1893_v43, %v5381_v31  ;;  %v1537_v35 = vadd.f32 %v6356_v14, %v1317_v13  ;;  %v1318_v12 = vadd.f32 %v1302_v25, %v1226_v36  ;;  %v6360_v41 = vld [vmem:[#allocation77_spill] sm:$0xff]  ;;  %v6361_v36 = vld [vmem:[#allocation90_spill] sm:$0xff]  ;;  %v6364_v43 = vld [vmem:[#allocation135_spill] sm:$0xff] }
 0x395   : > { %v5538_v49 = vmul.f32 %v5352_v18, %v4412_v51  ;;  %v1830_v31 = vmul.f32 %v5120_v47, %v4505_v29  ;;  %v1753_v53 = vadd.f32 %v6357_v59, %v1545_v1  ;;  %v2390_v8 = vmul.f32 %v5545_v46, %v4663_v56  ;;  %v6359_v47 = vld [vmem:[#allocation45_spill] sm:$0xff]  ;;  %v6363_v13 = vld [vmem:[#allocation134_spill] sm:$0xff] }
 0x396   : > { %2138 = vrot.lane.b32.xlu1 %v2092_v61, %s3325_s9  ;;  %v1745_v0 = vadd.f32 %v6358_v15, %v1537_v35  ;;  %v2382_v18 = vmul.f32 %v5522_v16, %v4663_v56  ;;  %v1831_v48 = vmul.f32 %v6359_v47, %v4505_v29  ;;  %v1235_v30 = vadd.f32 %v6362_v52, %v1027_v60  ;;  %v3220_v63 = vld [vmem:[%s3454_s5 + $0xe1] sm:$0xff]  ;;  %v6368_v35 = vld [vmem:[#allocation143_spill] sm:$0xff] }
 0x397   : > { %2122 = vrot.lane.b32.xlu0 %v2084_v37, %s3325_s9  ;;  %v1394_v42 = vpop.permute.xlu1 %1393  ;;  %v1378_v58 = vpop.permute.xlu0 %1377  ;;  %v1546_v24 = vadd.f32 %v6363_v13, %v1326_v20  ;;  %v1538_v26 = vadd.f32 %v6364_v43, %v1318_v12  ;;  %v2093_v61 = vmul.f32 %v3220_v63, %v4560_v2  ;;  %v3221_v50 = vld [vmem:[%s3454_s5 + $0x81] sm:$0xff]  ;;  %v1846_v12 = vadd.f32 %v1830_v31, %v1753_v53  ;;  %v5577_v15 = vld [vmem:[%s3454_s5 + $0x6a] sm:$0xff] }
 0x398   : > { %v5556_v40 = vadd.f32 %v1394_v42, %v6360_v41  ;;  %v5559_v62 = vadd.f32 %v1378_v58, %v6361_v36  ;;  %v2085_v37 = vmul.f32 %v3221_v50, %v4560_v2  ;;  %v6365_v57 = vld [vmem:[#allocation18_spill] sm:$0xff]  ;;  %v6366_v9 = vld [vmem:[#allocation9_spill] sm:$0xff]  ;;  %v1838_v59 = vadd.f32 %v1822_v5, %v1745_v0  ;;  %v6374_v50 = vld [vmem:[#allocation31_spill] sm:$0xff] }
 0x399   : > { %v2306_v25 = vmul.f32 %v6365_v57, %v5484_v54  ;;  %v2298_v60 = vmul.f32 %v6366_v9, %v5484_v54  ;;  %v6367_v1 = vld [vmem:[#allocation142_spill] sm:$0xff]  ;;  %v1746_v20 = vadd.f32 %v6368_v35, %v1538_v26  ;;  %v1327_v13 = vadd.f32 %v1311_v21, %v1235_v30  ;;  %v6372_v26 = vld [vmem:[#allocation16_spill] sm:$0xff] }
 0x39a   : > { %2434 = vrot.lane.b32.xlu1 %v2390_v8, %s3324_s8  ;;  %v1754_v14 = vadd.f32 %v6367_v1, %v1546_v24  ;;  %v6369_v8 = vld [vmem:[#allocation121_spill] sm:$0xff]  ;;  %v2058_v31 = vadd.f32 %v6372_v26, %v1838_v59  ;;  %v5590_v53 = vld [vmem:[%s3454_s5 + $0xca] sm:$0xff]  ;;  %v2383_v0 = vmul.f32 %v5577_v15, %v4663_v56  ;;  %v2350_v1 = vmul.f32 %v5545_v46, %v6249_v22 }
 0x39b   : > { %2418 = vrot.lane.b32.xlu0 %v2382_v18, %s3324_s8  ;;  %v2127_v42 = vpop.permute.xlu1 %2126  ;;  %v2111_v58 = vpop.permute.xlu0 %2110  ;;  %v1227_v2 = vadd.f32 %v6369_v8, %v5448_v7  ;;  %v6370_v18 = vld [vmem:[#allocation54_spill] sm:$0xff]  ;;  %v6371_v24 = vld [vmem:[#allocation21_spill] sm:$0xff]  ;;  %v2391_v7 = vmul.f32 %v5590_v53, %v4663_v56  ;;  %v6376_v59 = vld [vmem:[#allocation91_spill] sm:$0xff] }
 0x39c   : > { %v1823_v41 = vmul.f32 %v6370_v18, %v4505_v29  ;;  %v2166_v36 = vadd.f32 %v2127_v42, %v5467_v28  ;;  %v2158_v52 = vadd.f32 %v2111_v58, %v5470_v19  ;;  %v2066_v43 = vadd.f32 %v6371_v24, %v1846_v12  ;;  %v6373_v30 = vld [vmem:[#allocation30_spill] sm:$0xff] }
 0x39d   : > { %v1847_v21 = vadd.f32 %v1831_v48, %v1754_v14  ;;  %v1319_v9 = vadd.f32 %v1303_v27, %v1227_v2  ;;  %v6375_v35 = vld [vmem:[#allocation98_spill] sm:$0xff]  ;;  %v6378_v48 = vld [vmem:[#allocation27_spill] sm:$0xff]  ;;  %v6379_v27 = vld [vmem:[#allocation129_spill] sm:$0xff] }
 0x39e   : > { %2140 = vrot.lane.b32.xlu1 %v2093_v61, %s3325_s9  ;;  %v5596_v28 = vadd.f32 %v2306_v25, %v2166_v36  ;;  %v5598_v19 = vadd.f32 %v2298_v60, %v2158_v52  ;;  %v1839_v5 = vadd.f32 %v1823_v41, %v1746_v20  ;;  %v2274_v63 = vadd.f32 %v6373_v30, %v2066_v43  ;;  %v6377_v60 = vld [vmem:[#allocation26_spill] sm:$0xff]  ;;  %v6381_v41 = vld [vmem:[#allocation25_spill] sm:$0xff] }
 0x39f   : > { %2124 = vrot.lane.b32.xlu0 %v2085_v37, %s3325_s9  ;;  %v2266_v61 = vadd.f32 %v6374_v50, %v2058_v31  ;;  %v1396_v57 = vpop.permute.xlu1 %1395  ;;  %v1380_v37 = vpop.permute.xlu0 %1379  ;;  %v2067_v42 = vadd.f32 %v6377_v60, %v1847_v21  ;;  %v2342_v20 = vmul.f32 %v5522_v16, %v6249_v22  ;;  %v1236_v58 = vadd.f32 %v6379_v27, %v5498_v11  ;;  %v6380_v8 = vld [vmem:[#allocation130_spill] sm:$0xff]  ;;  %v6382_v52 = vld [vmem:[#allocation29_spill] sm:$0xff]  ;;  %v6383_v31 = vld [vmem:[#allocation32_spill] sm:$0xff] }
 0x3a0   : > { %v5605_v12 = vadd.f32 %v1396_v57, %v6375_v35  ;;  %v5608_v25 = vadd.f32 %v1380_v37, %v6376_v59  ;;  %v2059_v14 = vadd.f32 %v6378_v48, %v1839_v5  ;;  %v1228_v2 = vadd.f32 %v6380_v8, %v5444_v38  ;;  %v6384_v5 = vld [vmem:[#allocation34_spill] sm:$0xff]  ;;  %v6385_v50 = vld [vmem:[#allocation43_spill] sm:$0xff]  ;;  %v6388_v48 = vld [vmem:[#allocation12_spill] sm:$0xff] }
 0x3a1   : > { %v2307_v36 = vmul.f32 %v6381_v41, %v5484_v54  ;;  %v2299_v24 = vmul.f32 %v6382_v52, %v5484_v54  ;;  %v2366_v43 = vadd.f32 %v2350_v1, %v2274_v63  ;;  %v2358_v26 = vadd.f32 %v2342_v20, %v2266_v61  ;;  %v6386_v63 = vld [vmem:[#allocation150_spill] sm:$0xff]  ;;  %v6387_v1 = vld [vmem:[#allocation151_spill] sm:$0xff]  ;;  %v5646_v27 = vld [vmem:[%s3454_s5 + $0xda] sm:$0xff] }
 0x3a2   : > { %2436 = vrot.lane.b32.xlu1 %v2391_v7, %s3324_s8  ;;  %v2275_v21 = vadd.f32 %v6383_v31, %v2067_v42  ;;  %v2267_v7 = vadd.f32 %v6384_v5, %v2059_v14  ;;  %v1304_v11 = vmul.f32 %v6385_v50, %v4412_v51  ;;  %v2351_v38 = vmul.f32 %v5590_v53, %v6249_v22  ;;  %v6389_v14 = vld [vmem:[#allocation7_spill] sm:$0xff]  ;;  %v5649_v8 = vld [vmem:[%s3454_s5 + $0x7a] sm:$0xff] }
 0x3a3   : > { %2420 = vrot.lane.b32.xlu0 %v2383_v0, %s3324_s8  ;;  %v2129_v30 = vpop.permute.xlu1 %2128  ;;  %v2113_v0 = vpop.permute.xlu0 %2112  ;;  %v1547_v61 = vadd.f32 %v6386_v63, %v1327_v13  ;;  %v1539_v35 = vadd.f32 %v6387_v1, %v1319_v9  ;;  %v2343_v59 = vmul.f32 %v5577_v15, %v6249_v22  ;;  %v1328_v51 = vadd.f32 %v5538_v49, %v1236_v58  ;;  %v6390_v49 = vld [vmem:[#allocation58_spill] sm:$0xff] }
 0x3a4   : > { %v2167_v57 = vadd.f32 %v2129_v30, %v5525_v6  ;;  %v2159_v37 = vadd.f32 %v2113_v0, %v5528_v17  ;;  %v1320_v60 = vadd.f32 %v1304_v11, %v1228_v2  ;;  %v2367_v20 = vadd.f32 %v2351_v38, %v2275_v21  ;;  %v6393_v21 = vld [vmem:[#allocation44_spill] sm:$0xff]  ;;  %v6394_v30 = vld [vmem:[#allocation23_spill] sm:$0xff] }
 0x3a5   : > { %v1755_v17 = vadd.f32 %v6388_v48, %v1547_v61  ;;  %v1747_v13 = vadd.f32 %v6389_v14, %v1539_v35  ;;  %v2359_v9 = vadd.f32 %v2343_v59, %v2267_v7  ;;  %v1832_v58 = vmul.f32 %v6390_v49, %v4505_v29  ;;  %v6395_v0 = vld [vmem:[#allocation24_spill] sm:$0xff]  ;;  %v6397_v48 = vld [vmem:[#allocation35_spill] sm:$0xff] }
 0x3a6   : > { %2514 = vrot.lane.b32.xlu1 %v2366_v43, %s3325_s9  ;;  %v5639_v42 = vadd.f32 %v2307_v36, %v2167_v57  ;;  %v5641_v6 = vadd.f32 %v2299_v24, %v2159_v37  ;;  %v6391_v24 = vld [vmem:[#allocation158_spill] sm:$0xff]  ;;  %v1824_v5 = vmul.f32 %v6393_v21, %v4505_v29  ;;  %v2392_v7 = vmul.f32 %v5646_v27, %v4663_v56 }
 0x3a7   : > { %2498 = vrot.lane.b32.xlu0 %v2358_v26, %s3325_s9  ;;  %v1614_v41 = vpop.permute.xlu1 %1613  ;;  %v1598_v52 = vpop.permute.xlu0 %1597  ;;  %v1548_v43 = vadd.f32 %v6391_v24, %v1328_v51  ;;  %v6392_v26 = vld [vmem:[#allocation159_spill] sm:$0xff]  ;;  %v1848_v11 = vadd.f32 %v1832_v58, %v1755_v17  ;;  %v5672_v57 = vld [vmem:[%s3454_s5 + $0xe2] sm:$0xff]  ;;  %v1833_v1 = vmul.f32 %v5451_v45, %v4505_v29  ;;  %v6396_v51 = vld [vmem:[#allocation28_spill] sm:$0xff]  ;;  %v1825_v17 = vmul.f32 %v5454_v4, %v4505_v29 }
 0x3a8   : > { %v5654_v2 = vadd.f32 %v1614_v41, %v5556_v40  ;;  %v5657_v36 = vadd.f32 %v1598_v52, %v5559_v62  ;;  %v1540_v31 = vadd.f32 %v6392_v26, %v1320_v60  ;;  %v2384_v40 = vmul.f32 %v5649_v8, %v4663_v56  ;;  %v5675_v37 = vld [vmem:[%s3454_s5 + $0x82] sm:$0xff]  ;;  %v6398_v52 = vld [vmem:[#allocation39_spill] sm:$0xff]  ;;  %v6399_v24 = vld [vmem:[#allocation40_spill] sm:$0xff] }
 0x3a9   : > { %v1756_v62 = vadd.f32 %v6394_v30, %v1548_v43  ;;  %v1840_v38 = vadd.f32 %v1824_v5, %v1747_v13  ;;  %v2068_v60 = vadd.f32 %v6396_v51, %v1848_v11  ;;  %v2393_v13 = vmul.f32 %v5672_v57, %v4663_v56  ;;  %v6401_v30 = vld [vmem:[#allocation38_spill] sm:$0xff] }
 0x3aa   : > { %2516 = vrot.lane.b32.xlu1 %v2367_v20, %s3325_s9  ;;  %v1748_v50 = vadd.f32 %v6395_v0, %v1540_v31  ;;  %v2385_v20 = vmul.f32 %v5675_v37, %v4663_v56  ;;  %v2352_v31 = vmul.f32 %v5646_v27, %v6249_v22  ;;  %v6400_v56 = vld [vmem:[#allocation37_spill] sm:$0xff]  ;;  %v2344_v0 = vmul.f32 %v5649_v8, %v6249_v22 }
 0x3ab   : > { %2500 = vrot.lane.b32.xlu0 %v2359_v9, %s3325_s9  ;;  %v1911_v63 = vpop.permute.xlu1 %1910  ;;  %v1895_v61 = vpop.permute.xlu0 %1894  ;;  %v2060_v14 = vadd.f32 %v6397_v48, %v1840_v38  ;;  %v1849_v9 = vadd.f32 %v1833_v1, %v1756_v62  ;;  %v2276_v58 = vadd.f32 %v6398_v52, %v2068_v60 }
 0x3ac   : > { %v1948_v35 = vadd.f32 %v1911_v63, %v5456_v23  ;;  %v1940_v59 = vadd.f32 %v1895_v61, %v5458_v34  ;;  %v3223_v23 = vld [vmem:[%s3454_s5 + $0x50] sm:$0xff]  ;;  %v1841_v41 = vadd.f32 %v1825_v17, %v1748_v50  ;;  %v6403_v61 = vld [vmem:[#allocation56_spill] sm:$0xff]  ;;  %v2345_v17 = vmul.f32 %v5675_v37, %v6249_v22 }
 0x3ad   : > { %v1781_v34 = vmul.f32 %v3223_v23, %v6310_v39  ;;  %v2268_v43 = vadd.f32 %v6399_v24, %v2060_v14  ;;  %v2368_v11 = vadd.f32 %v2352_v31, %v2276_v58  ;;  %v2353_v14 = vmul.f32 %v5672_v57, %v6249_v22 }
 0x3ae   : > { %2438 = vrot.lane.b32.xlu1 %v2392_v7, %s3324_s8  ;;  %v2061_v62 = vadd.f32 %v6401_v30, %v1841_v41  ;;  %v6405_v41 = vld [vmem:[#allocation92_spill] sm:$0xff]  ;;  %v2300_v22 = vmul.f32 %v5319_v33, %v5484_v54  ;;  %v2301_v33 = vmul.f32 %v5369_v55, %v5484_v54 }
 0x3af   : > { %2422 = vrot.lane.b32.xlu0 %v2384_v40, %s3324_s8  ;;  %v1616_v29 = vpop.permute.xlu1 %1615  ;;  %v1600_v26 = vpop.permute.xlu0 %1599  ;;  %v2069_v40 = vadd.f32 %v6400_v56, %v1849_v9  ;;  %v1797_v50 = vadd.f32 %v1781_v34, %v5494_v3  ;;  %v2360_v38 = vadd.f32 %v2344_v0, %v2268_v43  ;;  %v6404_v34 = vld [vmem:[#allocation99_spill] sm:$0xff]  ;;  %v6406_v0 = vld [vmem:[#allocation100_spill] sm:$0xff] }
 0x3b0   : > { %v5698_v5 = vadd.f32 %v1616_v29, %v5605_v12  ;;  %v5701_v7 = vadd.f32 %v1600_v26, %v5608_v25  ;;  %v6402_v12 = vld [vmem:[#allocation42_spill] sm:$0xff]  ;;  %v2269_v25 = vadd.f32 %v6403_v61, %v2061_v62 }
 0x3b1   : > { %v2277_v63 = vadd.f32 %v6402_v12, %v2069_v40 }
 0x3b2   : > { %2440 = vrot.lane.b32.xlu1 %v2393_v13, %s3324_s8  ;;  %v2361_v13 = vadd.f32 %v2345_v17, %v2269_v25 }
 0x3b3   : > { %2424 = vrot.lane.b32.xlu0 %v2385_v20, %s3324_s8  ;;  %v1913_v1 = vpop.permute.xlu1 %1912  ;;  %v1897_v51 = vpop.permute.xlu0 %1896  ;;  %v2369_v3 = vadd.f32 %v2353_v14, %v2277_v63 }
 0x3b4   : > { %v1949_v60 = vadd.f32 %v1913_v1, %v5511_v32  ;;  %v1941_v48 = vadd.f32 %v1897_v51, %v1797_v50  ;;  %v2308_v32 = vmul.f32 %v5316_v44, %v5484_v54  ;;  %v2309_v44 = vmul.f32 %v5366_v10, %v5484_v54 }
 0x3b6   : > { %2518 = vrot.lane.b32.xlu1 %v2368_v11, %s3325_s9  ;;  %v6407_v11 = vld [vmem:[#allocation93_spill] sm:$0xff] }
 0x3b7   : > { %2502 = vrot.lane.b32.xlu0 %v2360_v38, %s3325_s9  ;;  %v1398_v20 = vpop.permute.xlu1 %1397  ;;  %v1382_v23 = vpop.permute.xlu0 %1381 }
 0x3b8   : > { %v1431_v9 = vadd.f32 %v1398_v20, %v6404_v34  ;;  %v1423_v52 = vadd.f32 %v1382_v23, %v6405_v41 }
 0x3ba   : > { %2520 = vrot.lane.b32.xlu1 %v2369_v3, %s3325_s9 }
 0x3bb   : > { %2504 = vrot.lane.b32.xlu0 %v2361_v13, %s3325_s9  ;;  %v2131_v58 = vpop.permute.xlu1 %2130  ;;  %v2115_v24 = vpop.permute.xlu0 %2114  ;;  %s3326_s9 = smov [#allocation2]  }
 0x3bc   : > { %v2168_v43 = vadd.f32 %v2131_v58, %v1948_v35  ;;  %v2160_v29 = vadd.f32 %v2115_v24, %v1940_v59  ;;  %s3230_s14 = sshll.u32 %s3326_s9, 4  ;;  %s3231_s14 = int_to_ptr.vmem [resolvable:$false] %s3230_s14 }
 0x3bd   : > { %s3232_s30 = scalar_lea.vmem %s3231_s14, 4096 }
 0x3be   : > { %v2324_v26 = vadd.f32 %v2308_v32, %v2168_v43  ;;  %v2316_v31 = vadd.f32 %v2300_v22, %v2160_v29 }
 0x3bf   : > { %v2427_v56 = vpop.permute.xlu1 %2426  ;;  %v2411_v40 = vpop.permute.xlu0 %2410 }
 0x3c0   : > { %v2466_v55 = vadd.f32 %v2427_v56, %v5596_v28  ;;  %v2458_v23 = vadd.f32 %v2411_v40, %v5598_v19 }
 0x3c3   : > { %v1400_v30 = vpop.permute.xlu1 %1399  ;;  %v1384_v62 = vpop.permute.xlu0 %1383 }
 0x3c4   : > { %v1432_v50 = vadd.f32 %v1400_v30, %v6406_v0  ;;  %v1424_v38 = vadd.f32 %v1384_v62, %v6407_v11 }
 0x3c7   : > { %v2133_v12 = vpop.permute.xlu1 %2132  ;;  %v2117_v63 = vpop.permute.xlu0 %2116 }
 0x3c8   : > { %v2169_v35 = vadd.f32 %v2133_v12, %v1949_v60  ;;  %v2161_v59 = vadd.f32 %v2117_v63, %v1941_v48 }
 0x3ca   : > { %v2325_v61 = vadd.f32 %v2309_v44, %v2169_v35  ;;  %v2317_v25 = vadd.f32 %v2301_v33, %v2161_v59 }
 0x3cb   : > { %v2429_v1 = vpop.permute.xlu1 %2428  ;;  %v2413_v51 = vpop.permute.xlu0 %2412 }
 0x3cc   : > { %v2467_v28 = vadd.f32 %v2429_v1, %v5639_v42  ;;  %v2459_v19 = vadd.f32 %v2413_v51, %v5641_v6 }
 0x3cf   : > { %v1618_v14 = vpop.permute.xlu1 %1617  ;;  %v1602_v17 = vpop.permute.xlu0 %1601 }
 0x3d0   : > { %v5733_v3 = vadd.f32 %v1618_v14, %v1431_v9  ;;  %v5735_v13 = vadd.f32 %v1602_v17, %v1423_v52 }
 0x3d3   : > { %v5737_v20 = vpop.permute.xlu1 %1914  ;;  %v5739_v10 = vpop.permute.xlu0 %1898 }
 0x3d7   : > { %v2507_v60 = vpop.permute.xlu1 %2506 }
 0x3d8   : > { %v2491_v48 = vpop.permute.xlu0 %2490  ;;  %v2546_v34 = vadd.f32 %v2507_v60, %v2466_v55 }
 0x3d9   : > { %v2538_v41 = vadd.f32 %v2491_v48, %v2458_v23 }
 0x3da   : > { %3058 = vmatprep.mubr.msk.f32.mxu1 %vm2569_vm0, %v2546_v34 }
 0x3db   : > { %3046 = vmatprep.mubr.msk.f32.mxu0 %vm2569_vm0, %v2538_v41  ;;  %v1620_v9 = vpop.permute.xlu1 %1619 }
 0x3dc   : > { %v1604_v52 = vpop.permute.xlu0 %1603  ;;  %v5745_v32 = vadd.f32 %v1620_v9, %v1432_v50  ;;  %v3224_v9 = vld [vmem:[%s3454_s5 + $0xc0] sm:$0xff] }
 0x3dd   : > { %v5747_v22 = vadd.f32 %v1604_v52, %v1424_v38  ;;  %v1790_v52 = vmul.f32 %v3224_v9, %v6310_v39 }
 0x3e0   : > { %v1917_v58 = vpop.permute.xlu1 %1916 }
 0x3e1   : > { %v1901_v24 = vpop.permute.xlu0 %1900 }
 0x3e4   : > { %v2509_v43 = vpop.permute.xlu1 %2508 }
 0x3e5   : > { %v2493_v29 = vpop.permute.xlu0 %2492  ;;  %v2547_v56 = vadd.f32 %v2509_v43, %v2467_v28  ;;  %v3225_v28 = vld [vmem:[%s3454_s5 + $0x60] sm:$0xff]  ;;  %v1806_v43 = vadd.f32 %v1790_v52, %v5654_v2  ;;  %s212_s5 = sand.u32 1, %s3296_s16  }
 0x3e6   : > { %v2539_v40 = vadd.f32 %v2493_v29, %v2459_v19  ;;  %v1782_v19 = vmul.f32 %v3225_v28, %v6310_v39  ;;  %s2885_s8 = sshll.u32 %s212_s5, 7  ;;  %s5861_s24 = scalar_lea.sflag [#allocation3], %s212_s5 }
 0x3e7   : > { %3059 = vmatmul.mubr.msk.f32.vlgmr.msra.gmra.mrb[0].mxu1 %vm2569_vm0, %v2547_v56  ;;  %v1791_v56 = vmul.f32 %v6359_v47, %v6310_v39  ;;  %s5831_s27 = scalar_lea.vmem [#allocation2], %s2885_s8 }
 0x3e8   : > { %3047 = vmatmul.mubr.msk.f32.vlgmr.msra.gmra.mrb[0].mxu0 %vm2569_vm0, %v2539_v40  ;;  %v2135_v30 = vpop.permute.xlu1 %2134  ;;  %v1798_v29 = vadd.f32 %v1782_v19, %v5657_v36  ;;  %v1783_v40 = vmul.f32 %v6370_v18, %v6310_v39  ;;  %s2795_s12 = sshll.u32 %s5831_s27, 4  ;;  %s5848_s12 = int_to_ptr.vmem [resolvable:$true] %s2795_s12 }
 0x3e9   : > { %v2119_v62 = vpop.permute.xlu0 %2118  ;;  %v1807_v36 = vadd.f32 %v1791_v56, %v5698_v5  ;;  %s3226_s8 = scalar_lea.vmem %s5848_s12, 2048  ;;  %p3233_p4 = scmp.lt.s32.totalorder %s5848_s12, %s3231_s14 }
 0x3ea   : > { %p3227_p0 = scmp.ne.s32.totalorder %s5848_s12, %s3226_s8  ;;  %p3234_p5 = scmp.lt.s32.totalorder %s3232_s30, %s3226_s8 }
 0x3ec   : > { %v2431_v0 = vpop.permute.xlu1 %2430  ;;  %p3228_p1 = pnand %p3227_p0, %p3404_p3  ;;  %p3235_p6 = por %p3234_p5, %p3233_p4 }
 0x3ed   : > { %v2415_v50 = vpop.permute.xlu0 %2414  ;;  %v2468_v6 = vadd.f32 %v2431_v0, %v2324_v26  ;;  %v1950_v0 = vadd.f32 %v5737_v20, %v1806_v43  ;;  %v2311_v20 = vmul.f32 %v5590_v53, %v5484_v54 }
 0x3ee   : > { %v2460_v63 = vadd.f32 %v2415_v50, %v2316_v31  ;;  %v1942_v50 = vadd.f32 %v5739_v10, %v1798_v29  ;;  %p3229_p2 = pneg %p3228_p1 }
 0x3ef   : > { %v2170_v47 = vadd.f32 %v2135_v30, %v1950_v0 }
 0x3f0   : > { %v2137_v11 = vpop.permute.xlu1 %2136  ;;  %p3236_p7 = pnand %p3235_p6, %p3229_p2 }
 0x3f1   : > { %v2121_v38 = vpop.permute.xlu0 %2120 }
 0x3f4   : > { %v2433_v44 = vpop.permute.xlu1 %2432 }
 0x3f5   : > { %v2417_v33 = vpop.permute.xlu0 %2416  ;;  %v2469_v55 = vadd.f32 %v2433_v44, %v2325_v61  ;;  %v2310_v44 = vmul.f32 %v5545_v46, %v5484_v54  ;;  %v2303_v46 = vmul.f32 %v5577_v15, %v5484_v54 }
 0x3f6   : > { %v2461_v23 = vadd.f32 %v2417_v33, %v2317_v25  ;;  %v2302_v33 = vmul.f32 %v5522_v16, %v5484_v54 }
 0x3f8   : > { %v5753_v12 = vpop.permute.xlu1 %1918 }
 0x3f9   : > { %v5755_v42 = vpop.permute.xlu0 %1902 }
 0x3fc   : > { %v2511_v35 = vpop.permute.xlu1 %2510 }
 0x3fd   : > { %v2495_v59 = vpop.permute.xlu0 %2494  ;;  %v2548_v1 = vadd.f32 %v2511_v35, %v2468_v6  ;;  %v2162_v35 = vadd.f32 %v2119_v62, %v1942_v50 }
 0x3fe   : > { %v2540_v51 = vadd.f32 %v2495_v59, %v2460_v63  ;;  %v1799_v63 = vadd.f32 %v1783_v40, %v5701_v7  ;;  %v1951_v59 = vadd.f32 %v1917_v58, %v1807_v36  ;;  %v1792_v7 = vmul.f32 %v6390_v49, %v6310_v39 }
 0x3ff   : > { %3061 = vmatprep.mubr.msk.f32.mxu1 %vm2569_vm0, %v2548_v1  ;;  %v1784_v58 = vmul.f32 %v6393_v21, %v6310_v39  ;;  %v1785_v49 = vmul.f32 %v5454_v4, %v6310_v39  ;;  %v2304_v4 = vmul.f32 %v5649_v8, %v5484_v54  ;;  %v2305_v8 = vmul.f32 %v5675_v37, %v5484_v54 }
 0x400   : > { %3049 = vmatprep.mubr.msk.f32.mxu0 %vm2569_vm0, %v2540_v51  ;;  %v5759_v14 = vpop.permute.xlu1 %1920  ;;  %v1943_v18 = vadd.f32 %v1901_v24, %v1799_v63  ;;  %v2171_v51 = vadd.f32 %v2137_v11, %v1951_v59  ;;  %v1793_v11 = vmul.f32 %v5451_v45, %v6310_v39  ;;  %v1808_v9 = vadd.f32 %v1792_v7, %v5733_v3  ;;  %v2983_v59 = vld [vmem:[%s5917_s3] ss:$0 sm:$0xff] }
 0x401   : > { %v5761_v17 = vpop.permute.xlu0 %1904  ;;  %v1800_v52 = vadd.f32 %v1784_v58, %v5735_v13  ;;  %v2312_v45 = vmul.f32 %v5646_v27, %v5484_v54  ;;  %v1801_v43 = vadd.f32 %v1785_v49, %v5747_v22  ;;  %v2313_v27 = vmul.f32 %v5672_v57, %v5484_v54 }
 0x402   : > { %v2163_v16 = vadd.f32 %v2121_v38, %v1943_v18  ;;  %v2327_v53 = vadd.f32 %v2311_v20, %v2171_v51  ;;  %v1809_v13 = vadd.f32 %v1793_v11, %v5745_v32 }
 0x403   : > { %v1945_v56 = vadd.f32 %v5761_v17, %v1801_v43 }
 0x404   : > { %v2513_v60 = vpop.permute.xlu1 %2512  ;;  %v2319_v62 = vadd.f32 %v2303_v46, %v2163_v16  ;;  %v1953_v29 = vadd.f32 %v5759_v14, %v1809_v13 }
 0x405   : > { %v2497_v48 = vpop.permute.xlu0 %2496  ;;  %v2549_v26 = vadd.f32 %v2513_v60, %v2469_v55  ;;  %v2326_v55 = vadd.f32 %v2310_v44, %v2170_v47 }
 0x406   : > { %v2541_v31 = vadd.f32 %v2497_v48, %v2461_v23  ;;  %v2318_v23 = vadd.f32 %v2302_v33, %v2162_v35 }
 0x407   : > { %3062 = vmatmul.mubr.msk.f32.gmra.mrb[2].mxu1 %vm2569_vm0, %v2549_v26 }
 0x408   : > { %3050 = vmatmul.mubr.msk.f32.gmra.mrb[2].mxu0 %vm2569_vm0, %v2541_v31  ;;  %v5765_v34 = vpop.permute.xlu1 %2138 }
 0x409   : > { %v5767_v41 = vpop.permute.xlu0 %2122 }
 0x40c   : > { %v2435_v61 = vpop.permute.xlu1 %2434 }
 0x40d   : > { %v2419_v25 = vpop.permute.xlu0 %2418  ;;  %v2470_v60 = vadd.f32 %v2435_v61, %v2326_v55  ;;  %v1952_v61 = vadd.f32 %v5753_v12, %v1808_v9 }
 0x40e   : > { %v2462_v5 = vadd.f32 %v2419_v25, %v2318_v23  ;;  %v1944_v25 = vadd.f32 %v5755_v42, %v1800_v52 }
 0x40f   : > { %v2172_v12 = vadd.f32 %v5765_v34, %v1952_v61 }
 0x410   : > { %v2141_v6 = vpop.permute.xlu1 %2140  ;;  %v2164_v42 = vadd.f32 %v5767_v41, %v1944_v25 }
 0x411   : > { %v2125_v2 = vpop.permute.xlu0 %2124  ;;  %v2173_v50 = vadd.f32 %v2141_v6, %v1953_v29  ;;  %v2328_v44 = vadd.f32 %v2312_v45, %v2172_v12 }
 0x412   : > { %v2165_v32 = vadd.f32 %v2125_v2, %v1945_v56  ;;  %v2320_v22 = vadd.f32 %v2304_v4, %v2164_v42 }
 0x413   : > { %v2329_v14 = vadd.f32 %v2313_v27, %v2173_v50 }
 0x414   : > { %v2437_v10 = vpop.permute.xlu1 %2436  ;;  %v2321_v17 = vadd.f32 %v2305_v8, %v2165_v32 }
 0x415   : > { %v2421_v1 = vpop.permute.xlu0 %2420  ;;  %v2471_v15 = vadd.f32 %v2437_v10, %v2327_v53 }
 0x416   : > { %v2463_v31 = vadd.f32 %v2421_v1, %v2319_v62 }
 0x418   : > { %v2515_v24 = vpop.permute.xlu1 %2514 }
 0x419   : > { %v2499_v30 = vpop.permute.xlu0 %2498  ;;  %v2550_v48 = vadd.f32 %v2515_v24, %v2470_v60 }
 0x41a   : > { %v2542_v26 = vadd.f32 %v2499_v30, %v2462_v5 }
 0x41b   : > { %3064 = vmatprep.mubr.msk.f32.mxu1 %vm2569_vm0, %v2550_v48 }
 0x41c   : > { %3052 = vmatprep.mubr.msk.f32.mxu0 %vm2569_vm0, %v2542_v26  ;;  %v2517_v38 = vpop.permute.xlu1 %2516 }
 0x41d   : > { %v2501_v21 = vpop.permute.xlu0 %2500  ;;  %v2551_v28 = vadd.f32 %v2517_v38, %v2471_v15 }
 0x41e   : > { %v2543_v19 = vadd.f32 %v2501_v21, %v2463_v31 }
 0x41f   : > { %3065 = vmatmul.mubr.msk.f32.gmra.mrb[4].mxu1 %vm2569_vm0, %v2551_v28 }
 0x420   : > { %3053 = vmatmul.mubr.msk.f32.gmra.mrb[4].mxu0 %vm2569_vm0, %v2543_v19  ;;  %v2439_v39 = vpop.permute.xlu1 %2438 }
 0x421   : > { %v2423_v3 = vpop.permute.xlu0 %2422  ;;  %v2472_v33 = vadd.f32 %v2439_v39, %v2328_v44 }
 0x422   : > { %v2464_v34 = vadd.f32 %v2423_v3, %v2320_v22 }
 0x424   : > { %v2441_v40 = vpop.permute.xlu1 %2440 }
 0x425   : > { %v2425_v0 = vpop.permute.xlu0 %2424  ;;  %v2473_v57 = vadd.f32 %v2441_v40, %v2329_v14 }
 0x426   : > { %v2465_v35 = vadd.f32 %v2425_v0, %v2321_v17 }
 0x428   : > { %v2519_v36 = vpop.permute.xlu1 %2518 }
 0x429   : > { %v2503_v41 = vpop.permute.xlu0 %2502  ;;  %v2552_v63 = vadd.f32 %v2519_v36, %v2472_v33 }
 0x42a   : > { %v2544_v47 = vadd.f32 %v2503_v41, %v2464_v34 }
 0x42b   : > { %3067 = vmatprep.mubr.msk.f32.mxu1 %vm2569_vm0, %v2552_v63 }
 0x42c   : > { %3055 = vmatprep.mubr.msk.f32.mxu0 %vm2569_vm0, %v2544_v47  ;;  %v2521_v54 = vpop.permute.xlu1 %2520 }
 0x42d   : > { %v2505_v37 = vpop.permute.xlu0 %2504  ;;  %v2553_v6 = vadd.f32 %v2521_v54, %v2473_v57 }
 0x42e   : > { %v2545_v2 = vadd.f32 %v2505_v37, %v2465_v35 }
 0x42f   : > { %3068 = vmatmul.mubr.msk.f32.gmra.mrb[6].mxu1 %vm2569_vm0, %v2553_v6 }
 0x430   : > { %3056 = vmatmul.mubr.msk.f32.gmra.mrb[6].mxu0 %vm2569_vm0, %v2545_v2 }
 0x4ba   : > { %v3060_v20 = vpop.f32.mrb[0].mxu1 }
 0x4bb   : > { %v3048_v18 = vpop.f32.mrb[0].mxu0  ;;  %v2730_v46 = vadd.f32 %v3060_v20, %v2983_v59  ;;  %v2724_v51 = vpop.f32.mrb[1].mxu1 }
 0x4bc   : > { %v2690_v10 = vadd.f32 %v3048_v18, %v2983_v59  ;;  %v2684_v1 = vpop.f32.mrb[1].mxu0  ;;  %v2725_v55 = vadd.f32 %v2983_v59, %v2724_v51 }
 0x4bd   : > { %v2685_v16 = vadd.f32 %v2983_v59, %v2684_v1  ;;  %2772 = vst [vmem:[%s5831_s27 + $0x48] sm:$0xff] %v2730_v46 }
 0x4be   : > { %2764 = vst [vmem:[%s5831_s27 + $0x8] sm:$0xff] %v2690_v10  ;;  %2771 = vst [vmem:[%s5831_s27 + $0x40] sm:$0xff] %v2725_v55 }
 0x4bf   : > { %2763 = vst [vmem:[%s5831_s27] sm:$0xff] %v2685_v16 }
 0x4da   : > { %v3063_v60 = vpop.f32.mrb[2].mxu1 }
 0x4db   : > { %v3051_v23 = vpop.f32.mrb[2].mxu0  ;;  %v2740_v7 = vadd.f32 %v3063_v60, %v2983_v59  ;;  %v2734_v24 = vpop.f32.mrb[3].mxu1 }
 0x4dc   : > { %v2700_v5 = vadd.f32 %v3051_v23, %v2983_v59  ;;  %v2694_v58 = vpop.f32.mrb[3].mxu0  ;;  %v2735_v53 = vadd.f32 %v2983_v59, %v2734_v24 }
 0x4dd   : > { %v2695_v30 = vadd.f32 %v2983_v59, %v2694_v58  ;;  %2774 = vst [vmem:[%s5831_s27 + $0x58] sm:$0xff] %v2740_v7 }
 0x4de   : > { %2766 = vst [vmem:[%s5831_s27 + $0x18] sm:$0xff] %v2700_v5  ;;  %2773 = vst [vmem:[%s5831_s27 + $0x50] sm:$0xff] %v2735_v53 }
 0x4df   : > { %2765 = vst [vmem:[%s5831_s27 + $0x10] sm:$0xff] %v2695_v30 }
 0x4f2   : > { %v3066_v48 = vpop.f32.mrb[4].mxu1 }
 0x4f3   : > { %v3054_v62 = vpop.f32.mrb[4].mxu0  ;;  %v2750_v15 = vadd.f32 %v3066_v48, %v2983_v59  ;;  %v2744_v11 = vpop.f32.mrb[5].mxu1 }
 0x4f4   : > { %v2710_v26 = vadd.f32 %v3054_v62, %v2983_v59  ;;  %v2704_v31 = vpop.f32.mrb[5].mxu0  ;;  %v2745_v38 = vadd.f32 %v2983_v59, %v2744_v11 }
 0x4f5   : > { %v2705_v49 = vadd.f32 %v2983_v59, %v2704_v31  ;;  %2776 = vst [vmem:[%s5831_s27 + $0x68] sm:$0xff] %v2750_v15 }
 0x4f6   : > { %2768 = vst [vmem:[%s5831_s27 + $0x28] sm:$0xff] %v2710_v26  ;;  %2775 = vst [vmem:[%s5831_s27 + $0x60] sm:$0xff] %v2745_v38 }
 0x4f7   : > { %2767 = vst [vmem:[%s5831_s27 + $0x20] sm:$0xff] %v2705_v49 }
 0x502   : > { %v3069_v9 = vpop.f32.mrb[6].mxu1 }
 0x503   : > { %v3057_v21 = vpop.f32.mrb[6].mxu0  ;;  %v2760_v28 = vadd.f32 %v3069_v9, %v2983_v59  ;;  %v2754_v61 = vpop.f32.mrb[7].mxu1 }
 0x504   : > { %v2720_v52 = vadd.f32 %v3057_v21, %v2983_v59  ;;  %v2714_v19 = vpop.f32.mrb[7].mxu0  ;;  %v2755_v45 = vadd.f32 %v2983_v59, %v2754_v61 }
 0x505   : > { %v2715_v25 = vadd.f32 %v2983_v59, %v2714_v19  ;;  %2778 = vst [vmem:[%s5831_s27 + $0x78] sm:$0xff] %v2760_v28 }
 0x506   : > { %2770 = vst [vmem:[%s5831_s27 + $0x38] sm:$0xff] %v2720_v52  ;;  %2777 = vst [vmem:[%s5831_s27 + $0x70] sm:$0xff] %v2755_v45 }
 0x507   : > { %2769 = vst [vmem:[%s5831_s27 + $0x30] sm:$0xff] %v2715_v25 }
 0x508   : > { %3239 = shalt.err (!%p3236_p7)
}
 0x509   : > { %s3240_s5 = scalar_lea.hbm %s5853_s23, 2048  ;;  %s3244_s11 = scalar_lea.hbm %s5918_s4, 8192 }
 0x50a   : > { %p3241_p9 = scmp.ne.s32.totalorder %s5853_s23, %s3240_s5  ;;  %p3245_p12 = scmp.lt.u32.totalorder %s5853_s23, %s5918_s4 }
 0x50b   : > { %p3246_p13 = scmp.lt.u32.totalorder %s3244_s11, %s3240_s5  ;;  %p3248_p1 = scmp.lt.u32.totalorder %s3240_s5, %s5853_s23 }
 0x50c   : > { %p3242_p10 = pnand %p3241_p9, %p3404_p3 }
 0x50d   : > { %p3247_p0 = por %p3246_p13, %p3245_p12 }
 0x50e   : > { %p3243_p11 = pneg %p3242_p10 }
 0x50f   : > { %p3249_p2 = por %p3248_p1, %p3247_p0 }
 0x511   : > { %p3250_p4 = pnand %p3249_p2, %p3243_p11 }
 0x513   : > { %3253 = shalt.err (!%p3250_p4)
}
 0x514   : > { %s3327_s19 = smov 128  }
 0x515   : > { %3096 = dma.vmem_to_hbm [thread:$0]  (%p3404_p3), %s5848_s12, 2048, %s5853_s23, %s5861_s24, %s3327_s19, %s3327_s19, %s3323_s6  }
 0x516 PF: > { %p3102_p5 = scmp.ge.s32.totalorder %s3320_s22, 2  ;;  %s2810_s8 = sand.u32 1, %s3292_s15  }
 0x517   : > { %s2811_s9 = scalar_lea.sflag [#allocation3], %s2810_s8 }
 0x518   : > { %p3099_p6 = pnand %p3102_p5, %p3413_p8 }
 0x51a   : > { %3287 = dma.done.wait (!%p3099_p6), %s2811_s9, 2048  }
 0x51b   : > { %3289 = vsyncadd (!%p3099_p6), %s2811_s9, 4294965248  ;;  %s17_s22 = sadd.s32 1, %s3320_s22   ;;  %s6408_s15 = smov %s3296_s16 }
 0x51c   : > { %p14_p7 = scmp.ge.s32.totalorder %s17_s22, 6   ;;  %s6409_s16 = smov %s3300_s17 }
 0x51d   : > { %s6410_s17 = smov %s3422_s7  ;;  %s6411_s18 = smov %s3312_s20 }
 0x51e   : > { %s6412_s19 = smov %s3316_s21  ;;  %s6413_s20 = smov %s6416_s25 }
 0x51f   : > { %s6414_s21 = smov %s6420_s26  ;;  %16 = sbr.rel (!%p14_p7) target bundleno = 5 (0x5), region = 73 }
 0x526   :  { %2816 = vsyncpa [#allocation3], 1 }
 0x527   :  { %2818 = vsyncpa [#allocation3 + $0x1], 1 }

</bundles_post_ra>
